<compile_context>
chip_gen: v7x
topology: tpu7x:2x2x1
jax: 0.10.0
libtpu: 0.0.40
codegen_flags: <defaults>
</compile_context>

<pallas_src>
import functools

import jax
import jax.numpy as jnp
from jax import lax
from jax.experimental import pallas as pl
from jax.experimental.pallas import tpu as pltpu

_LRELU_SLOPE = 0.2
_BN_EPS = 1e-5
ACT_DTYPE = jnp.bfloat16   # inter-layer activation storage dtype
MXU_DTYPE = jnp.bfloat16   # MXU operand dtype (set both to jnp.float32 for f32 parity)


def _lrelu(x):
    return jnp.maximum(x, _LRELU_SLOPE * x)


# --------------------------------- kernel ---------------------------------

def _make_conv_kernel(*, Wo, Cout, nth, ntw, R, nblk,
                      pad_input, prologue, has_bias, act, stats):
    """Fused conv-layer kernel (one full image per grid step).

    In-kernel pipeline:
      [optional prologue: previous layer's BN affine + LeakyReLU on the raw input
       + zero padding, all in VMEM]
      -> tap-fused, row-blocked conv on the MXU
      -> [optional bias / activation epilogue]
      -> [optional per-image BN partial sums of the raw conv output].
    """

    def kernel(*refs):
        i = 0
        x_ref = refs[i]; i += 1                        # (1, Hs, Ws, Cs)
        w_ref = refs[i]; i += 1                        # (16*Cin, Cout)  MXU dtype
        sc_ref = sh_ref = b_ref = None
        if prologue:
            sc_ref, sh_ref = refs[i], refs[i + 1]; i += 2      # (1, Cin) f32 each
        if has_bias:
            b_ref = refs[i]; i += 1                            # (1, Cout) f32
        y_ref = refs[i]; i += 1                        # (1, Ho, Wo, Cout)
        sum_ref = sq_ref = None
        if stats:
            sum_ref, sq_ref = refs[i], refs[i + 1]; i += 2     # (1, 1, Cout) f32 each

        if pad_input:
            # Raw (un-padded, pre-BN) stride-1 input: apply the previous layer's
            # BN affine + LeakyReLU, then zero-pad (padding=1) purely in VMEM.
            _, Hin, Win, Cin = x_ref.shape
            xa = x_ref[0].astype(jnp.float32)                  # (Hin, Win, Cin)
            if prologue:
                xa = _lrelu(xa * sc_ref[...] + sh_ref[...])
            zrow = jnp.zeros((1, Win, Cin), jnp.float32)
            xa = jnp.concatenate([zrow, xa, zrow], axis=0)     # (Hin+2, Win, Cin)
            zcol = jnp.zeros((Hin + 2, 1, Cin), jnp.float32)
            xa = jnp.concatenate([zcol, xa, zcol], axis=1)     # (Hin+2, Win+2, Cin)

            def read_row(h):
                return xa[h]
        else:
            def read_row(h):
                return x_ref[0, h].astype(jnp.float32)

        bias = b_ref[...] if has_bias else None                # hoisted (1, Cout)
        s_acc = jnp.zeros((1, Cout), jnp.float32) if stats else None
        q_acc = jnp.zeros((1, Cout), jnp.float32) if stats else None

        # Row-blocked, tap-fused conv.  nblk / R are small at these shapes, so the
        # loops are statically unrolled (gives the LLO scheduler full visibility).
        # TODO(synk): switch to pl.loop + pl.ds row blocks for very large images.
        for blk in range(nblk):
            oh0 = blk * R
            rows_src = {h: read_row(h) for h in range(oh0, oh0 + R + nth - 1)}
            rows = []
            for r in range(R):
                taps = []
                for th in range(nth):
                    xrow = rows_src[oh0 + r + th]              # (Ws, Cs) f32
                    for tw in range(ntw):
                        taps.append(xrow[tw:tw + Wo, :])
                rows.append(jnp.concatenate(taps, axis=-1))    # (Wo, T*Cs)
            slab = rows[0] if R == 1 else jnp.concatenate(rows, axis=0)   # (R*Wo, K)
            acc = jnp.dot(slab.astype(MXU_DTYPE), w_ref[...],
                          preferred_element_type=jnp.float32)  # (R*Wo, Cout) f32
            if has_bias:
                acc = acc + bias
            if act == "lrelu":
                acc = _lrelu(acc)
            elif act == "sigmoid":
                acc = jax.nn.sigmoid(acc)
            if stats:
                s_acc = s_acc + jnp.sum(acc, axis=0, keepdims=True)
                q_acc = q_acc + jnp.sum(acc * acc, axis=0, keepdims=True)
            outc = acc.astype(y_ref.dtype)
            for r in range(R):
                y_ref[0, oh0 + r] = outc[r * Wo:(r + 1) * Wo, :]

        if stats:
            sum_ref[0] = s_acc
            sq_ref[0] = q_acc

    return kernel


# ------------------------------ layer wrapper ------------------------------

def _conv_layer(x, w, b, *, stride, prologue, act, stats, out_dtype):
    """One discriminator conv layer.

    x        : (N, H, W, Cin) raw activation (pre-BN if `prologue` is not None).
    w        : (Cout, Cin, 4, 4) PyTorch Conv2d weight layout.
    b        : (Cout,) conv bias or None.
    prologue : None or (scale, shift), each (Cin,) f32 -- the previous layer's
               BatchNorm affine (+ LeakyReLU) applied to the *input*.
    act      : epilogue activation: 'lrelu' | 'sigmoid' | 'none'.
    stats    : also emit per-image sum / sum-of-squares of the raw conv output.
    """
    N, H, W, Cin = x.shape
    Cout = w.shape[0]
    has_bias = b is not None

    if stride == 2:
        assert H % 2 == 0 and W % 2 == 0, "stride-2 layer needs even spatial dims"
        # Single XLA prep pass (fused elementwise + copy over x):
        # (optional BN affine + LeakyReLU) -> zero-pad -> space-to-depth, bf16 out.
        if prologue is not None:
            sc, sh = prologue
            xs = _lrelu(x.astype(jnp.float32) * sc + sh).astype(ACT_DTYPE)
        else:
            xs = x.astype(ACT_DTYPE)
        xp = jnp.pad(xs, ((0, 0), (1, 1), (1, 1), (0, 0)))
        Hp, Wp = H + 2, W + 2
        Hs, Ws = Hp // 2, Wp // 2
        xin = (xp.reshape(N, Hs, 2, Ws, 2, Cin)
                 .transpose(0, 1, 3, 2, 4, 5)
                 .reshape(N, Hs, Ws, 4 * Cin))
        wk = (w.transpose(2, 3, 1, 0)                 # (kh, kw, Cin, Cout)
               .reshape(2, 2, 2, 2, Cin, Cout)        # (th, dh, tw, dw, Cin, Cout)
               .transpose(0, 2, 1, 3, 4, 5)           # (th, tw, dh, dw, Cin, Cout)
               .reshape(16 * Cin, Cout))
        Ho, Wo = H // 2, W // 2
        nth = ntw = 2
        pad_in_kernel = False
        k_prologue = False
        x_block = (1, Hs, Ws, 4 * Cin)
    else:
        # stride 1: BN prologue and zero-padding are fused into the kernel itself.
        xin = x.astype(ACT_DTYPE)
        wk = w.transpose(2, 3, 1, 0).reshape(16 * Cin, Cout)
        Ho, Wo = H - 1, W - 1
        nth = ntw = 4
        pad_in_kernel = True
        k_prologue = prologue is not None
        x_block = (1, H, W, Cin)

    wk = wk.astype(MXU_DTYPE)
    K = 16 * Cin

    # Row-block size: smallest divisor of Ho giving M = R*Wo >= 128 (else full image).
    R = Ho
    for d in range(1, Ho + 1):
        if Ho % d == 0 and d * Wo >= 128:
            R = d
            break
    nblk = Ho // R

    kernel = _make_conv_kernel(Wo=Wo, Cout=Cout, nth=nth, ntw=ntw, R=R, nblk=nblk,
                               pad_input=pad_in_kernel, prologue=k_prologue,
                               has_bias=has_bias, act=act, stats=stats)

    in_specs = [pl.BlockSpec(x_block, lambda n: (n, 0, 0, 0)),
                pl.BlockSpec((K, Cout), lambda n: (0, 0))]
    operands = [xin, wk]
    if k_prologue:
        sc, sh = prologue
        in_specs += [pl.BlockSpec((1, Cin), lambda n: (0, 0)),
                     pl.BlockSpec((1, Cin), lambda n: (0, 0))]
        operands += [sc.reshape(1, Cin).astype(jnp.float32),
                     sh.reshape(1, Cin).astype(jnp.float32)]
    if has_bias:
        in_specs.append(pl.BlockSpec((1, Cout), lambda n: (0, 0)))
        operands.append(b.reshape(1, Cout).astype(jnp.float32))

    out_shapes = [jax.ShapeDtypeStruct((N, Ho, Wo, Cout), out_dtype)]
    out_specs = [pl.BlockSpec((1, Ho, Wo, Cout), lambda n: (n, 0, 0, 0))]
    if stats:
        out_shapes += [jax.ShapeDtypeStruct((N, 1, Cout), jnp.float32)] * 2
        out_specs += [pl.BlockSpec((1, 1, Cout), lambda n: (n, 0, 0))] * 2

    return pl.pallas_call(
        kernel,
        out_shape=tuple(out_shapes) if stats else out_shapes[0],
        grid_spec=pltpu.PrefetchScalarGridSpec(
            num_scalar_prefetch=0, grid=(N,),
            in_specs=in_specs,
            out_specs=tuple(out_specs) if stats else out_specs[0]),
        compiler_params=pltpu.CompilerParams(
            dimension_semantics=("parallel",),
            vmem_limit_bytes=32 * 1024 * 1024),
    )(*operands)


def _bn_affine(gamma, beta, ssum, ssq, count):
    """Training-mode BatchNorm batch stats -> (scale, shift) for the consumer prologue."""
    mean = jnp.sum(ssum, axis=(0, 1)) / count
    var = jnp.sum(ssq, axis=(0, 1)) / count - mean * mean      # biased var (PyTorch BN)
    var = jnp.maximum(var, 0.0)
    inv_std = lax.rsqrt(var + _BN_EPS)
    scale = gamma.astype(jnp.float32) * inv_std
    shift = beta.astype(jnp.float32) - mean * scale
    return scale, shift


# --------------------------- full module forward ---------------------------

def nlayer_discriminator_forward(x_nchw, params, *, n_layers=3, use_sigmoid=False):
    """Forward of NLayerDiscriminator (norm_layer=BatchNorm2d -> use_bias=False)."""
    x = jnp.transpose(x_nchw, (0, 2, 3, 1)).astype(jnp.float32)   # NCHW -> NHWC once
    layers = params["layers"]

    # layer 0: Conv(s=2, bias) + LeakyReLU (epilogue)
    L = layers[0]
    y = _conv_layer(x, L["w"], L["b"], stride=2, prologue=None,
                    act="lrelu", stats=False, out_dtype=ACT_DTYPE)

    pro = None  # previous layer's BN affine, applied as the next conv's prologue
    for n in range(1, n_layers + 1):
        L = layers[n]
        stride = 2 if n < n_layers else 1
        y, ssum, ssq = _conv_layer(y, L["w"], None, stride=stride, prologue=pro,
                                   act="none", stats=True, out_dtype=ACT_DTYPE)
        Nb, Ho, Wo, _ = y.shape
        pro = _bn_affine(L["gamma"], L["beta"], ssum, ssq, float(Nb * Ho * Wo))

    # final Conv(s=1, bias) -> 1 channel; previous BN+LeakyReLU fused as its prologue
    L = layers[n_layers + 1]
    out = _conv_layer(y, L["w"], L["b"], stride=1, prologue=pro,
                      act=("sigmoid" if use_sigmoid else "none"),
                      stats=False, out_dtype=jnp.float32)
    return jnp.transpose(out, (0, 3, 1, 2))                       # NHWC -> NCHW (tiny)


def init_params(key, input_nc, ndf, n_layers):
    """Deterministic parameters mirroring the PyTorch layer stack."""
    def conv_init(k, cin, cout):
        bound = 1.0 / (cin * 16) ** 0.5
        kw_, kb_ = jax.random.split(k)
        w = jax.random.uniform(kw_, (cout, cin, 4, 4), jnp.float32, -bound, bound)
        b = jax.random.uniform(kb_, (cout,), jnp.float32, -bound, bound)
        return w, b

    keys = jax.random.split(key, n_layers + 2)
    layers = []
    w, b = conv_init(keys[0], input_nc, ndf)
    layers.append({"w": w, "b": b})                                   # conv + lrelu
    nf = 1
    for n in range(1, n_layers):
        nf_prev, nf = nf, min(2 ** n, 8)
        w, _ = conv_init(keys[n], ndf * nf_prev, ndf * nf)
        layers.append({"w": w,
                       "gamma": jnp.ones((ndf * nf,), jnp.float32),
                       "beta": jnp.zeros((ndf * nf,), jnp.float32)})  # conv + BN + lrelu
    nf_prev, nf = nf, min(2 ** n_layers, 8)
    w, _ = conv_init(keys[n_layers], ndf * nf_prev, ndf * nf)
    layers.append({"w": w,
                   "gamma": jnp.ones((ndf * nf,), jnp.float32),
                   "beta": jnp.zeros((ndf * nf,), jnp.float32)})      # s1 conv + BN + lrelu
    w, b = conv_init(keys[n_layers + 1], ndf * nf, 1)
    layers.append({"w": w, "b": b})                                   # final 1-ch conv
    return {"layers": layers}


if __name__ == "__main__":
    # NLayerDiscriminator(input_nc=3, ndf=8, n_layers=3, norm_layer=BatchNorm2d)
    INPUT_NC, NDF, N_LAYERS = 3, 8, 3
    N, H, W = 2, 32, 32

    key = jax.random.PRNGKey(0)
    kx, kp = jax.random.split(key)
    x = jax.random.normal(kx, (N, INPUT_NC, H, W), dtype=jnp.float32)
    params = init_params(kp, INPUT_NC, NDF, N_LAYERS)

    fwd = jax.jit(functools.partial(nlayer_discriminator_forward,
                                    n_layers=N_LAYERS, use_sigmoid=False))
    out = jax.block_until_ready(fwd(x, params))
    # 32 -> 16 -> 8 -> 4 -> 3 -> 2 spatial, 1 output channel
    assert out.shape == (N, 1, 2, 2), out.shape
    assert bool(jnp.all(jnp.isfinite(out)))
    print("KERNEL_OK")
</pallas_src>

<mosaic_0001>
module attributes {stable_mosaic.version = 11 : i64} {
  func.func @kernel(%arg0: i32, %arg1: memref<1x17x17x12xbf16, #tpu.memory_space<vmem>>, %arg2: memref<48x8xbf16, #tpu.memory_space<vmem>>, %arg3: memref<1x8xf32, #tpu.memory_space<vmem>>, %arg4: memref<1x16x16x8xbf16, #tpu.memory_space<vmem>>) attributes {dimension_semantics = [#tpu.dimension_semantics<parallel>], iteration_bounds = array<i64: 2>, scalar_prefetch = 0 : i64, scratch_operands = 0 : i64, tpu.core_type = #tpu.core_type<tc>, window_params = [{transform_indices = @transform_0, window_bounds = array<i64: 1, 17, 17, 12>}, {pipeline_mode = #tpu.pipeline_mode<synchronous>, transform_indices = @transform_1, window_bounds = array<i64: 48, 8>}, {pipeline_mode = #tpu.pipeline_mode<synchronous>, transform_indices = @transform_2, window_bounds = array<i64: 1, 8>}, {transform_indices = @transform_3, window_bounds = array<i64: 1, 16, 16, 8>}]} {
    %c0 = arith.constant 0 : index
    %c0_0 = arith.constant 0 : index
    %0 = vector.load %arg3[%c0, %c0_0] : memref<1x8xf32, #tpu.memory_space<vmem>>, vector<1x8xf32>
    %c0_1 = arith.constant 0 : index
    %c0_2 = arith.constant 0 : index
    %c0_3 = arith.constant 0 : index
    %c0_4 = arith.constant 0 : index
    %1 = vector.load %arg1[%c0_1, %c0_2, %c0_3, %c0_4] : memref<1x17x17x12xbf16, #tpu.memory_space<vmem>>, vector<1x1x17x12xbf16>
    %2 = vector.shape_cast %1 : vector<1x1x17x12xbf16> to vector<17x12xbf16>
    %3 = arith.extf %2 : vector<17x12xbf16> to vector<17x12xf32>
    %c0_5 = arith.constant 0 : index
    %c1 = arith.constant 1 : index
    %c0_6 = arith.constant 0 : index
    %c0_7 = arith.constant 0 : index
    %4 = vector.load %arg1[%c0_5, %c1, %c0_6, %c0_7] : memref<1x17x17x12xbf16, #tpu.memory_space<vmem>>, vector<1x1x17x12xbf16>
    %5 = vector.shape_cast %4 : vector<1x1x17x12xbf16> to vector<17x12xbf16>
    %6 = arith.extf %5 : vector<17x12xbf16> to vector<17x12xf32>
    %c0_8 = arith.constant 0 : index
    %c2 = arith.constant 2 : index
    %c0_9 = arith.constant 0 : index
    %c0_10 = arith.constant 0 : index
    %7 = vector.load %arg1[%c0_8, %c2, %c0_9, %c0_10] : memref<1x17x17x12xbf16, #tpu.memory_space<vmem>>, vector<1x1x17x12xbf16>
    %8 = vector.shape_cast %7 : vector<1x1x17x12xbf16> to vector<17x12xbf16>
    %9 = arith.extf %8 : vector<17x12xbf16> to vector<17x12xf32>
    %c0_11 = arith.constant 0 : index
    %c3 = arith.constant 3 : index
    %c0_12 = arith.constant 0 : index
    %c0_13 = arith.constant 0 : index
    %10 = vector.load %arg1[%c0_11, %c3, %c0_12, %c0_13] : memref<1x17x17x12xbf16, #tpu.memory_space<vmem>>, vector<1x1x17x12xbf16>
    %11 = vector.shape_cast %10 : vector<1x1x17x12xbf16> to vector<17x12xbf16>
    %12 = arith.extf %11 : vector<17x12xbf16> to vector<17x12xf32>
    %c0_14 = arith.constant 0 : index
    %c4 = arith.constant 4 : index
    %c0_15 = arith.constant 0 : index
    %c0_16 = arith.constant 0 : index
    %13 = vector.load %arg1[%c0_14, %c4, %c0_15, %c0_16] : memref<1x17x17x12xbf16, #tpu.memory_space<vmem>>, vector<1x1x17x12xbf16>
    %14 = vector.shape_cast %13 : vector<1x1x17x12xbf16> to vector<17x12xbf16>
    %15 = arith.extf %14 : vector<17x12xbf16> to vector<17x12xf32>
    %c0_17 = arith.constant 0 : index
    %c5 = arith.constant 5 : index
    %c0_18 = arith.constant 0 : index
    %c0_19 = arith.constant 0 : index
    %16 = vector.load %arg1[%c0_17, %c5, %c0_18, %c0_19] : memref<1x17x17x12xbf16, #tpu.memory_space<vmem>>, vector<1x1x17x12xbf16>
    %17 = vector.shape_cast %16 : vector<1x1x17x12xbf16> to vector<17x12xbf16>
    %18 = arith.extf %17 : vector<17x12xbf16> to vector<17x12xf32>
    %c0_20 = arith.constant 0 : index
    %c6 = arith.constant 6 : index
    %c0_21 = arith.constant 0 : index
    %c0_22 = arith.constant 0 : index
    %19 = vector.load %arg1[%c0_20, %c6, %c0_21, %c0_22] : memref<1x17x17x12xbf16, #tpu.memory_space<vmem>>, vector<1x1x17x12xbf16>
    %20 = vector.shape_cast %19 : vector<1x1x17x12xbf16> to vector<17x12xbf16>
    %21 = arith.extf %20 : vector<17x12xbf16> to vector<17x12xf32>
    %c0_23 = arith.constant 0 : index
    %c7 = arith.constant 7 : index
    %c0_24 = arith.constant 0 : index
    %c0_25 = arith.constant 0 : index
    %22 = vector.load %arg1[%c0_23, %c7, %c0_24, %c0_25] : memref<1x17x17x12xbf16, #tpu.memory_space<vmem>>, vector<1x1x17x12xbf16>
    %23 = vector.shape_cast %22 : vector<1x1x17x12xbf16> to vector<17x12xbf16>
    %24 = arith.extf %23 : vector<17x12xbf16> to vector<17x12xf32>
    %c0_26 = arith.constant 0 : index
    %c8 = arith.constant 8 : index
    %c0_27 = arith.constant 0 : index
    %c0_28 = arith.constant 0 : index
    %25 = vector.load %arg1[%c0_26, %c8, %c0_27, %c0_28] : memref<1x17x17x12xbf16, #tpu.memory_space<vmem>>, vector<1x1x17x12xbf16>
    %26 = vector.shape_cast %25 : vector<1x1x17x12xbf16> to vector<17x12xbf16>
    %27 = arith.extf %26 : vector<17x12xbf16> to vector<17x12xf32>
    %28 = vector.extract_strided_slice %3 {offsets = [0, 0], sizes = [16, 12], strides = [1, 1]} : vector<17x12xf32> to vector<16x12xf32>
    %29 = vector.extract_strided_slice %3 {offsets = [1, 0], sizes = [16, 12], strides = [1, 1]} : vector<17x12xf32> to vector<16x12xf32>
    %30 = vector.extract_strided_slice %6 {offsets = [0, 0], sizes = [16, 12], strides = [1, 1]} : vector<17x12xf32> to vector<16x12xf32>
    %31 = vector.extract_strided_slice %6 {offsets = [1, 0], sizes = [16, 12], strides = [1, 1]} : vector<17x12xf32> to vector<16x12xf32>
    %32 = tpu.concatenate %28, %29, %30, %31 in 1 : vector<16x12xf32>, vector<16x12xf32>, vector<16x12xf32>, vector<16x12xf32> -> vector<16x48xf32>
    %33 = vector.extract_strided_slice %6 {offsets = [0, 0], sizes = [16, 12], strides = [1, 1]} : vector<17x12xf32> to vector<16x12xf32>
    %34 = vector.extract_strided_slice %6 {offsets = [1, 0], sizes = [16, 12], strides = [1, 1]} : vector<17x12xf32> to vector<16x12xf32>
    %35 = vector.extract_strided_slice %9 {offsets = [0, 0], sizes = [16, 12], strides = [1, 1]} : vector<17x12xf32> to vector<16x12xf32>
    %36 = vector.extract_strided_slice %9 {offsets = [1, 0], sizes = [16, 12], strides = [1, 1]} : vector<17x12xf32> to vector<16x12xf32>
    %37 = tpu.concatenate %33, %34, %35, %36 in 1 : vector<16x12xf32>, vector<16x12xf32>, vector<16x12xf32>, vector<16x12xf32> -> vector<16x48xf32>
    %38 = vector.extract_strided_slice %9 {offsets = [0, 0], sizes = [16, 12], strides = [1, 1]} : vector<17x12xf32> to vector<16x12xf32>
    %39 = vector.extract_strided_slice %9 {offsets = [1, 0], sizes = [16, 12], strides = [1, 1]} : vector<17x12xf32> to vector<16x12xf32>
    %40 = vector.extract_strided_slice %12 {offsets = [0, 0], sizes = [16, 12], strides = [1, 1]} : vector<17x12xf32> to vector<16x12xf32>
    %41 = vector.extract_strided_slice %12 {offsets = [1, 0], sizes = [16, 12], strides = [1, 1]} : vector<17x12xf32> to vector<16x12xf32>
    %42 = tpu.concatenate %38, %39, %40, %41 in 1 : vector<16x12xf32>, vector<16x12xf32>, vector<16x12xf32>, vector<16x12xf32> -> vector<16x48xf32>
    %43 = vector.extract_strided_slice %12 {offsets = [0, 0], sizes = [16, 12], strides = [1, 1]} : vector<17x12xf32> to vector<16x12xf32>
    %44 = vector.extract_strided_slice %12 {offsets = [1, 0], sizes = [16, 12], strides = [1, 1]} : vector<17x12xf32> to vector<16x12xf32>
    %45 = vector.extract_strided_slice %15 {offsets = [0, 0], sizes = [16, 12], strides = [1, 1]} : vector<17x12xf32> to vector<16x12xf32>
    %46 = vector.extract_strided_slice %15 {offsets = [1, 0], sizes = [16, 12], strides = [1, 1]} : vector<17x12xf32> to vector<16x12xf32>
    %47 = tpu.concatenate %43, %44, %45, %46 in 1 : vector<16x12xf32>, vector<16x12xf32>, vector<16x12xf32>, vector<16x12xf32> -> vector<16x48xf32>
    %48 = vector.extract_strided_slice %15 {offsets = [0, 0], sizes = [16, 12], strides = [1, 1]} : vector<17x12xf32> to vector<16x12xf32>
    %49 = vector.extract_strided_slice %15 {offsets = [1, 0], sizes = [16, 12], strides = [1, 1]} : vector<17x12xf32> to vector<16x12xf32>
    %50 = vector.extract_strided_slice %18 {offsets = [0, 0], sizes = [16, 12], strides = [1, 1]} : vector<17x12xf32> to vector<16x12xf32>
    %51 = vector.extract_strided_slice %18 {offsets = [1, 0], sizes = [16, 12], strides = [1, 1]} : vector<17x12xf32> to vector<16x12xf32>
    %52 = tpu.concatenate %48, %49, %50, %51 in 1 : vector<16x12xf32>, vector<16x12xf32>, vector<16x12xf32>, vector<16x12xf32> -> vector<16x48xf32>
    %53 = vector.extract_strided_slice %18 {offsets = [0, 0], sizes = [16, 12], strides = [1, 1]} : vector<17x12xf32> to vector<16x12xf32>
    %54 = vector.extract_strided_slice %18 {offsets = [1, 0], sizes = [16, 12], strides = [1, 1]} : vector<17x12xf32> to vector<16x12xf32>
    %55 = vector.extract_strided_slice %21 {offsets = [0, 0], sizes = [16, 12], strides = [1, 1]} : vector<17x12xf32> to vector<16x12xf32>
    %56 = vector.extract_strided_slice %21 {offsets = [1, 0], sizes = [16, 12], strides = [1, 1]} : vector<17x12xf32> to vector<16x12xf32>
    %57 = tpu.concatenate %53, %54, %55, %56 in 1 : vector<16x12xf32>, vector<16x12xf32>, vector<16x12xf32>, vector<16x12xf32> -> vector<16x48xf32>
    %58 = vector.extract_strided_slice %21 {offsets = [0, 0], sizes = [16, 12], strides = [1, 1]} : vector<17x12xf32> to vector<16x12xf32>
    %59 = vector.extract_strided_slice %21 {offsets = [1, 0], sizes = [16, 12], strides = [1, 1]} : vector<17x12xf32> to vector<16x12xf32>
    %60 = vector.extract_strided_slice %24 {offsets = [0, 0], sizes = [16, 12], strides = [1, 1]} : vector<17x12xf32> to vector<16x12xf32>
    %61 = vector.extract_strided_slice %24 {offsets = [1, 0], sizes = [16, 12], strides = [1, 1]} : vector<17x12xf32> to vector<16x12xf32>
    %62 = tpu.concatenate %58, %59, %60, %61 in 1 : vector<16x12xf32>, vector<16x12xf32>, vector<16x12xf32>, vector<16x12xf32> -> vector<16x48xf32>
    %63 = vector.extract_strided_slice %24 {offsets = [0, 0], sizes = [16, 12], strides = [1, 1]} : vector<17x12xf32> to vector<16x12xf32>
    %64 = vector.extract_strided_slice %24 {offsets = [1, 0], sizes = [16, 12], strides = [1, 1]} : vector<17x12xf32> to vector<16x12xf32>
    %65 = vector.extract_strided_slice %27 {offsets = [0, 0], sizes = [16, 12], strides = [1, 1]} : vector<17x12xf32> to vector<16x12xf32>
    %66 = vector.extract_strided_slice %27 {offsets = [1, 0], sizes = [16, 12], strides = [1, 1]} : vector<17x12xf32> to vector<16x12xf32>
    %67 = tpu.concatenate %63, %64, %65, %66 in 1 : vector<16x12xf32>, vector<16x12xf32>, vector<16x12xf32>, vector<16x12xf32> -> vector<16x48xf32>
    %68 = tpu.concatenate %32, %37, %42, %47, %52, %57, %62, %67 in 0 : vector<16x48xf32>, vector<16x48xf32>, vector<16x48xf32>, vector<16x48xf32>, vector<16x48xf32>, vector<16x48xf32>, vector<16x48xf32>, vector<16x48xf32> -> vector<128x48xf32>
    %69 = arith.truncf %68 : vector<128x48xf32> to vector<128x48xbf16>
    %c0_29 = arith.constant 0 : index
    %c0_30 = arith.constant 0 : index
    %70 = vector.load %arg2[%c0_29, %c0_30] : memref<48x8xbf16, #tpu.memory_space<vmem>>, vector<48x8xbf16>
    %cst = arith.constant dense<0.000000e+00> : vector<128x8xf32>
    %71 = tpu.matmul %69, %70, %cst {dimension_numbers = #tpu.dot_dimension_numbers<[1], [0], [0], [1], [0, 0, 1, 1], [], []>} : vector<128x48xbf16>, vector<48x8xbf16>, vector<128x8xf32> -> vector<128x8xf32>
    %72 = vector.broadcast %0 : vector<1x8xf32> to vector<128x8xf32>
    %73 = arith.addf %71, %72 : vector<128x8xf32>
    %cst_31 = arith.constant 2.000000e-01 : f32
    %74 = vector.broadcast %cst_31 : f32 to vector<128x8xf32>
    %75 = arith.mulf %74, %73 : vector<128x8xf32>
    %76 = arith.maximumf %73, %75 : vector<128x8xf32>
    %77 = arith.truncf %76 : vector<128x8xf32> to vector<128x8xbf16>
    %78 = vector.extract_strided_slice %77 {offsets = [0, 0], sizes = [16, 8], strides = [1, 1]} : vector<128x8xbf16> to vector<16x8xbf16>
    %c0_32 = arith.constant 0 : index
    %c0_33 = arith.constant 0 : index
    %c0_34 = arith.constant 0 : index
    %c0_35 = arith.constant 0 : index
    %79 = vector.load %arg4[%c0_32, %c0_33, %c0_34, %c0_35] : memref<1x16x16x8xbf16, #tpu.memory_space<vmem>>, vector<1x1x16x8xbf16>
    %80 = vector.shape_cast %79 : vector<1x1x16x8xbf16> to vector<16x8xbf16>
    %81 = vector.shape_cast %78 : vector<16x8xbf16> to vector<1x1x16x8xbf16>
    tpu.vector_store %arg4[%c0_32, %c0_33, %c0_34, %c0_35], %81 {strides = array<i32>} : memref<1x16x16x8xbf16, #tpu.memory_space<vmem>>, vector<1x1x16x8xbf16>,
    %82 = vector.extract_strided_slice %77 {offsets = [16, 0], sizes = [16, 8], strides = [1, 1]} : vector<128x8xbf16> to vector<16x8xbf16>
    %c0_36 = arith.constant 0 : index
    %c1_37 = arith.constant 1 : index
    %c0_38 = arith.constant 0 : index
    %c0_39 = arith.constant 0 : index
    %83 = vector.load %arg4[%c0_36, %c1_37, %c0_38, %c0_39] : memref<1x16x16x8xbf16, #tpu.memory_space<vmem>>, vector<1x1x16x8xbf16>
    %84 = vector.shape_cast %83 : vector<1x1x16x8xbf16> to vector<16x8xbf16>
    %85 = vector.shape_cast %82 : vector<16x8xbf16> to vector<1x1x16x8xbf16>
    tpu.vector_store %arg4[%c0_36, %c1_37, %c0_38, %c0_39], %85 {strides = array<i32>} : memref<1x16x16x8xbf16, #tpu.memory_space<vmem>>, vector<1x1x16x8xbf16>,
    %86 = vector.extract_strided_slice %77 {offsets = [32, 0], sizes = [16, 8], strides = [1, 1]} : vector<128x8xbf16> to vector<16x8xbf16>
    %c0_40 = arith.constant 0 : index
    %c2_41 = arith.constant 2 : index
    %c0_42 = arith.constant 0 : index
    %c0_43 = arith.constant 0 : index
    %87 = vector.load %arg4[%c0_40, %c2_41, %c0_42, %c0_43] : memref<1x16x16x8xbf16, #tpu.memory_space<vmem>>, vector<1x1x16x8xbf16>
    %88 = vector.shape_cast %87 : vector<1x1x16x8xbf16> to vector<16x8xbf16>
    %89 = vector.shape_cast %86 : vector<16x8xbf16> to vector<1x1x16x8xbf16>
    tpu.vector_store %arg4[%c0_40, %c2_41, %c0_42, %c0_43], %89 {strides = array<i32>} : memref<1x16x16x8xbf16, #tpu.memory_space<vmem>>, vector<1x1x16x8xbf16>,
    %90 = vector.extract_strided_slice %77 {offsets = [48, 0], sizes = [16, 8], strides = [1, 1]} : vector<128x8xbf16> to vector<16x8xbf16>
    %c0_44 = arith.constant 0 : index
    %c3_45 = arith.constant 3 : index
    %c0_46 = arith.constant 0 : index
    %c0_47 = arith.constant 0 : index
    %91 = vector.load %arg4[%c0_44, %c3_45, %c0_46, %c0_47] : memref<1x16x16x8xbf16, #tpu.memory_space<vmem>>, vector<1x1x16x8xbf16>
    %92 = vector.shape_cast %91 : vector<1x1x16x8xbf16> to vector<16x8xbf16>
    %93 = vector.shape_cast %90 : vector<16x8xbf16> to vector<1x1x16x8xbf16>
    tpu.vector_store %arg4[%c0_44, %c3_45, %c0_46, %c0_47], %93 {strides = array<i32>} : memref<1x16x16x8xbf16, #tpu.memory_space<vmem>>, vector<1x1x16x8xbf16>,
    %94 = vector.extract_strided_slice %77 {offsets = [64, 0], sizes = [16, 8], strides = [1, 1]} : vector<128x8xbf16> to vector<16x8xbf16>
    %c0_48 = arith.constant 0 : index
    %c4_49 = arith.constant 4 : index
    %c0_50 = arith.constant 0 : index
    %c0_51 = arith.constant 0 : index
    %95 = vector.load %arg4[%c0_48, %c4_49, %c0_50, %c0_51] : memref<1x16x16x8xbf16, #tpu.memory_space<vmem>>, vector<1x1x16x8xbf16>
    %96 = vector.shape_cast %95 : vector<1x1x16x8xbf16> to vector<16x8xbf16>
    %97 = vector.shape_cast %94 : vector<16x8xbf16> to vector<1x1x16x8xbf16>
    tpu.vector_store %arg4[%c0_48, %c4_49, %c0_50, %c0_51], %97 {strides = array<i32>} : memref<1x16x16x8xbf16, #tpu.memory_space<vmem>>, vector<1x1x16x8xbf16>,
    %98 = vector.extract_strided_slice %77 {offsets = [80, 0], sizes = [16, 8], strides = [1, 1]} : vector<128x8xbf16> to vector<16x8xbf16>
    %c0_52 = arith.constant 0 : index
    %c5_53 = arith.constant 5 : index
    %c0_54 = arith.constant 0 : index
    %c0_55 = arith.constant 0 : index
    %99 = vector.load %arg4[%c0_52, %c5_53, %c0_54, %c0_55] : memref<1x16x16x8xbf16, #tpu.memory_space<vmem>>, vector<1x1x16x8xbf16>
    %100 = vector.shape_cast %99 : vector<1x1x16x8xbf16> to vector<16x8xbf16>
    %101 = vector.shape_cast %98 : vector<16x8xbf16> to vector<1x1x16x8xbf16>
    tpu.vector_store %arg4[%c0_52, %c5_53, %c0_54, %c0_55], %101 {strides = array<i32>} : memref<1x16x16x8xbf16, #tpu.memory_space<vmem>>, vector<1x1x16x8xbf16>,
    %102 = vector.extract_strided_slice %77 {offsets = [96, 0], sizes = [16, 8], strides = [1, 1]} : vector<128x8xbf16> to vector<16x8xbf16>
    %c0_56 = arith.constant 0 : index
    %c6_57 = arith.constant 6 : index
    %c0_58 = arith.constant 0 : index
    %c0_59 = arith.constant 0 : index
    %103 = vector.load %arg4[%c0_56, %c6_57, %c0_58, %c0_59] : memref<1x16x16x8xbf16, #tpu.memory_space<vmem>>, vector<1x1x16x8xbf16>
    %104 = vector.shape_cast %103 : vector<1x1x16x8xbf16> to vector<16x8xbf16>
    %105 = vector.shape_cast %102 : vector<16x8xbf16> to vector<1x1x16x8xbf16>
    tpu.vector_store %arg4[%c0_56, %c6_57, %c0_58, %c0_59], %105 {strides = array<i32>} : memref<1x16x16x8xbf16, #tpu.memory_space<vmem>>, vector<1x1x16x8xbf16>,
    %106 = vector.extract_strided_slice %77 {offsets = [112, 0], sizes = [16, 8], strides = [1, 1]} : vector<128x8xbf16> to vector<16x8xbf16>
    %c0_60 = arith.constant 0 : index
    %c7_61 = arith.constant 7 : index
    %c0_62 = arith.constant 0 : index
    %c0_63 = arith.constant 0 : index
    %107 = vector.load %arg4[%c0_60, %c7_61, %c0_62, %c0_63] : memref<1x16x16x8xbf16, #tpu.memory_space<vmem>>, vector<1x1x16x8xbf16>
    %108 = vector.shape_cast %107 : vector<1x1x16x8xbf16> to vector<16x8xbf16>
    %109 = vector.shape_cast %106 : vector<16x8xbf16> to vector<1x1x16x8xbf16>
    tpu.vector_store %arg4[%c0_60, %c7_61, %c0_62, %c0_63], %109 {strides = array<i32>} : memref<1x16x16x8xbf16, #tpu.memory_space<vmem>>, vector<1x1x16x8xbf16>,
    %c0_64 = arith.constant 0 : index
    %c8_65 = arith.constant 8 : index
    %c0_66 = arith.constant 0 : index
    %c0_67 = arith.constant 0 : index
    %110 = vector.load %arg1[%c0_64, %c8_65, %c0_66, %c0_67] : memref<1x17x17x12xbf16, #tpu.memory_space<vmem>>, vector<1x1x17x12xbf16>
    %111 = vector.shape_cast %110 : vector<1x1x17x12xbf16> to vector<17x12xbf16>
    %112 = arith.extf %111 : vector<17x12xbf16> to vector<17x12xf32>
    %c0_68 = arith.constant 0 : index
    %c9 = arith.constant 9 : index
    %c0_69 = arith.constant 0 : index
    %c0_70 = arith.constant 0 : index
    %113 = vector.load %arg1[%c0_68, %c9, %c0_69, %c0_70] : memref<1x17x17x12xbf16, #tpu.memory_space<vmem>>, vector<1x1x17x12xbf16>
    %114 = vector.shape_cast %113 : vector<1x1x17x12xbf16> to vector<17x12xbf16>
    %115 = arith.extf %114 : vector<17x12xbf16> to vector<17x12xf32>
    %c0_71 = arith.constant 0 : index
    %c10 = arith.constant 10 : index
    %c0_72 = arith.constant 0 : index
    %c0_73 = arith.constant 0 : index
    %116 = vector.load %arg1[%c0_71, %c10, %c0_72, %c0_73] : memref<1x17x17x12xbf16, #tpu.memory_space<vmem>>, vector<1x1x17x12xbf16>
    %117 = vector.shape_cast %116 : vector<1x1x17x12xbf16> to vector<17x12xbf16>
    %118 = arith.extf %117 : vector<17x12xbf16> to vector<17x12xf32>
    %c0_74 = arith.constant 0 : index
    %c11 = arith.constant 11 : index
    %c0_75 = arith.constant 0 : index
    %c0_76 = arith.constant 0 : index
    %119 = vector.load %arg1[%c0_74, %c11, %c0_75, %c0_76] : memref<1x17x17x12xbf16, #tpu.memory_space<vmem>>, vector<1x1x17x12xbf16>
    %120 = vector.shape_cast %119 : vector<1x1x17x12xbf16> to vector<17x12xbf16>
    %121 = arith.extf %120 : vector<17x12xbf16> to vector<17x12xf32>
    %c0_77 = arith.constant 0 : index
    %c12 = arith.constant 12 : index
    %c0_78 = arith.constant 0 : index
    %c0_79 = arith.constant 0 : index
    %122 = vector.load %arg1[%c0_77, %c12, %c0_78, %c0_79] : memref<1x17x17x12xbf16, #tpu.memory_space<vmem>>, vector<1x1x17x12xbf16>
    %123 = vector.shape_cast %122 : vector<1x1x17x12xbf16> to vector<17x12xbf16>
    %124 = arith.extf %123 : vector<17x12xbf16> to vector<17x12xf32>
    %c0_80 = arith.constant 0 : index
    %c13 = arith.constant 13 : index
    %c0_81 = arith.constant 0 : index
    %c0_82 = arith.constant 0 : index
    %125 = vector.load %arg1[%c0_80, %c13, %c0_81, %c0_82] : memref<1x17x17x12xbf16, #tpu.memory_space<vmem>>, vector<1x1x17x12xbf16>
    %126 = vector.shape_cast %125 : vector<1x1x17x12xbf16> to vector<17x12xbf16>
    %127 = arith.extf %126 : vector<17x12xbf16> to vector<17x12xf32>
    %c0_83 = arith.constant 0 : index
    %c14 = arith.constant 14 : index
    %c0_84 = arith.constant 0 : index
    %c0_85 = arith.constant 0 : index
    %128 = vector.load %arg1[%c0_83, %c14, %c0_84, %c0_85] : memref<1x17x17x12xbf16, #tpu.memory_space<vmem>>, vector<1x1x17x12xbf16>
    %129 = vector.shape_cast %128 : vector<1x1x17x12xbf16> to vector<17x12xbf16>
    %130 = arith.extf %129 : vector<17x12xbf16> to vector<17x12xf32>
    %c0_86 = arith.constant 0 : index
    %c15 = arith.constant 15 : index
    %c0_87 = arith.constant 0 : index
    %c0_88 = arith.constant 0 : index
    %131 = vector.load %arg1[%c0_86, %c15, %c0_87, %c0_88] : memref<1x17x17x12xbf16, #tpu.memory_space<vmem>>, vector<1x1x17x12xbf16>
    %132 = vector.shape_cast %131 : vector<1x1x17x12xbf16> to vector<17x12xbf16>
    %133 = arith.extf %132 : vector<17x12xbf16> to vector<17x12xf32>
    %c0_89 = arith.constant 0 : index
    %c16 = arith.constant 16 : index
    %c0_90 = arith.constant 0 : index
    %c0_91 = arith.constant 0 : index
    %134 = vector.load %arg1[%c0_89, %c16, %c0_90, %c0_91] : memref<1x17x17x12xbf16, #tpu.memory_space<vmem>>, vector<1x1x17x12xbf16>
    %135 = vector.shape_cast %134 : vector<1x1x17x12xbf16> to vector<17x12xbf16>
    %136 = arith.extf %135 : vector<17x12xbf16> to vector<17x12xf32>
    %137 = vector.extract_strided_slice %112 {offsets = [0, 0], sizes = [16, 12], strides = [1, 1]} : vector<17x12xf32> to vector<16x12xf32>
    %138 = vector.extract_strided_slice %112 {offsets = [1, 0], sizes = [16, 12], strides = [1, 1]} : vector<17x12xf32> to vector<16x12xf32>
    %139 = vector.extract_strided_slice %115 {offsets = [0, 0], sizes = [16, 12], strides = [1, 1]} : vector<17x12xf32> to vector<16x12xf32>
    %140 = vector.extract_strided_slice %115 {offsets = [1, 0], sizes = [16, 12], strides = [1, 1]} : vector<17x12xf32> to vector<16x12xf32>
    %141 = tpu.concatenate %137, %138, %139, %140 in 1 : vector<16x12xf32>, vector<16x12xf32>, vector<16x12xf32>, vector<16x12xf32> -> vector<16x48xf32>
    %142 = vector.extract_strided_slice %115 {offsets = [0, 0], sizes = [16, 12], strides = [1, 1]} : vector<17x12xf32> to vector<16x12xf32>
    %143 = vector.extract_strided_slice %115 {offsets = [1, 0], sizes = [16, 12], strides = [1, 1]} : vector<17x12xf32> to vector<16x12xf32>
    %144 = vector.extract_strided_slice %118 {offsets = [0, 0], sizes = [16, 12], strides = [1, 1]} : vector<17x12xf32> to vector<16x12xf32>
    %145 = vector.extract_strided_slice %118 {offsets = [1, 0], sizes = [16, 12], strides = [1, 1]} : vector<17x12xf32> to vector<16x12xf32>
    %146 = tpu.concatenate %142, %143, %144, %145 in 1 : vector<16x12xf32>, vector<16x12xf32>, vector<16x12xf32>, vector<16x12xf32> -> vector<16x48xf32>
    %147 = vector.extract_strided_slice %118 {offsets = [0, 0], sizes = [16, 12], strides = [1, 1]} : vector<17x12xf32> to vector<16x12xf32>
    %148 = vector.extract_strided_slice %118 {offsets = [1, 0], sizes = [16, 12], strides = [1, 1]} : vector<17x12xf32> to vector<16x12xf32>
    %149 = vector.extract_strided_slice %121 {offsets = [0, 0], sizes = [16, 12], strides = [1, 1]} : vector<17x12xf32> to vector<16x12xf32>
    %150 = vector.extract_strided_slice %121 {offsets = [1, 0], sizes = [16, 12], strides = [1, 1]} : vector<17x12xf32> to vector<16x12xf32>
    %151 = tpu.concatenate %147, %148, %149, %150 in 1 : vector<16x12xf32>, vector<16x12xf32>, vector<16x12xf32>, vector<16x12xf32> -> vector<16x48xf32>
    %152 = vector.extract_strided_slice %121 {offsets = [0, 0], sizes = [16, 12], strides = [1, 1]} : vector<17x12xf32> to vector<16x12xf32>
    %153 = vector.extract_strided_slice %121 {offsets = [1, 0], sizes = [16, 12], strides = [1, 1]} : vector<17x12xf32> to vector<16x12xf32>
    %154 = vector.extract_strided_slice %124 {offsets = [0, 0], sizes = [16, 12], strides = [1, 1]} : vector<17x12xf32> to vector<16x12xf32>
    %155 = vector.extract_strided_slice %124 {offsets = [1, 0], sizes = [16, 12], strides = [1, 1]} : vector<17x12xf32> to vector<16x12xf32>
    %156 = tpu.concatenate %152, %153, %154, %155 in 1 : vector<16x12xf32>, vector<16x12xf32>, vector<16x12xf32>, vector<16x12xf32> -> vector<16x48xf32>
    %157 = vector.extract_strided_slice %124 {offsets = [0, 0], sizes = [16, 12], strides = [1, 1]} : vector<17x12xf32> to vector<16x12xf32>
    %158 = vector.extract_strided_slice %124 {offsets = [1, 0], sizes = [16, 12], strides = [1, 1]} : vector<17x12xf32> to vector<16x12xf32>
    %159 = vector.extract_strided_slice %127 {offsets = [0, 0], sizes = [16, 12], strides = [1, 1]} : vector<17x12xf32> to vector<16x12xf32>
    %160 = vector.extract_strided_slice %127 {offsets = [1, 0], sizes = [16, 12], strides = [1, 1]} : vector<17x12xf32> to vector<16x12xf32>
    %161 = tpu.concatenate %157, %158, %159, %160 in 1 : vector<16x12xf32>, vector<16x12xf32>, vector<16x12xf32>, vector<16x12xf32> -> vector<16x48xf32>
    %162 = vector.extract_strided_slice %127 {offsets = [0, 0], sizes = [16, 12], strides = [1, 1]} : vector<17x12xf32> to vector<16x12xf32>
    %163 = vector.extract_strided_slice %127 {offsets = [1, 0], sizes = [16, 12], strides = [1, 1]} : vector<17x12xf32> to vector<16x12xf32>
    %164 = vector.extract_strided_slice %130 {offsets = [0, 0], sizes = [16, 12], strides = [1, 1]} : vector<17x12xf32> to vector<16x12xf32>
    %165 = vector.extract_strided_slice %130 {offsets = [1, 0], sizes = [16, 12], strides = [1, 1]} : vector<17x12xf32> to vector<16x12xf32>
    %166 = tpu.concatenate %162, %163, %164, %165 in 1 : vector<16x12xf32>, vector<16x12xf32>, vector<16x12xf32>, vector<16x12xf32> -> vector<16x48xf32>
    %167 = vector.extract_strided_slice %130 {offsets = [0, 0], sizes = [16, 12], strides = [1, 1]} : vector<17x12xf32> to vector<16x12xf32>
    %168 = vector.extract_strided_slice %130 {offsets = [1, 0], sizes = [16, 12], strides = [1, 1]} : vector<17x12xf32> to vector<16x12xf32>
    %169 = vector.extract_strided_slice %133 {offsets = [0, 0], sizes = [16, 12], strides = [1, 1]} : vector<17x12xf32> to vector<16x12xf32>
    %170 = vector.extract_strided_slice %133 {offsets = [1, 0], sizes = [16, 12], strides = [1, 1]} : vector<17x12xf32> to vector<16x12xf32>
    %171 = tpu.concatenate %167, %168, %169, %170 in 1 : vector<16x12xf32>, vector<16x12xf32>, vector<16x12xf32>, vector<16x12xf32> -> vector<16x48xf32>
    %172 = vector.extract_strided_slice %133 {offsets = [0, 0], sizes = [16, 12], strides = [1, 1]} : vector<17x12xf32> to vector<16x12xf32>
    %173 = vector.extract_strided_slice %133 {offsets = [1, 0], sizes = [16, 12], strides = [1, 1]} : vector<17x12xf32> to vector<16x12xf32>
    %174 = vector.extract_strided_slice %136 {offsets = [0, 0], sizes = [16, 12], strides = [1, 1]} : vector<17x12xf32> to vector<16x12xf32>
    %175 = vector.extract_strided_slice %136 {offsets = [1, 0], sizes = [16, 12], strides = [1, 1]} : vector<17x12xf32> to vector<16x12xf32>
    %176 = tpu.concatenate %172, %173, %174, %175 in 1 : vector<16x12xf32>, vector<16x12xf32>, vector<16x12xf32>, vector<16x12xf32> -> vector<16x48xf32>
    %177 = tpu.concatenate %141, %146, %151, %156, %161, %166, %171, %176 in 0 : vector<16x48xf32>, vector<16x48xf32>, vector<16x48xf32>, vector<16x48xf32>, vector<16x48xf32>, vector<16x48xf32>, vector<16x48xf32>, vector<16x48xf32> -> vector<128x48xf32>
    %178 = arith.truncf %177 : vector<128x48xf32> to vector<128x48xbf16>
    %c0_92 = arith.constant 0 : index
    %c0_93 = arith.constant 0 : index
    %179 = vector.load %arg2[%c0_92, %c0_93] : memref<48x8xbf16, #tpu.memory_space<vmem>>, vector<48x8xbf16>
    %cst_94 = arith.constant dense<0.000000e+00> : vector<128x8xf32>
    %180 = tpu.matmul %178, %179, %cst_94 {dimension_numbers = #tpu.dot_dimension_numbers<[1], [0], [0], [1], [0, 0, 1, 1], [], []>} : vector<128x48xbf16>, vector<48x8xbf16>, vector<128x8xf32> -> vector<128x8xf32>
    %181 = vector.broadcast %0 : vector<1x8xf32> to vector<128x8xf32>
    %182 = arith.addf %180, %181 : vector<128x8xf32>
    %cst_95 = arith.constant 2.000000e-01 : f32
    %183 = vector.broadcast %cst_95 : f32 to vector<128x8xf32>
    %184 = arith.mulf %183, %182 : vector<128x8xf32>
    %185 = arith.maximumf %182, %184 : vector<128x8xf32>
    %186 = arith.truncf %185 : vector<128x8xf32> to vector<128x8xbf16>
    %187 = vector.extract_strided_slice %186 {offsets = [0, 0], sizes = [16, 8], strides = [1, 1]} : vector<128x8xbf16> to vector<16x8xbf16>
    %c0_96 = arith.constant 0 : index
    %c8_97 = arith.constant 8 : index
    %c0_98 = arith.constant 0 : index
    %c0_99 = arith.constant 0 : index
    %188 = vector.load %arg4[%c0_96, %c8_97, %c0_98, %c0_99] : memref<1x16x16x8xbf16, #tpu.memory_space<vmem>>, vector<1x1x16x8xbf16>
    %189 = vector.shape_cast %188 : vector<1x1x16x8xbf16> to vector<16x8xbf16>
    %190 = vector.shape_cast %187 : vector<16x8xbf16> to vector<1x1x16x8xbf16>
    tpu.vector_store %arg4[%c0_96, %c8_97, %c0_98, %c0_99], %190 {strides = array<i32>} : memref<1x16x16x8xbf16, #tpu.memory_space<vmem>>, vector<1x1x16x8xbf16>,
    %191 = vector.extract_strided_slice %186 {offsets = [16, 0], sizes = [16, 8], strides = [1, 1]} : vector<128x8xbf16> to vector<16x8xbf16>
    %c0_100 = arith.constant 0 : index
    %c9_101 = arith.constant 9 : index
    %c0_102 = arith.constant 0 : index
    %c0_103 = arith.constant 0 : index
    %192 = vector.load %arg4[%c0_100, %c9_101, %c0_102, %c0_103] : memref<1x16x16x8xbf16, #tpu.memory_space<vmem>>, vector<1x1x16x8xbf16>
    %193 = vector.shape_cast %192 : vector<1x1x16x8xbf16> to vector<16x8xbf16>
    %194 = vector.shape_cast %191 : vector<16x8xbf16> to vector<1x1x16x8xbf16>
    tpu.vector_store %arg4[%c0_100, %c9_101, %c0_102, %c0_103], %194 {strides = array<i32>} : memref<1x16x16x8xbf16, #tpu.memory_space<vmem>>, vector<1x1x16x8xbf16>,
    %195 = vector.extract_strided_slice %186 {offsets = [32, 0], sizes = [16, 8], strides = [1, 1]} : vector<128x8xbf16> to vector<16x8xbf16>
    %c0_104 = arith.constant 0 : index
    %c10_105 = arith.constant 10 : index
    %c0_106 = arith.constant 0 : index
    %c0_107 = arith.constant 0 : index
    %196 = vector.load %arg4[%c0_104, %c10_105, %c0_106, %c0_107] : memref<1x16x16x8xbf16, #tpu.memory_space<vmem>>, vector<1x1x16x8xbf16>
    %197 = vector.shape_cast %196 : vector<1x1x16x8xbf16> to vector<16x8xbf16>
    %198 = vector.shape_cast %195 : vector<16x8xbf16> to vector<1x1x16x8xbf16>
    tpu.vector_store %arg4[%c0_104, %c10_105, %c0_106, %c0_107], %198 {strides = array<i32>} : memref<1x16x16x8xbf16, #tpu.memory_space<vmem>>, vector<1x1x16x8xbf16>,
    %199 = vector.extract_strided_slice %186 {offsets = [48, 0], sizes = [16, 8], strides = [1, 1]} : vector<128x8xbf16> to vector<16x8xbf16>
    %c0_108 = arith.constant 0 : index
    %c11_109 = arith.constant 11 : index
    %c0_110 = arith.constant 0 : index
    %c0_111 = arith.constant 0 : index
    %200 = vector.load %arg4[%c0_108, %c11_109, %c0_110, %c0_111] : memref<1x16x16x8xbf16, #tpu.memory_space<vmem>>, vector<1x1x16x8xbf16>
    %201 = vector.shape_cast %200 : vector<1x1x16x8xbf16> to vector<16x8xbf16>
    %202 = vector.shape_cast %199 : vector<16x8xbf16> to vector<1x1x16x8xbf16>
    tpu.vector_store %arg4[%c0_108, %c11_109, %c0_110, %c0_111], %202 {strides = array<i32>} : memref<1x16x16x8xbf16, #tpu.memory_space<vmem>>, vector<1x1x16x8xbf16>,
    %203 = vector.extract_strided_slice %186 {offsets = [64, 0], sizes = [16, 8], strides = [1, 1]} : vector<128x8xbf16> to vector<16x8xbf16>
    %c0_112 = arith.constant 0 : index
    %c12_113 = arith.constant 12 : index
    %c0_114 = arith.constant 0 : index
    %c0_115 = arith.constant 0 : index
    %204 = vector.load %arg4[%c0_112, %c12_113, %c0_114, %c0_115] : memref<1x16x16x8xbf16, #tpu.memory_space<vmem>>, vector<1x1x16x8xbf16>
    %205 = vector.shape_cast %204 : vector<1x1x16x8xbf16> to vector<16x8xbf16>
    %206 = vector.shape_cast %203 : vector<16x8xbf16> to vector<1x1x16x8xbf16>
    tpu.vector_store %arg4[%c0_112, %c12_113, %c0_114, %c0_115], %206 {strides = array<i32>} : memref<1x16x16x8xbf16, #tpu.memory_space<vmem>>, vector<1x1x16x8xbf16>,
    %207 = vector.extract_strided_slice %186 {offsets = [80, 0], sizes = [16, 8], strides = [1, 1]} : vector<128x8xbf16> to vector<16x8xbf16>
    %c0_116 = arith.constant 0 : index
    %c13_117 = arith.constant 13 : index
    %c0_118 = arith.constant 0 : index
    %c0_119 = arith.constant 0 : index
    %208 = vector.load %arg4[%c0_116, %c13_117, %c0_118, %c0_119] : memref<1x16x16x8xbf16, #tpu.memory_space<vmem>>, vector<1x1x16x8xbf16>
    %209 = vector.shape_cast %208 : vector<1x1x16x8xbf16> to vector<16x8xbf16>
    %210 = vector.shape_cast %207 : vector<16x8xbf16> to vector<1x1x16x8xbf16>
    tpu.vector_store %arg4[%c0_116, %c13_117, %c0_118, %c0_119], %210 {strides = array<i32>} : memref<1x16x16x8xbf16, #tpu.memory_space<vmem>>, vector<1x1x16x8xbf16>,
    %211 = vector.extract_strided_slice %186 {offsets = [96, 0], sizes = [16, 8], strides = [1, 1]} : vector<128x8xbf16> to vector<16x8xbf16>
    %c0_120 = arith.constant 0 : index
    %c14_121 = arith.constant 14 : index
    %c0_122 = arith.constant 0 : index
    %c0_123 = arith.constant 0 : index
    %212 = vector.load %arg4[%c0_120, %c14_121, %c0_122, %c0_123] : memref<1x16x16x8xbf16, #tpu.memory_space<vmem>>, vector<1x1x16x8xbf16>
    %213 = vector.shape_cast %212 : vector<1x1x16x8xbf16> to vector<16x8xbf16>
    %214 = vector.shape_cast %211 : vector<16x8xbf16> to vector<1x1x16x8xbf16>
    tpu.vector_store %arg4[%c0_120, %c14_121, %c0_122, %c0_123], %214 {strides = array<i32>} : memref<1x16x16x8xbf16, #tpu.memory_space<vmem>>, vector<1x1x16x8xbf16>,
    %215 = vector.extract_strided_slice %186 {offsets = [112, 0], sizes = [16, 8], strides = [1, 1]} : vector<128x8xbf16> to vector<16x8xbf16>
    %c0_124 = arith.constant 0 : index
    %c15_125 = arith.constant 15 : index
    %c0_126 = arith.constant 0 : index
    %c0_127 = arith.constant 0 : index
    %216 = vector.load %arg4[%c0_124, %c15_125, %c0_126, %c0_127] : memref<1x16x16x8xbf16, #tpu.memory_space<vmem>>, vector<1x1x16x8xbf16>
    %217 = vector.shape_cast %216 : vector<1x1x16x8xbf16> to vector<16x8xbf16>
    %218 = vector.shape_cast %215 : vector<16x8xbf16> to vector<1x1x16x8xbf16>
    tpu.vector_store %arg4[%c0_124, %c15_125, %c0_126, %c0_127], %218 {strides = array<i32>} : memref<1x16x16x8xbf16, #tpu.memory_space<vmem>>, vector<1x1x16x8xbf16>,
    return
  }
  func.func @transform_0(%arg0: i32) -> (i32, i32, i32, i32) {
    %c0_i32 = arith.constant 0 : i32
    %c0_i32_0 = arith.constant 0 : i32
    %c0_i32_1 = arith.constant 0 : i32
    %c0_i32_2 = arith.constant 0 : i32
    return %arg0, %c0_i32, %c0_i32_0, %c0_i32_1 : i32, i32, i32, i32
  }
  func.func @transform_1(%arg0: i32) -> (i32, i32) {
    %c0_i32 = arith.constant 0 : i32
    %c0_i32_0 = arith.constant 0 : i32
    %c0_i32_1 = arith.constant 0 : i32
    return %c0_i32, %c0_i32_0 : i32, i32
  }
  func.func @transform_2(%arg0: i32) -> (i32, i32) {
    %c0_i32 = arith.constant 0 : i32
    %c0_i32_0 = arith.constant 0 : i32
    %c0_i32_1 = arith.constant 0 : i32
    return %c0_i32, %c0_i32_0 : i32, i32
  }
  func.func @transform_3(%arg0: i32) -> (i32, i32, i32, i32) {
    %c0_i32 = arith.constant 0 : i32
    %c0_i32_0 = arith.constant 0 : i32
    %c0_i32_1 = arith.constant 0 : i32
    %c0_i32_2 = arith.constant 0 : i32
    return %arg0, %c0_i32, %c0_i32_0, %c0_i32_1 : i32, i32, i32, i32
  }
}

module attributes {stable_mosaic.version = 11 : i64} {
  func.func @kernel(%arg0: i32, %arg1: memref<1x9x9x32xbf16, #tpu.memory_space<vmem>>, %arg2: memref<128x16xbf16, #tpu.memory_space<vmem>>, %arg3: memref<1x8x8x16xbf16, #tpu.memory_space<vmem>>, %arg4: memref<1x1x16xf32, #tpu.memory_space<vmem>>, %arg5: memref<1x1x16xf32, #tpu.memory_space<vmem>>) attributes {dimension_semantics = [#tpu.dimension_semantics<parallel>], iteration_bounds = array<i64: 2>, scalar_prefetch = 0 : i64, scratch_operands = 0 : i64, tpu.core_type = #tpu.core_type<tc>, window_params = [{transform_indices = @transform_0, window_bounds = array<i64: 1, 9, 9, 32>}, {pipeline_mode = #tpu.pipeline_mode<synchronous>, transform_indices = @transform_1, window_bounds = array<i64: 128, 16>}, {transform_indices = @transform_2, window_bounds = array<i64: 1, 8, 8, 16>}, {transform_indices = @transform_3, window_bounds = array<i64: 1, 1, 16>}, {transform_indices = @transform_4, window_bounds = array<i64: 1, 1, 16>}]} {
    %cst = arith.constant 0.000000e+00 : f32
    %0 = vector.broadcast %cst : f32 to vector<1x16xf32>
    %cst_0 = arith.constant 0.000000e+00 : f32
    %1 = vector.broadcast %cst_0 : f32 to vector<1x16xf32>
    %c0 = arith.constant 0 : index
    %c0_1 = arith.constant 0 : index
    %c0_2 = arith.constant 0 : index
    %c0_3 = arith.constant 0 : index
    %2 = vector.load %arg1[%c0, %c0_1, %c0_2, %c0_3] : memref<1x9x9x32xbf16, #tpu.memory_space<vmem>>, vector<1x1x9x32xbf16>
    %3 = vector.shape_cast %2 : vector<1x1x9x32xbf16> to vector<9x32xbf16>
    %4 = arith.extf %3 : vector<9x32xbf16> to vector<9x32xf32>
    %c0_4 = arith.constant 0 : index
    %c1 = arith.constant 1 : index
    %c0_5 = arith.constant 0 : index
    %c0_6 = arith.constant 0 : index
    %5 = vector.load %arg1[%c0_4, %c1, %c0_5, %c0_6] : memref<1x9x9x32xbf16, #tpu.memory_space<vmem>>, vector<1x1x9x32xbf16>
    %6 = vector.shape_cast %5 : vector<1x1x9x32xbf16> to vector<9x32xbf16>
    %7 = arith.extf %6 : vector<9x32xbf16> to vector<9x32xf32>
    %c0_7 = arith.constant 0 : index
    %c2 = arith.constant 2 : index
    %c0_8 = arith.constant 0 : index
    %c0_9 = arith.constant 0 : index
    %8 = vector.load %arg1[%c0_7, %c2, %c0_8, %c0_9] : memref<1x9x9x32xbf16, #tpu.memory_space<vmem>>, vector<1x1x9x32xbf16>
    %9 = vector.shape_cast %8 : vector<1x1x9x32xbf16> to vector<9x32xbf16>
    %10 = arith.extf %9 : vector<9x32xbf16> to vector<9x32xf32>
    %c0_10 = arith.constant 0 : index
    %c3 = arith.constant 3 : index
    %c0_11 = arith.constant 0 : index
    %c0_12 = arith.constant 0 : index
    %11 = vector.load %arg1[%c0_10, %c3, %c0_11, %c0_12] : memref<1x9x9x32xbf16, #tpu.memory_space<vmem>>, vector<1x1x9x32xbf16>
    %12 = vector.shape_cast %11 : vector<1x1x9x32xbf16> to vector<9x32xbf16>
    %13 = arith.extf %12 : vector<9x32xbf16> to vector<9x32xf32>
    %c0_13 = arith.constant 0 : index
    %c4 = arith.constant 4 : index
    %c0_14 = arith.constant 0 : index
    %c0_15 = arith.constant 0 : index
    %14 = vector.load %arg1[%c0_13, %c4, %c0_14, %c0_15] : memref<1x9x9x32xbf16, #tpu.memory_space<vmem>>, vector<1x1x9x32xbf16>
    %15 = vector.shape_cast %14 : vector<1x1x9x32xbf16> to vector<9x32xbf16>
    %16 = arith.extf %15 : vector<9x32xbf16> to vector<9x32xf32>
    %c0_16 = arith.constant 0 : index
    %c5 = arith.constant 5 : index
    %c0_17 = arith.constant 0 : index
    %c0_18 = arith.constant 0 : index
    %17 = vector.load %arg1[%c0_16, %c5, %c0_17, %c0_18] : memref<1x9x9x32xbf16, #tpu.memory_space<vmem>>, vector<1x1x9x32xbf16>
    %18 = vector.shape_cast %17 : vector<1x1x9x32xbf16> to vector<9x32xbf16>
    %19 = arith.extf %18 : vector<9x32xbf16> to vector<9x32xf32>
    %c0_19 = arith.constant 0 : index
    %c6 = arith.constant 6 : index
    %c0_20 = arith.constant 0 : index
    %c0_21 = arith.constant 0 : index
    %20 = vector.load %arg1[%c0_19, %c6, %c0_20, %c0_21] : memref<1x9x9x32xbf16, #tpu.memory_space<vmem>>, vector<1x1x9x32xbf16>
    %21 = vector.shape_cast %20 : vector<1x1x9x32xbf16> to vector<9x32xbf16>
    %22 = arith.extf %21 : vector<9x32xbf16> to vector<9x32xf32>
    %c0_22 = arith.constant 0 : index
    %c7 = arith.constant 7 : index
    %c0_23 = arith.constant 0 : index
    %c0_24 = arith.constant 0 : index
    %23 = vector.load %arg1[%c0_22, %c7, %c0_23, %c0_24] : memref<1x9x9x32xbf16, #tpu.memory_space<vmem>>, vector<1x1x9x32xbf16>
    %24 = vector.shape_cast %23 : vector<1x1x9x32xbf16> to vector<9x32xbf16>
    %25 = arith.extf %24 : vector<9x32xbf16> to vector<9x32xf32>
    %c0_25 = arith.constant 0 : index
    %c8 = arith.constant 8 : index
    %c0_26 = arith.constant 0 : index
    %c0_27 = arith.constant 0 : index
    %26 = vector.load %arg1[%c0_25, %c8, %c0_26, %c0_27] : memref<1x9x9x32xbf16, #tpu.memory_space<vmem>>, vector<1x1x9x32xbf16>
    %27 = vector.shape_cast %26 : vector<1x1x9x32xbf16> to vector<9x32xbf16>
    %28 = arith.extf %27 : vector<9x32xbf16> to vector<9x32xf32>
    %29 = vector.extract_strided_slice %4 {offsets = [0, 0], sizes = [8, 32], strides = [1, 1]} : vector<9x32xf32> to vector<8x32xf32>
    %30 = vector.extract_strided_slice %4 {offsets = [1, 0], sizes = [8, 32], strides = [1, 1]} : vector<9x32xf32> to vector<8x32xf32>
    %31 = vector.extract_strided_slice %7 {offsets = [0, 0], sizes = [8, 32], strides = [1, 1]} : vector<9x32xf32> to vector<8x32xf32>
    %32 = vector.extract_strided_slice %7 {offsets = [1, 0], sizes = [8, 32], strides = [1, 1]} : vector<9x32xf32> to vector<8x32xf32>
    %33 = tpu.concatenate %29, %30, %31, %32 in 1 : vector<8x32xf32>, vector<8x32xf32>, vector<8x32xf32>, vector<8x32xf32> -> vector<8x128xf32>
    %34 = vector.extract_strided_slice %7 {offsets = [0, 0], sizes = [8, 32], strides = [1, 1]} : vector<9x32xf32> to vector<8x32xf32>
    %35 = vector.extract_strided_slice %7 {offsets = [1, 0], sizes = [8, 32], strides = [1, 1]} : vector<9x32xf32> to vector<8x32xf32>
    %36 = vector.extract_strided_slice %10 {offsets = [0, 0], sizes = [8, 32], strides = [1, 1]} : vector<9x32xf32> to vector<8x32xf32>
    %37 = vector.extract_strided_slice %10 {offsets = [1, 0], sizes = [8, 32], strides = [1, 1]} : vector<9x32xf32> to vector<8x32xf32>
    %38 = tpu.concatenate %34, %35, %36, %37 in 1 : vector<8x32xf32>, vector<8x32xf32>, vector<8x32xf32>, vector<8x32xf32> -> vector<8x128xf32>
    %39 = vector.extract_strided_slice %10 {offsets = [0, 0], sizes = [8, 32], strides = [1, 1]} : vector<9x32xf32> to vector<8x32xf32>
    %40 = vector.extract_strided_slice %10 {offsets = [1, 0], sizes = [8, 32], strides = [1, 1]} : vector<9x32xf32> to vector<8x32xf32>
    %41 = vector.extract_strided_slice %13 {offsets = [0, 0], sizes = [8, 32], strides = [1, 1]} : vector<9x32xf32> to vector<8x32xf32>
    %42 = vector.extract_strided_slice %13 {offsets = [1, 0], sizes = [8, 32], strides = [1, 1]} : vector<9x32xf32> to vector<8x32xf32>
    %43 = tpu.concatenate %39, %40, %41, %42 in 1 : vector<8x32xf32>, vector<8x32xf32>, vector<8x32xf32>, vector<8x32xf32> -> vector<8x128xf32>
    %44 = vector.extract_strided_slice %13 {offsets = [0, 0], sizes = [8, 32], strides = [1, 1]} : vector<9x32xf32> to vector<8x32xf32>
    %45 = vector.extract_strided_slice %13 {offsets = [1, 0], sizes = [8, 32], strides = [1, 1]} : vector<9x32xf32> to vector<8x32xf32>
    %46 = vector.extract_strided_slice %16 {offsets = [0, 0], sizes = [8, 32], strides = [1, 1]} : vector<9x32xf32> to vector<8x32xf32>
    %47 = vector.extract_strided_slice %16 {offsets = [1, 0], sizes = [8, 32], strides = [1, 1]} : vector<9x32xf32> to vector<8x32xf32>
    %48 = tpu.concatenate %44, %45, %46, %47 in 1 : vector<8x32xf32>, vector<8x32xf32>, vector<8x32xf32>, vector<8x32xf32> -> vector<8x128xf32>
    %49 = vector.extract_strided_slice %16 {offsets = [0, 0], sizes = [8, 32], strides = [1, 1]} : vector<9x32xf32> to vector<8x32xf32>
    %50 = vector.extract_strided_slice %16 {offsets = [1, 0], sizes = [8, 32], strides = [1, 1]} : vector<9x32xf32> to vector<8x32xf32>
    %51 = vector.extract_strided_slice %19 {offsets = [0, 0], sizes = [8, 32], strides = [1, 1]} : vector<9x32xf32> to vector<8x32xf32>
    %52 = vector.extract_strided_slice %19 {offsets = [1, 0], sizes = [8, 32], strides = [1, 1]} : vector<9x32xf32> to vector<8x32xf32>
    %53 = tpu.concatenate %49, %50, %51, %52 in 1 : vector<8x32xf32>, vector<8x32xf32>, vector<8x32xf32>, vector<8x32xf32> -> vector<8x128xf32>
    %54 = vector.extract_strided_slice %19 {offsets = [0, 0], sizes = [8, 32], strides = [1, 1]} : vector<9x32xf32> to vector<8x32xf32>
    %55 = vector.extract_strided_slice %19 {offsets = [1, 0], sizes = [8, 32], strides = [1, 1]} : vector<9x32xf32> to vector<8x32xf32>
    %56 = vector.extract_strided_slice %22 {offsets = [0, 0], sizes = [8, 32], strides = [1, 1]} : vector<9x32xf32> to vector<8x32xf32>
    %57 = vector.extract_strided_slice %22 {offsets = [1, 0], sizes = [8, 32], strides = [1, 1]} : vector<9x32xf32> to vector<8x32xf32>
    %58 = tpu.concatenate %54, %55, %56, %57 in 1 : vector<8x32xf32>, vector<8x32xf32>, vector<8x32xf32>, vector<8x32xf32> -> vector<8x128xf32>
    %59 = vector.extract_strided_slice %22 {offsets = [0, 0], sizes = [8, 32], strides = [1, 1]} : vector<9x32xf32> to vector<8x32xf32>
    %60 = vector.extract_strided_slice %22 {offsets = [1, 0], sizes = [8, 32], strides = [1, 1]} : vector<9x32xf32> to vector<8x32xf32>
    %61 = vector.extract_strided_slice %25 {offsets = [0, 0], sizes = [8, 32], strides = [1, 1]} : vector<9x32xf32> to vector<8x32xf32>
    %62 = vector.extract_strided_slice %25 {offsets = [1, 0], sizes = [8, 32], strides = [1, 1]} : vector<9x32xf32> to vector<8x32xf32>
    %63 = tpu.concatenate %59, %60, %61, %62 in 1 : vector<8x32xf32>, vector<8x32xf32>, vector<8x32xf32>, vector<8x32xf32> -> vector<8x128xf32>
    %64 = vector.extract_strided_slice %25 {offsets = [0, 0], sizes = [8, 32], strides = [1, 1]} : vector<9x32xf32> to vector<8x32xf32>
    %65 = vector.extract_strided_slice %25 {offsets = [1, 0], sizes = [8, 32], strides = [1, 1]} : vector<9x32xf32> to vector<8x32xf32>
    %66 = vector.extract_strided_slice %28 {offsets = [0, 0], sizes = [8, 32], strides = [1, 1]} : vector<9x32xf32> to vector<8x32xf32>
    %67 = vector.extract_strided_slice %28 {offsets = [1, 0], sizes = [8, 32], strides = [1, 1]} : vector<9x32xf32> to vector<8x32xf32>
    %68 = tpu.concatenate %64, %65, %66, %67 in 1 : vector<8x32xf32>, vector<8x32xf32>, vector<8x32xf32>, vector<8x32xf32> -> vector<8x128xf32>
    %69 = tpu.concatenate %33, %38, %43, %48, %53, %58, %63, %68 in 0 : vector<8x128xf32>, vector<8x128xf32>, vector<8x128xf32>, vector<8x128xf32>, vector<8x128xf32>, vector<8x128xf32>, vector<8x128xf32>, vector<8x128xf32> -> vector<64x128xf32>
    %70 = arith.truncf %69 : vector<64x128xf32> to vector<64x128xbf16>
    %c0_28 = arith.constant 0 : index
    %c0_29 = arith.constant 0 : index
    %71 = vector.load %arg2[%c0_28, %c0_29] : memref<128x16xbf16, #tpu.memory_space<vmem>>, vector<128x16xbf16>
    %cst_30 = arith.constant dense<0.000000e+00> : vector<64x16xf32>
    %72 = tpu.matmul %70, %71, %cst_30 {dimension_numbers = #tpu.dot_dimension_numbers<[1], [0], [0], [1], [0, 0, 1, 1], [], []>} : vector<64x128xbf16>, vector<128x16xbf16>, vector<64x16xf32> -> vector<64x16xf32>
    %cst_31 = arith.constant dense<0.000000e+00> : vector<16xf32>
    %73 = vector.multi_reduction <add>, %72, %cst_31 [0] : vector<64x16xf32> to vector<16xf32>
    %74 = vector.shape_cast %73 : vector<16xf32> to vector<1x16xf32>
    %75 = arith.addf %0, %74 : vector<1x16xf32>
    %76 = arith.mulf %72, %72 : vector<64x16xf32>
    %cst_32 = arith.constant dense<0.000000e+00> : vector<16xf32>
    %77 = vector.multi_reduction <add>, %76, %cst_32 [0] : vector<64x16xf32> to vector<16xf32>
    %78 = vector.shape_cast %77 : vector<16xf32> to vector<1x16xf32>
    %79 = arith.addf %1, %78 : vector<1x16xf32>
    %80 = arith.truncf %72 : vector<64x16xf32> to vector<64x16xbf16>
    %81 = vector.extract_strided_slice %80 {offsets = [0, 0], sizes = [8, 16], strides = [1, 1]} : vector<64x16xbf16> to vector<8x16xbf16>
    %c0_33 = arith.constant 0 : index
    %c0_34 = arith.constant 0 : index
    %c0_35 = arith.constant 0 : index
    %c0_36 = arith.constant 0 : index
    %82 = vector.load %arg3[%c0_33, %c0_34, %c0_35, %c0_36] : memref<1x8x8x16xbf16, #tpu.memory_space<vmem>>, vector<1x1x8x16xbf16>
    %83 = vector.shape_cast %82 : vector<1x1x8x16xbf16> to vector<8x16xbf16>
    %84 = vector.shape_cast %81 : vector<8x16xbf16> to vector<1x1x8x16xbf16>
    tpu.vector_store %arg3[%c0_33, %c0_34, %c0_35, %c0_36], %84 {strides = array<i32>} : memref<1x8x8x16xbf16, #tpu.memory_space<vmem>>, vector<1x1x8x16xbf16>,
    %85 = vector.extract_strided_slice %80 {offsets = [8, 0], sizes = [8, 16], strides = [1, 1]} : vector<64x16xbf16> to vector<8x16xbf16>
    %c0_37 = arith.constant 0 : index
    %c1_38 = arith.constant 1 : index
    %c0_39 = arith.constant 0 : index
    %c0_40 = arith.constant 0 : index
    %86 = vector.load %arg3[%c0_37, %c1_38, %c0_39, %c0_40] : memref<1x8x8x16xbf16, #tpu.memory_space<vmem>>, vector<1x1x8x16xbf16>
    %87 = vector.shape_cast %86 : vector<1x1x8x16xbf16> to vector<8x16xbf16>
    %88 = vector.shape_cast %85 : vector<8x16xbf16> to vector<1x1x8x16xbf16>
    tpu.vector_store %arg3[%c0_37, %c1_38, %c0_39, %c0_40], %88 {strides = array<i32>} : memref<1x8x8x16xbf16, #tpu.memory_space<vmem>>, vector<1x1x8x16xbf16>,
    %89 = vector.extract_strided_slice %80 {offsets = [16, 0], sizes = [8, 16], strides = [1, 1]} : vector<64x16xbf16> to vector<8x16xbf16>
    %c0_41 = arith.constant 0 : index
    %c2_42 = arith.constant 2 : index
    %c0_43 = arith.constant 0 : index
    %c0_44 = arith.constant 0 : index
    %90 = vector.load %arg3[%c0_41, %c2_42, %c0_43, %c0_44] : memref<1x8x8x16xbf16, #tpu.memory_space<vmem>>, vector<1x1x8x16xbf16>
    %91 = vector.shape_cast %90 : vector<1x1x8x16xbf16> to vector<8x16xbf16>
    %92 = vector.shape_cast %89 : vector<8x16xbf16> to vector<1x1x8x16xbf16>
    tpu.vector_store %arg3[%c0_41, %c2_42, %c0_43, %c0_44], %92 {strides = array<i32>} : memref<1x8x8x16xbf16, #tpu.memory_space<vmem>>, vector<1x1x8x16xbf16>,
    %93 = vector.extract_strided_slice %80 {offsets = [24, 0], sizes = [8, 16], strides = [1, 1]} : vector<64x16xbf16> to vector<8x16xbf16>
    %c0_45 = arith.constant 0 : index
    %c3_46 = arith.constant 3 : index
    %c0_47 = arith.constant 0 : index
    %c0_48 = arith.constant 0 : index
    %94 = vector.load %arg3[%c0_45, %c3_46, %c0_47, %c0_48] : memref<1x8x8x16xbf16, #tpu.memory_space<vmem>>, vector<1x1x8x16xbf16>
    %95 = vector.shape_cast %94 : vector<1x1x8x16xbf16> to vector<8x16xbf16>
    %96 = vector.shape_cast %93 : vector<8x16xbf16> to vector<1x1x8x16xbf16>
    tpu.vector_store %arg3[%c0_45, %c3_46, %c0_47, %c0_48], %96 {strides = array<i32>} : memref<1x8x8x16xbf16, #tpu.memory_space<vmem>>, vector<1x1x8x16xbf16>,
    %97 = vector.extract_strided_slice %80 {offsets = [32, 0], sizes = [8, 16], strides = [1, 1]} : vector<64x16xbf16> to vector<8x16xbf16>
    %c0_49 = arith.constant 0 : index
    %c4_50 = arith.constant 4 : index
    %c0_51 = arith.constant 0 : index
    %c0_52 = arith.constant 0 : index
    %98 = vector.load %arg3[%c0_49, %c4_50, %c0_51, %c0_52] : memref<1x8x8x16xbf16, #tpu.memory_space<vmem>>, vector<1x1x8x16xbf16>
    %99 = vector.shape_cast %98 : vector<1x1x8x16xbf16> to vector<8x16xbf16>
    %100 = vector.shape_cast %97 : vector<8x16xbf16> to vector<1x1x8x16xbf16>
    tpu.vector_store %arg3[%c0_49, %c4_50, %c0_51, %c0_52], %100 {strides = array<i32>} : memref<1x8x8x16xbf16, #tpu.memory_space<vmem>>, vector<1x1x8x16xbf16>,
    %101 = vector.extract_strided_slice %80 {offsets = [40, 0], sizes = [8, 16], strides = [1, 1]} : vector<64x16xbf16> to vector<8x16xbf16>
    %c0_53 = arith.constant 0 : index
    %c5_54 = arith.constant 5 : index
    %c0_55 = arith.constant 0 : index
    %c0_56 = arith.constant 0 : index
    %102 = vector.load %arg3[%c0_53, %c5_54, %c0_55, %c0_56] : memref<1x8x8x16xbf16, #tpu.memory_space<vmem>>, vector<1x1x8x16xbf16>
    %103 = vector.shape_cast %102 : vector<1x1x8x16xbf16> to vector<8x16xbf16>
    %104 = vector.shape_cast %101 : vector<8x16xbf16> to vector<1x1x8x16xbf16>
    tpu.vector_store %arg3[%c0_53, %c5_54, %c0_55, %c0_56], %104 {strides = array<i32>} : memref<1x8x8x16xbf16, #tpu.memory_space<vmem>>, vector<1x1x8x16xbf16>,
    %105 = vector.extract_strided_slice %80 {offsets = [48, 0], sizes = [8, 16], strides = [1, 1]} : vector<64x16xbf16> to vector<8x16xbf16>
    %c0_57 = arith.constant 0 : index
    %c6_58 = arith.constant 6 : index
    %c0_59 = arith.constant 0 : index
    %c0_60 = arith.constant 0 : index
    %106 = vector.load %arg3[%c0_57, %c6_58, %c0_59, %c0_60] : memref<1x8x8x16xbf16, #tpu.memory_space<vmem>>, vector<1x1x8x16xbf16>
    %107 = vector.shape_cast %106 : vector<1x1x8x16xbf16> to vector<8x16xbf16>
    %108 = vector.shape_cast %105 : vector<8x16xbf16> to vector<1x1x8x16xbf16>
    tpu.vector_store %arg3[%c0_57, %c6_58, %c0_59, %c0_60], %108 {strides = array<i32>} : memref<1x8x8x16xbf16, #tpu.memory_space<vmem>>, vector<1x1x8x16xbf16>,
    %109 = vector.extract_strided_slice %80 {offsets = [56, 0], sizes = [8, 16], strides = [1, 1]} : vector<64x16xbf16> to vector<8x16xbf16>
    %c0_61 = arith.constant 0 : index
    %c7_62 = arith.constant 7 : index
    %c0_63 = arith.constant 0 : index
    %c0_64 = arith.constant 0 : index
    %110 = vector.load %arg3[%c0_61, %c7_62, %c0_63, %c0_64] : memref<1x8x8x16xbf16, #tpu.memory_space<vmem>>, vector<1x1x8x16xbf16>
    %111 = vector.shape_cast %110 : vector<1x1x8x16xbf16> to vector<8x16xbf16>
    %112 = vector.shape_cast %109 : vector<8x16xbf16> to vector<1x1x8x16xbf16>
    tpu.vector_store %arg3[%c0_61, %c7_62, %c0_63, %c0_64], %112 {strides = array<i32>} : memref<1x8x8x16xbf16, #tpu.memory_space<vmem>>, vector<1x1x8x16xbf16>,
    %c0_65 = arith.constant 0 : index
    %c0_66 = arith.constant 0 : index
    %c0_67 = arith.constant 0 : index
    %113 = vector.load %arg4[%c0_65, %c0_66, %c0_67] : memref<1x1x16xf32, #tpu.memory_space<vmem>>, vector<1x1x16xf32>
    %114 = vector.shape_cast %113 : vector<1x1x16xf32> to vector<1x16xf32>
    %115 = vector.shape_cast %75 : vector<1x16xf32> to vector<1x1x16xf32>
    tpu.vector_store %arg4[%c0_65, %c0_66, %c0_67], %115 {strides = array<i32>} : memref<1x1x16xf32, #tpu.memory_space<vmem>>, vector<1x1x16xf32>,
    %c0_68 = arith.constant 0 : index
    %c0_69 = arith.constant 0 : index
    %c0_70 = arith.constant 0 : index
    %116 = vector.load %arg5[%c0_68, %c0_69, %c0_70] : memref<1x1x16xf32, #tpu.memory_space<vmem>>, vector<1x1x16xf32>
    %117 = vector.shape_cast %116 : vector<1x1x16xf32> to vector<1x16xf32>
    %118 = vector.shape_cast %79 : vector<1x16xf32> to vector<1x1x16xf32>
    tpu.vector_store %arg5[%c0_68, %c0_69, %c0_70], %118 {strides = array<i32>} : memref<1x1x16xf32, #tpu.memory_space<vmem>>, vector<1x1x16xf32>,
    return
  }
  func.func @transform_0(%arg0: i32) -> (i32, i32, i32, i32) {
    %c0_i32 = arith.constant 0 : i32
    %c0_i32_0 = arith.constant 0 : i32
    %c0_i32_1 = arith.constant 0 : i32
    %c0_i32_2 = arith.constant 0 : i32
    return %arg0, %c0_i32, %c0_i32_0, %c0_i32_1 : i32, i32, i32, i32
  }
  func.func @transform_1(%arg0: i32) -> (i32, i32) {
    %c0_i32 = arith.constant 0 : i32
    %c0_i32_0 = arith.constant 0 : i32
    %c0_i32_1 = arith.constant 0 : i32
    return %c0_i32, %c0_i32_0 : i32, i32
  }
  func.func @transform_2(%arg0: i32) -> (i32, i32, i32, i32) {
    %c0_i32 = arith.constant 0 : i32
    %c0_i32_0 = arith.constant 0 : i32
    %c0_i32_1 = arith.constant 0 : i32
    %c0_i32_2 = arith.constant 0 : i32
    return %arg0, %c0_i32, %c0_i32_0, %c0_i32_1 : i32, i32, i32, i32
  }
  func.func @transform_3(%arg0: i32) -> (i32, i32, i32) {
    %c0_i32 = arith.constant 0 : i32
    %c0_i32_0 = arith.constant 0 : i32
    %c0_i32_1 = arith.constant 0 : i32
    return %arg0, %c0_i32, %c0_i32_0 : i32, i32, i32
  }
  func.func @transform_4(%arg0: i32) -> (i32, i32, i32) {
    %c0_i32 = arith.constant 0 : i32
    %c0_i32_0 = arith.constant 0 : i32
    %c0_i32_1 = arith.constant 0 : i32
    return %arg0, %c0_i32, %c0_i32_0 : i32, i32, i32
  }
}

module attributes {stable_mosaic.version = 11 : i64} {
  func.func @kernel(%arg0: i32, %arg1: memref<1x5x5x64xbf16, #tpu.memory_space<vmem>>, %arg2: memref<256x32xbf16, #tpu.memory_space<vmem>>, %arg3: memref<1x4x4x32xbf16, #tpu.memory_space<vmem>>, %arg4: memref<1x1x32xf32, #tpu.memory_space<vmem>>, %arg5: memref<1x1x32xf32, #tpu.memory_space<vmem>>) attributes {dimension_semantics = [#tpu.dimension_semantics<parallel>], iteration_bounds = array<i64: 2>, scalar_prefetch = 0 : i64, scratch_operands = 0 : i64, tpu.core_type = #tpu.core_type<tc>, window_params = [{transform_indices = @transform_0, window_bounds = array<i64: 1, 5, 5, 64>}, {pipeline_mode = #tpu.pipeline_mode<synchronous>, transform_indices = @transform_1, window_bounds = array<i64: 256, 32>}, {transform_indices = @transform_2, window_bounds = array<i64: 1, 4, 4, 32>}, {transform_indices = @transform_3, window_bounds = array<i64: 1, 1, 32>}, {transform_indices = @transform_4, window_bounds = array<i64: 1, 1, 32>}]} {
    %cst = arith.constant 0.000000e+00 : f32
    %0 = vector.broadcast %cst : f32 to vector<1x32xf32>
    %cst_0 = arith.constant 0.000000e+00 : f32
    %1 = vector.broadcast %cst_0 : f32 to vector<1x32xf32>
    %c0 = arith.constant 0 : index
    %c0_1 = arith.constant 0 : index
    %c0_2 = arith.constant 0 : index
    %c0_3 = arith.constant 0 : index
    %2 = vector.load %arg1[%c0, %c0_1, %c0_2, %c0_3] : memref<1x5x5x64xbf16, #tpu.memory_space<vmem>>, vector<1x1x5x64xbf16>
    %3 = vector.shape_cast %2 : vector<1x1x5x64xbf16> to vector<5x64xbf16>
    %4 = arith.extf %3 : vector<5x64xbf16> to vector<5x64xf32>
    %c0_4 = arith.constant 0 : index
    %c1 = arith.constant 1 : index
    %c0_5 = arith.constant 0 : index
    %c0_6 = arith.constant 0 : index
    %5 = vector.load %arg1[%c0_4, %c1, %c0_5, %c0_6] : memref<1x5x5x64xbf16, #tpu.memory_space<vmem>>, vector<1x1x5x64xbf16>
    %6 = vector.shape_cast %5 : vector<1x1x5x64xbf16> to vector<5x64xbf16>
    %7 = arith.extf %6 : vector<5x64xbf16> to vector<5x64xf32>
    %c0_7 = arith.constant 0 : index
    %c2 = arith.constant 2 : index
    %c0_8 = arith.constant 0 : index
    %c0_9 = arith.constant 0 : index
    %8 = vector.load %arg1[%c0_7, %c2, %c0_8, %c0_9] : memref<1x5x5x64xbf16, #tpu.memory_space<vmem>>, vector<1x1x5x64xbf16>
    %9 = vector.shape_cast %8 : vector<1x1x5x64xbf16> to vector<5x64xbf16>
    %10 = arith.extf %9 : vector<5x64xbf16> to vector<5x64xf32>
    %c0_10 = arith.constant 0 : index
    %c3 = arith.constant 3 : index
    %c0_11 = arith.constant 0 : index
    %c0_12 = arith.constant 0 : index
    %11 = vector.load %arg1[%c0_10, %c3, %c0_11, %c0_12] : memref<1x5x5x64xbf16, #tpu.memory_space<vmem>>, vector<1x1x5x64xbf16>
    %12 = vector.shape_cast %11 : vector<1x1x5x64xbf16> to vector<5x64xbf16>
    %13 = arith.extf %12 : vector<5x64xbf16> to vector<5x64xf32>
    %c0_13 = arith.constant 0 : index
    %c4 = arith.constant 4 : index
    %c0_14 = arith.constant 0 : index
    %c0_15 = arith.constant 0 : index
    %14 = vector.load %arg1[%c0_13, %c4, %c0_14, %c0_15] : memref<1x5x5x64xbf16, #tpu.memory_space<vmem>>, vector<1x1x5x64xbf16>
    %15 = vector.shape_cast %14 : vector<1x1x5x64xbf16> to vector<5x64xbf16>
    %16 = arith.extf %15 : vector<5x64xbf16> to vector<5x64xf32>
    %17 = vector.extract_strided_slice %4 {offsets = [0, 0], sizes = [4, 64], strides = [1, 1]} : vector<5x64xf32> to vector<4x64xf32>
    %18 = vector.extract_strided_slice %4 {offsets = [1, 0], sizes = [4, 64], strides = [1, 1]} : vector<5x64xf32> to vector<4x64xf32>
    %19 = vector.extract_strided_slice %7 {offsets = [0, 0], sizes = [4, 64], strides = [1, 1]} : vector<5x64xf32> to vector<4x64xf32>
    %20 = vector.extract_strided_slice %7 {offsets = [1, 0], sizes = [4, 64], strides = [1, 1]} : vector<5x64xf32> to vector<4x64xf32>
    %21 = tpu.concatenate %17, %18, %19, %20 in 1 : vector<4x64xf32>, vector<4x64xf32>, vector<4x64xf32>, vector<4x64xf32> -> vector<4x256xf32>
    %22 = vector.extract_strided_slice %7 {offsets = [0, 0], sizes = [4, 64], strides = [1, 1]} : vector<5x64xf32> to vector<4x64xf32>
    %23 = vector.extract_strided_slice %7 {offsets = [1, 0], sizes = [4, 64], strides = [1, 1]} : vector<5x64xf32> to vector<4x64xf32>
    %24 = vector.extract_strided_slice %10 {offsets = [0, 0], sizes = [4, 64], strides = [1, 1]} : vector<5x64xf32> to vector<4x64xf32>
    %25 = vector.extract_strided_slice %10 {offsets = [1, 0], sizes = [4, 64], strides = [1, 1]} : vector<5x64xf32> to vector<4x64xf32>
    %26 = tpu.concatenate %22, %23, %24, %25 in 1 : vector<4x64xf32>, vector<4x64xf32>, vector<4x64xf32>, vector<4x64xf32> -> vector<4x256xf32>
    %27 = vector.extract_strided_slice %10 {offsets = [0, 0], sizes = [4, 64], strides = [1, 1]} : vector<5x64xf32> to vector<4x64xf32>
    %28 = vector.extract_strided_slice %10 {offsets = [1, 0], sizes = [4, 64], strides = [1, 1]} : vector<5x64xf32> to vector<4x64xf32>
    %29 = vector.extract_strided_slice %13 {offsets = [0, 0], sizes = [4, 64], strides = [1, 1]} : vector<5x64xf32> to vector<4x64xf32>
    %30 = vector.extract_strided_slice %13 {offsets = [1, 0], sizes = [4, 64], strides = [1, 1]} : vector<5x64xf32> to vector<4x64xf32>
    %31 = tpu.concatenate %27, %28, %29, %30 in 1 : vector<4x64xf32>, vector<4x64xf32>, vector<4x64xf32>, vector<4x64xf32> -> vector<4x256xf32>
    %32 = vector.extract_strided_slice %13 {offsets = [0, 0], sizes = [4, 64], strides = [1, 1]} : vector<5x64xf32> to vector<4x64xf32>
    %33 = vector.extract_strided_slice %13 {offsets = [1, 0], sizes = [4, 64], strides = [1, 1]} : vector<5x64xf32> to vector<4x64xf32>
    %34 = vector.extract_strided_slice %16 {offsets = [0, 0], sizes = [4, 64], strides = [1, 1]} : vector<5x64xf32> to vector<4x64xf32>
    %35 = vector.extract_strided_slice %16 {offsets = [1, 0], sizes = [4, 64], strides = [1, 1]} : vector<5x64xf32> to vector<4x64xf32>
    %36 = tpu.concatenate %32, %33, %34, %35 in 1 : vector<4x64xf32>, vector<4x64xf32>, vector<4x64xf32>, vector<4x64xf32> -> vector<4x256xf32>
    %37 = tpu.concatenate %21, %26, %31, %36 in 0 : vector<4x256xf32>, vector<4x256xf32>, vector<4x256xf32>, vector<4x256xf32> -> vector<16x256xf32>
    %38 = arith.truncf %37 : vector<16x256xf32> to vector<16x256xbf16>
    %c0_16 = arith.constant 0 : index
    %c0_17 = arith.constant 0 : index
    %39 = vector.load %arg2[%c0_16, %c0_17] : memref<256x32xbf16, #tpu.memory_space<vmem>>, vector<256x32xbf16>
    %cst_18 = arith.constant dense<0.000000e+00> : vector<16x32xf32>
    %40 = tpu.matmul %38, %39, %cst_18 {dimension_numbers = #tpu.dot_dimension_numbers<[1], [0], [0], [1], [0, 0, 1, 1], [], []>} : vector<16x256xbf16>, vector<256x32xbf16>, vector<16x32xf32> -> vector<16x32xf32>
    %cst_19 = arith.constant dense<0.000000e+00> : vector<32xf32>
    %41 = vector.multi_reduction <add>, %40, %cst_19 [0] : vector<16x32xf32> to vector<32xf32>
    %42 = vector.shape_cast %41 : vector<32xf32> to vector<1x32xf32>
    %43 = arith.addf %0, %42 : vector<1x32xf32>
    %44 = arith.mulf %40, %40 : vector<16x32xf32>
    %cst_20 = arith.constant dense<0.000000e+00> : vector<32xf32>
    %45 = vector.multi_reduction <add>, %44, %cst_20 [0] : vector<16x32xf32> to vector<32xf32>
    %46 = vector.shape_cast %45 : vector<32xf32> to vector<1x32xf32>
    %47 = arith.addf %1, %46 : vector<1x32xf32>
    %48 = arith.truncf %40 : vector<16x32xf32> to vector<16x32xbf16>
    %49 = vector.extract_strided_slice %48 {offsets = [0, 0], sizes = [4, 32], strides = [1, 1]} : vector<16x32xbf16> to vector<4x32xbf16>
    %c0_21 = arith.constant 0 : index
    %c0_22 = arith.constant 0 : index
    %c0_23 = arith.constant 0 : index
    %c0_24 = arith.constant 0 : index
    %50 = vector.load %arg3[%c0_21, %c0_22, %c0_23, %c0_24] : memref<1x4x4x32xbf16, #tpu.memory_space<vmem>>, vector<1x1x4x32xbf16>
    %51 = vector.shape_cast %50 : vector<1x1x4x32xbf16> to vector<4x32xbf16>
    %52 = vector.shape_cast %49 : vector<4x32xbf16> to vector<1x1x4x32xbf16>
    tpu.vector_store %arg3[%c0_21, %c0_22, %c0_23, %c0_24], %52 {strides = array<i32>} : memref<1x4x4x32xbf16, #tpu.memory_space<vmem>>, vector<1x1x4x32xbf16>,
    %53 = vector.extract_strided_slice %48 {offsets = [4, 0], sizes = [4, 32], strides = [1, 1]} : vector<16x32xbf16> to vector<4x32xbf16>
    %c0_25 = arith.constant 0 : index
    %c1_26 = arith.constant 1 : index
    %c0_27 = arith.constant 0 : index
    %c0_28 = arith.constant 0 : index
    %54 = vector.load %arg3[%c0_25, %c1_26, %c0_27, %c0_28] : memref<1x4x4x32xbf16, #tpu.memory_space<vmem>>, vector<1x1x4x32xbf16>
    %55 = vector.shape_cast %54 : vector<1x1x4x32xbf16> to vector<4x32xbf16>
    %56 = vector.shape_cast %53 : vector<4x32xbf16> to vector<1x1x4x32xbf16>
    tpu.vector_store %arg3[%c0_25, %c1_26, %c0_27, %c0_28], %56 {strides = array<i32>} : memref<1x4x4x32xbf16, #tpu.memory_space<vmem>>, vector<1x1x4x32xbf16>,
    %57 = vector.extract_strided_slice %48 {offsets = [8, 0], sizes = [4, 32], strides = [1, 1]} : vector<16x32xbf16> to vector<4x32xbf16>
    %c0_29 = arith.constant 0 : index
    %c2_30 = arith.constant 2 : index
    %c0_31 = arith.constant 0 : index
    %c0_32 = arith.constant 0 : index
    %58 = vector.load %arg3[%c0_29, %c2_30, %c0_31, %c0_32] : memref<1x4x4x32xbf16, #tpu.memory_space<vmem>>, vector<1x1x4x32xbf16>
    %59 = vector.shape_cast %58 : vector<1x1x4x32xbf16> to vector<4x32xbf16>
    %60 = vector.shape_cast %57 : vector<4x32xbf16> to vector<1x1x4x32xbf16>
    tpu.vector_store %arg3[%c0_29, %c2_30, %c0_31, %c0_32], %60 {strides = array<i32>} : memref<1x4x4x32xbf16, #tpu.memory_space<vmem>>, vector<1x1x4x32xbf16>,
    %61 = vector.extract_strided_slice %48 {offsets = [12, 0], sizes = [4, 32], strides = [1, 1]} : vector<16x32xbf16> to vector<4x32xbf16>
    %c0_33 = arith.constant 0 : index
    %c3_34 = arith.constant 3 : index
    %c0_35 = arith.constant 0 : index
    %c0_36 = arith.constant 0 : index
    %62 = vector.load %arg3[%c0_33, %c3_34, %c0_35, %c0_36] : memref<1x4x4x32xbf16, #tpu.memory_space<vmem>>, vector<1x1x4x32xbf16>
    %63 = vector.shape_cast %62 : vector<1x1x4x32xbf16> to vector<4x32xbf16>
    %64 = vector.shape_cast %61 : vector<4x32xbf16> to vector<1x1x4x32xbf16>
    tpu.vector_store %arg3[%c0_33, %c3_34, %c0_35, %c0_36], %64 {strides = array<i32>} : memref<1x4x4x32xbf16, #tpu.memory_space<vmem>>, vector<1x1x4x32xbf16>,
    %c0_37 = arith.constant 0 : index
    %c0_38 = arith.constant 0 : index
    %c0_39 = arith.constant 0 : index
    %65 = vector.load %arg4[%c0_37, %c0_38, %c0_39] : memref<1x1x32xf32, #tpu.memory_space<vmem>>, vector<1x1x32xf32>
    %66 = vector.shape_cast %65 : vector<1x1x32xf32> to vector<1x32xf32>
    %67 = vector.shape_cast %43 : vector<1x32xf32> to vector<1x1x32xf32>
    tpu.vector_store %arg4[%c0_37, %c0_38, %c0_39], %67 {strides = array<i32>} : memref<1x1x32xf32, #tpu.memory_space<vmem>>, vector<1x1x32xf32>,
    %c0_40 = arith.constant 0 : index
    %c0_41 = arith.constant 0 : index
    %c0_42 = arith.constant 0 : index
    %68 = vector.load %arg5[%c0_40, %c0_41, %c0_42] : memref<1x1x32xf32, #tpu.memory_space<vmem>>, vector<1x1x32xf32>
    %69 = vector.shape_cast %68 : vector<1x1x32xf32> to vector<1x32xf32>
    %70 = vector.shape_cast %47 : vector<1x32xf32> to vector<1x1x32xf32>
    tpu.vector_store %arg5[%c0_40, %c0_41, %c0_42], %70 {strides = array<i32>} : memref<1x1x32xf32, #tpu.memory_space<vmem>>, vector<1x1x32xf32>,
    return
  }
  func.func @transform_0(%arg0: i32) -> (i32, i32, i32, i32) {
    %c0_i32 = arith.constant 0 : i32
    %c0_i32_0 = arith.constant 0 : i32
    %c0_i32_1 = arith.constant 0 : i32
    %c0_i32_2 = arith.constant 0 : i32
    return %arg0, %c0_i32, %c0_i32_0, %c0_i32_1 : i32, i32, i32, i32
  }
  func.func @transform_1(%arg0: i32) -> (i32, i32) {
    %c0_i32 = arith.constant 0 : i32
    %c0_i32_0 = arith.constant 0 : i32
    %c0_i32_1 = arith.constant 0 : i32
    return %c0_i32, %c0_i32_0 : i32, i32
  }
  func.func @transform_2(%arg0: i32) -> (i32, i32, i32, i32) {
    %c0_i32 = arith.constant 0 : i32
    %c0_i32_0 = arith.constant 0 : i32
    %c0_i32_1 = arith.constant 0 : i32
    %c0_i32_2 = arith.constant 0 : i32
    return %arg0, %c0_i32, %c0_i32_0, %c0_i32_1 : i32, i32, i32, i32
  }
  func.func @transform_3(%arg0: i32) -> (i32, i32, i32) {
    %c0_i32 = arith.constant 0 : i32
    %c0_i32_0 = arith.constant 0 : i32
    %c0_i32_1 = arith.constant 0 : i32
    return %arg0, %c0_i32, %c0_i32_0 : i32, i32, i32
  }
  func.func @transform_4(%arg0: i32) -> (i32, i32, i32) {
    %c0_i32 = arith.constant 0 : i32
    %c0_i32_0 = arith.constant 0 : i32
    %c0_i32_1 = arith.constant 0 : i32
    return %arg0, %c0_i32, %c0_i32_0 : i32, i32, i32
  }
}

module attributes {stable_mosaic.version = 11 : i64} {
  func.func @kernel(%arg0: i32, %arg1: memref<1x4x4x32xbf16, #tpu.memory_space<vmem>>, %arg2: memref<512x64xbf16, #tpu.memory_space<vmem>>, %arg3: memref<1x32xf32, #tpu.memory_space<vmem>>, %arg4: memref<1x32xf32, #tpu.memory_space<vmem>>, %arg5: memref<1x3x3x64xbf16, #tpu.memory_space<vmem>>, %arg6: memref<1x1x64xf32, #tpu.memory_space<vmem>>, %arg7: memref<1x1x64xf32, #tpu.memory_space<vmem>>) attributes {dimension_semantics = [#tpu.dimension_semantics<parallel>], iteration_bounds = array<i64: 2>, scalar_prefetch = 0 : i64, scratch_operands = 0 : i64, tpu.core_type = #tpu.core_type<tc>, window_params = [{transform_indices = @transform_0, window_bounds = array<i64: 1, 4, 4, 32>}, {pipeline_mode = #tpu.pipeline_mode<synchronous>, transform_indices = @transform_1, window_bounds = array<i64: 512, 64>}, {pipeline_mode = #tpu.pipeline_mode<synchronous>, transform_indices = @transform_2, window_bounds = array<i64: 1, 32>}, {pipeline_mode = #tpu.pipeline_mode<synchronous>, transform_indices = @transform_3, window_bounds = array<i64: 1, 32>}, {transform_indices = @transform_4, window_bounds = array<i64: 1, 3, 3, 64>}, {transform_indices = @transform_5, window_bounds = array<i64: 1, 1, 64>}, {transform_indices = @transform_6, window_bounds = array<i64: 1, 1, 64>}]} {
    %c0 = arith.constant 0 : index
    %c0_0 = arith.constant 0 : index
    %c0_1 = arith.constant 0 : index
    %c0_2 = arith.constant 0 : index
    %0 = vector.load %arg1[%c0, %c0_0, %c0_1, %c0_2] : memref<1x4x4x32xbf16, #tpu.memory_space<vmem>>, vector<1x4x4x32xbf16>
    %1 = vector.shape_cast %0 : vector<1x4x4x32xbf16> to vector<4x4x32xbf16>
    %2 = arith.extf %1 : vector<4x4x32xbf16> to vector<4x4x32xf32>
    %c0_3 = arith.constant 0 : index
    %c0_4 = arith.constant 0 : index
    %3 = vector.load %arg3[%c0_3, %c0_4] : memref<1x32xf32, #tpu.memory_space<vmem>>, vector<1x32xf32>
    %4 = vector.shape_cast %3 : vector<1x32xf32> to vector<1x1x32xf32>
    %5 = vector.broadcast %4 : vector<1x1x32xf32> to vector<4x4x32xf32>
    %6 = arith.mulf %2, %5 : vector<4x4x32xf32>
    %c0_5 = arith.constant 0 : index
    %c0_6 = arith.constant 0 : index
    %7 = vector.load %arg4[%c0_5, %c0_6] : memref<1x32xf32, #tpu.memory_space<vmem>>, vector<1x32xf32>
    %8 = vector.shape_cast %7 : vector<1x32xf32> to vector<1x1x32xf32>
    %9 = vector.broadcast %8 : vector<1x1x32xf32> to vector<4x4x32xf32>
    %10 = arith.addf %6, %9 : vector<4x4x32xf32>
    %cst = arith.constant 2.000000e-01 : f32
    %11 = vector.broadcast %cst : f32 to vector<4x4x32xf32>
    %12 = arith.mulf %11, %10 : vector<4x4x32xf32>
    %13 = arith.maximumf %10, %12 : vector<4x4x32xf32>
    %cst_7 = arith.constant 0.000000e+00 : f32
    %14 = vector.broadcast %cst_7 : f32 to vector<1x4x32xf32>
    %15 = tpu.concatenate %14, %13, %14 in 0 : vector<1x4x32xf32>, vector<4x4x32xf32>, vector<1x4x32xf32> -> vector<6x4x32xf32>
    %cst_8 = arith.constant 0.000000e+00 : f32
    %16 = vector.broadcast %cst_8 : f32 to vector<6x1x32xf32>
    %17 = tpu.concatenate %16, %15, %16 in 1 : vector<6x1x32xf32>, vector<6x4x32xf32>, vector<6x1x32xf32> -> vector<6x6x32xf32>
    %cst_9 = arith.constant 0.000000e+00 : f32
    %18 = vector.broadcast %cst_9 : f32 to vector<1x64xf32>
    %cst_10 = arith.constant 0.000000e+00 : f32
    %19 = vector.broadcast %cst_10 : f32 to vector<1x64xf32>
    %20 = vector.extract_strided_slice %17 {offsets = [0, 0, 0], sizes = [1, 6, 32], strides = [1, 1, 1]} : vector<6x6x32xf32> to vector<1x6x32xf32>
    %21 = vector.shape_cast %20 : vector<1x6x32xf32> to vector<6x32xf32>
    %22 = vector.extract_strided_slice %17 {offsets = [1, 0, 0], sizes = [1, 6, 32], strides = [1, 1, 1]} : vector<6x6x32xf32> to vector<1x6x32xf32>
    %23 = vector.shape_cast %22 : vector<1x6x32xf32> to vector<6x32xf32>
    %24 = vector.extract_strided_slice %17 {offsets = [2, 0, 0], sizes = [1, 6, 32], strides = [1, 1, 1]} : vector<6x6x32xf32> to vector<1x6x32xf32>
    %25 = vector.shape_cast %24 : vector<1x6x32xf32> to vector<6x32xf32>
    %26 = vector.extract_strided_slice %17 {offsets = [3, 0, 0], sizes = [1, 6, 32], strides = [1, 1, 1]} : vector<6x6x32xf32> to vector<1x6x32xf32>
    %27 = vector.shape_cast %26 : vector<1x6x32xf32> to vector<6x32xf32>
    %28 = vector.extract_strided_slice %17 {offsets = [4, 0, 0], sizes = [1, 6, 32], strides = [1, 1, 1]} : vector<6x6x32xf32> to vector<1x6x32xf32>
    %29 = vector.shape_cast %28 : vector<1x6x32xf32> to vector<6x32xf32>
    %30 = vector.extract_strided_slice %17 {offsets = [5, 0, 0], sizes = [1, 6, 32], strides = [1, 1, 1]} : vector<6x6x32xf32> to vector<1x6x32xf32>
    %31 = vector.shape_cast %30 : vector<1x6x32xf32> to vector<6x32xf32>
    %32 = vector.extract_strided_slice %21 {offsets = [0, 0], sizes = [3, 32], strides = [1, 1]} : vector<6x32xf32> to vector<3x32xf32>
    %33 = vector.extract_strided_slice %21 {offsets = [1, 0], sizes = [3, 32], strides = [1, 1]} : vector<6x32xf32> to vector<3x32xf32>
    %34 = vector.extract_strided_slice %21 {offsets = [2, 0], sizes = [3, 32], strides = [1, 1]} : vector<6x32xf32> to vector<3x32xf32>
    %35 = vector.extract_strided_slice %21 {offsets = [3, 0], sizes = [3, 32], strides = [1, 1]} : vector<6x32xf32> to vector<3x32xf32>
    %36 = vector.extract_strided_slice %23 {offsets = [0, 0], sizes = [3, 32], strides = [1, 1]} : vector<6x32xf32> to vector<3x32xf32>
    %37 = vector.extract_strided_slice %23 {offsets = [1, 0], sizes = [3, 32], strides = [1, 1]} : vector<6x32xf32> to vector<3x32xf32>
    %38 = vector.extract_strided_slice %23 {offsets = [2, 0], sizes = [3, 32], strides = [1, 1]} : vector<6x32xf32> to vector<3x32xf32>
    %39 = vector.extract_strided_slice %23 {offsets = [3, 0], sizes = [3, 32], strides = [1, 1]} : vector<6x32xf32> to vector<3x32xf32>
    %40 = vector.extract_strided_slice %25 {offsets = [0, 0], sizes = [3, 32], strides = [1, 1]} : vector<6x32xf32> to vector<3x32xf32>
    %41 = vector.extract_strided_slice %25 {offsets = [1, 0], sizes = [3, 32], strides = [1, 1]} : vector<6x32xf32> to vector<3x32xf32>
    %42 = vector.extract_strided_slice %25 {offsets = [2, 0], sizes = [3, 32], strides = [1, 1]} : vector<6x32xf32> to vector<3x32xf32>
    %43 = vector.extract_strided_slice %25 {offsets = [3, 0], sizes = [3, 32], strides = [1, 1]} : vector<6x32xf32> to vector<3x32xf32>
    %44 = vector.extract_strided_slice %27 {offsets = [0, 0], sizes = [3, 32], strides = [1, 1]} : vector<6x32xf32> to vector<3x32xf32>
    %45 = vector.extract_strided_slice %27 {offsets = [1, 0], sizes = [3, 32], strides = [1, 1]} : vector<6x32xf32> to vector<3x32xf32>
    %46 = vector.extract_strided_slice %27 {offsets = [2, 0], sizes = [3, 32], strides = [1, 1]} : vector<6x32xf32> to vector<3x32xf32>
    %47 = vector.extract_strided_slice %27 {offsets = [3, 0], sizes = [3, 32], strides = [1, 1]} : vector<6x32xf32> to vector<3x32xf32>
    %48 = tpu.concatenate %32, %33, %34, %35, %36, %37, %38, %39, %40, %41, %42, %43, %44, %45, %46, %47 in 1 : vector<3x32xf32>, vector<3x32xf32>, vector<3x32xf32>, vector<3x32xf32>, vector<3x32xf32>, vector<3x32xf32>, vector<3x32xf32>, vector<3x32xf32>, vector<3x32xf32>, vector<3x32xf32>, vector<3x32xf32>, vector<3x32xf32>, vector<3x32xf32>, vector<3x32xf32>, vector<3x32xf32>, vector<3x32xf32> -> vector<3x512xf32>
    %49 = vector.extract_strided_slice %23 {offsets = [0, 0], sizes = [3, 32], strides = [1, 1]} : vector<6x32xf32> to vector<3x32xf32>
    %50 = vector.extract_strided_slice %23 {offsets = [1, 0], sizes = [3, 32], strides = [1, 1]} : vector<6x32xf32> to vector<3x32xf32>
    %51 = vector.extract_strided_slice %23 {offsets = [2, 0], sizes = [3, 32], strides = [1, 1]} : vector<6x32xf32> to vector<3x32xf32>
    %52 = vector.extract_strided_slice %23 {offsets = [3, 0], sizes = [3, 32], strides = [1, 1]} : vector<6x32xf32> to vector<3x32xf32>
    %53 = vector.extract_strided_slice %25 {offsets = [0, 0], sizes = [3, 32], strides = [1, 1]} : vector<6x32xf32> to vector<3x32xf32>
    %54 = vector.extract_strided_slice %25 {offsets = [1, 0], sizes = [3, 32], strides = [1, 1]} : vector<6x32xf32> to vector<3x32xf32>
    %55 = vector.extract_strided_slice %25 {offsets = [2, 0], sizes = [3, 32], strides = [1, 1]} : vector<6x32xf32> to vector<3x32xf32>
    %56 = vector.extract_strided_slice %25 {offsets = [3, 0], sizes = [3, 32], strides = [1, 1]} : vector<6x32xf32> to vector<3x32xf32>
    %57 = vector.extract_strided_slice %27 {offsets = [0, 0], sizes = [3, 32], strides = [1, 1]} : vector<6x32xf32> to vector<3x32xf32>
    %58 = vector.extract_strided_slice %27 {offsets = [1, 0], sizes = [3, 32], strides = [1, 1]} : vector<6x32xf32> to vector<3x32xf32>
    %59 = vector.extract_strided_slice %27 {offsets = [2, 0], sizes = [3, 32], strides = [1, 1]} : vector<6x32xf32> to vector<3x32xf32>
    %60 = vector.extract_strided_slice %27 {offsets = [3, 0], sizes = [3, 32], strides = [1, 1]} : vector<6x32xf32> to vector<3x32xf32>
    %61 = vector.extract_strided_slice %29 {offsets = [0, 0], sizes = [3, 32], strides = [1, 1]} : vector<6x32xf32> to vector<3x32xf32>
    %62 = vector.extract_strided_slice %29 {offsets = [1, 0], sizes = [3, 32], strides = [1, 1]} : vector<6x32xf32> to vector<3x32xf32>
    %63 = vector.extract_strided_slice %29 {offsets = [2, 0], sizes = [3, 32], strides = [1, 1]} : vector<6x32xf32> to vector<3x32xf32>
    %64 = vector.extract_strided_slice %29 {offsets = [3, 0], sizes = [3, 32], strides = [1, 1]} : vector<6x32xf32> to vector<3x32xf32>
    %65 = tpu.concatenate %49, %50, %51, %52, %53, %54, %55, %56, %57, %58, %59, %60, %61, %62, %63, %64 in 1 : vector<3x32xf32>, vector<3x32xf32>, vector<3x32xf32>, vector<3x32xf32>, vector<3x32xf32>, vector<3x32xf32>, vector<3x32xf32>, vector<3x32xf32>, vector<3x32xf32>, vector<3x32xf32>, vector<3x32xf32>, vector<3x32xf32>, vector<3x32xf32>, vector<3x32xf32>, vector<3x32xf32>, vector<3x32xf32> -> vector<3x512xf32>
    %66 = vector.extract_strided_slice %25 {offsets = [0, 0], sizes = [3, 32], strides = [1, 1]} : vector<6x32xf32> to vector<3x32xf32>
    %67 = vector.extract_strided_slice %25 {offsets = [1, 0], sizes = [3, 32], strides = [1, 1]} : vector<6x32xf32> to vector<3x32xf32>
    %68 = vector.extract_strided_slice %25 {offsets = [2, 0], sizes = [3, 32], strides = [1, 1]} : vector<6x32xf32> to vector<3x32xf32>
    %69 = vector.extract_strided_slice %25 {offsets = [3, 0], sizes = [3, 32], strides = [1, 1]} : vector<6x32xf32> to vector<3x32xf32>
    %70 = vector.extract_strided_slice %27 {offsets = [0, 0], sizes = [3, 32], strides = [1, 1]} : vector<6x32xf32> to vector<3x32xf32>
    %71 = vector.extract_strided_slice %27 {offsets = [1, 0], sizes = [3, 32], strides = [1, 1]} : vector<6x32xf32> to vector<3x32xf32>
    %72 = vector.extract_strided_slice %27 {offsets = [2, 0], sizes = [3, 32], strides = [1, 1]} : vector<6x32xf32> to vector<3x32xf32>
    %73 = vector.extract_strided_slice %27 {offsets = [3, 0], sizes = [3, 32], strides = [1, 1]} : vector<6x32xf32> to vector<3x32xf32>
    %74 = vector.extract_strided_slice %29 {offsets = [0, 0], sizes = [3, 32], strides = [1, 1]} : vector<6x32xf32> to vector<3x32xf32>
    %75 = vector.extract_strided_slice %29 {offsets = [1, 0], sizes = [3, 32], strides = [1, 1]} : vector<6x32xf32> to vector<3x32xf32>
    %76 = vector.extract_strided_slice %29 {offsets = [2, 0], sizes = [3, 32], strides = [1, 1]} : vector<6x32xf32> to vector<3x32xf32>
    %77 = vector.extract_strided_slice %29 {offsets = [3, 0], sizes = [3, 32], strides = [1, 1]} : vector<6x32xf32> to vector<3x32xf32>
    %78 = vector.extract_strided_slice %31 {offsets = [0, 0], sizes = [3, 32], strides = [1, 1]} : vector<6x32xf32> to vector<3x32xf32>
    %79 = vector.extract_strided_slice %31 {offsets = [1, 0], sizes = [3, 32], strides = [1, 1]} : vector<6x32xf32> to vector<3x32xf32>
    %80 = vector.extract_strided_slice %31 {offsets = [2, 0], sizes = [3, 32], strides = [1, 1]} : vector<6x32xf32> to vector<3x32xf32>
    %81 = vector.extract_strided_slice %31 {offsets = [3, 0], sizes = [3, 32], strides = [1, 1]} : vector<6x32xf32> to vector<3x32xf32>
    %82 = tpu.concatenate %66, %67, %68, %69, %70, %71, %72, %73, %74, %75, %76, %77, %78, %79, %80, %81 in 1 : vector<3x32xf32>, vector<3x32xf32>, vector<3x32xf32>, vector<3x32xf32>, vector<3x32xf32>, vector<3x32xf32>, vector<3x32xf32>, vector<3x32xf32>, vector<3x32xf32>, vector<3x32xf32>, vector<3x32xf32>, vector<3x32xf32>, vector<3x32xf32>, vector<3x32xf32>, vector<3x32xf32>, vector<3x32xf32> -> vector<3x512xf32>
    %83 = tpu.concatenate %48, %65, %82 in 0 : vector<3x512xf32>, vector<3x512xf32>, vector<3x512xf32> -> vector<9x512xf32>
    %84 = arith.truncf %83 : vector<9x512xf32> to vector<9x512xbf16>
    %c0_11 = arith.constant 0 : index
    %c0_12 = arith.constant 0 : index
    %85 = vector.load %arg2[%c0_11, %c0_12] : memref<512x64xbf16, #tpu.memory_space<vmem>>, vector<512x64xbf16>
    %cst_13 = arith.constant dense<0.000000e+00> : vector<9x64xf32>
    %86 = tpu.matmul %84, %85, %cst_13 {dimension_numbers = #tpu.dot_dimension_numbers<[1], [0], [0], [1], [0, 0, 1, 1], [], []>} : vector<9x512xbf16>, vector<512x64xbf16>, vector<9x64xf32> -> vector<9x64xf32>
    %cst_14 = arith.constant dense<0.000000e+00> : vector<64xf32>
    %87 = vector.multi_reduction <add>, %86, %cst_14 [0] : vector<9x64xf32> to vector<64xf32>
    %88 = vector.shape_cast %87 : vector<64xf32> to vector<1x64xf32>
    %89 = arith.addf %18, %88 : vector<1x64xf32>
    %90 = arith.mulf %86, %86 : vector<9x64xf32>
    %cst_15 = arith.constant dense<0.000000e+00> : vector<64xf32>
    %91 = vector.multi_reduction <add>, %90, %cst_15 [0] : vector<9x64xf32> to vector<64xf32>
    %92 = vector.shape_cast %91 : vector<64xf32> to vector<1x64xf32>
    %93 = arith.addf %19, %92 : vector<1x64xf32>
    %94 = arith.truncf %86 : vector<9x64xf32> to vector<9x64xbf16>
    %95 = vector.extract_strided_slice %94 {offsets = [0, 0], sizes = [3, 64], strides = [1, 1]} : vector<9x64xbf16> to vector<3x64xbf16>
    %c0_16 = arith.constant 0 : index
    %c0_17 = arith.constant 0 : index
    %c0_18 = arith.constant 0 : index
    %c0_19 = arith.constant 0 : index
    %96 = vector.load %arg5[%c0_16, %c0_17, %c0_18, %c0_19] : memref<1x3x3x64xbf16, #tpu.memory_space<vmem>>, vector<1x1x3x64xbf16>
    %97 = vector.shape_cast %96 : vector<1x1x3x64xbf16> to vector<3x64xbf16>
    %98 = vector.shape_cast %95 : vector<3x64xbf16> to vector<1x1x3x64xbf16>
    tpu.vector_store %arg5[%c0_16, %c0_17, %c0_18, %c0_19], %98 {strides = array<i32>} : memref<1x3x3x64xbf16, #tpu.memory_space<vmem>>, vector<1x1x3x64xbf16>,
    %99 = vector.extract_strided_slice %94 {offsets = [3, 0], sizes = [3, 64], strides = [1, 1]} : vector<9x64xbf16> to vector<3x64xbf16>
    %c0_20 = arith.constant 0 : index
    %c1 = arith.constant 1 : index
    %c0_21 = arith.constant 0 : index
    %c0_22 = arith.constant 0 : index
    %100 = vector.load %arg5[%c0_20, %c1, %c0_21, %c0_22] : memref<1x3x3x64xbf16, #tpu.memory_space<vmem>>, vector<1x1x3x64xbf16>
    %101 = vector.shape_cast %100 : vector<1x1x3x64xbf16> to vector<3x64xbf16>
    %102 = vector.shape_cast %99 : vector<3x64xbf16> to vector<1x1x3x64xbf16>
    tpu.vector_store %arg5[%c0_20, %c1, %c0_21, %c0_22], %102 {strides = array<i32>} : memref<1x3x3x64xbf16, #tpu.memory_space<vmem>>, vector<1x1x3x64xbf16>,
    %103 = vector.extract_strided_slice %94 {offsets = [6, 0], sizes = [3, 64], strides = [1, 1]} : vector<9x64xbf16> to vector<3x64xbf16>
    %c0_23 = arith.constant 0 : index
    %c2 = arith.constant 2 : index
    %c0_24 = arith.constant 0 : index
    %c0_25 = arith.constant 0 : index
    %104 = vector.load %arg5[%c0_23, %c2, %c0_24, %c0_25] : memref<1x3x3x64xbf16, #tpu.memory_space<vmem>>, vector<1x1x3x64xbf16>
    %105 = vector.shape_cast %104 : vector<1x1x3x64xbf16> to vector<3x64xbf16>
    %106 = vector.shape_cast %103 : vector<3x64xbf16> to vector<1x1x3x64xbf16>
    tpu.vector_store %arg5[%c0_23, %c2, %c0_24, %c0_25], %106 {strides = array<i32>} : memref<1x3x3x64xbf16, #tpu.memory_space<vmem>>, vector<1x1x3x64xbf16>,
    %c0_26 = arith.constant 0 : index
    %c0_27 = arith.constant 0 : index
    %c0_28 = arith.constant 0 : index
    %107 = vector.load %arg6[%c0_26, %c0_27, %c0_28] : memref<1x1x64xf32, #tpu.memory_space<vmem>>, vector<1x1x64xf32>
    %108 = vector.shape_cast %107 : vector<1x1x64xf32> to vector<1x64xf32>
    %109 = vector.shape_cast %89 : vector<1x64xf32> to vector<1x1x64xf32>
    tpu.vector_store %arg6[%c0_26, %c0_27, %c0_28], %109 {strides = array<i32>} : memref<1x1x64xf32, #tpu.memory_space<vmem>>, vector<1x1x64xf32>,
    %c0_29 = arith.constant 0 : index
    %c0_30 = arith.constant 0 : index
    %c0_31 = arith.constant 0 : index
    %110 = vector.load %arg7[%c0_29, %c0_30, %c0_31] : memref<1x1x64xf32, #tpu.memory_space<vmem>>, vector<1x1x64xf32>
    %111 = vector.shape_cast %110 : vector<1x1x64xf32> to vector<1x64xf32>
    %112 = vector.shape_cast %93 : vector<1x64xf32> to vector<1x1x64xf32>
    tpu.vector_store %arg7[%c0_29, %c0_30, %c0_31], %112 {strides = array<i32>} : memref<1x1x64xf32, #tpu.memory_space<vmem>>, vector<1x1x64xf32>,
    return
  }
  func.func @transform_0(%arg0: i32) -> (i32, i32, i32, i32) {
    %c0_i32 = arith.constant 0 : i32
    %c0_i32_0 = arith.constant 0 : i32
    %c0_i32_1 = arith.constant 0 : i32
    %c0_i32_2 = arith.constant 0 : i32
    return %arg0, %c0_i32, %c0_i32_0, %c0_i32_1 : i32, i32, i32, i32
  }
  func.func @transform_1(%arg0: i32) -> (i32, i32) {
    %c0_i32 = arith.constant 0 : i32
    %c0_i32_0 = arith.constant 0 : i32
    %c0_i32_1 = arith.constant 0 : i32
    return %c0_i32, %c0_i32_0 : i32, i32
  }
  func.func @transform_2(%arg0: i32) -> (i32, i32) {
    %c0_i32 = arith.constant 0 : i32
    %c0_i32_0 = arith.constant 0 : i32
    %c0_i32_1 = arith.constant 0 : i32
    return %c0_i32, %c0_i32_0 : i32, i32
  }
  func.func @transform_3(%arg0: i32) -> (i32, i32) {
    %c0_i32 = arith.constant 0 : i32
    %c0_i32_0 = arith.constant 0 : i32
    %c0_i32_1 = arith.constant 0 : i32
    return %c0_i32, %c0_i32_0 : i32, i32
  }
  func.func @transform_4(%arg0: i32) -> (i32, i32, i32, i32) {
    %c0_i32 = arith.constant 0 : i32
    %c0_i32_0 = arith.constant 0 : i32
    %c0_i32_1 = arith.constant 0 : i32
    %c0_i32_2 = arith.constant 0 : i32
    return %arg0, %c0_i32, %c0_i32_0, %c0_i32_1 : i32, i32, i32, i32
  }
  func.func @transform_5(%arg0: i32) -> (i32, i32, i32) {
    %c0_i32 = arith.constant 0 : i32
    %c0_i32_0 = arith.constant 0 : i32
    %c0_i32_1 = arith.constant 0 : i32
    return %arg0, %c0_i32, %c0_i32_0 : i32, i32, i32
  }
  func.func @transform_6(%arg0: i32) -> (i32, i32, i32) {
    %c0_i32 = arith.constant 0 : i32
    %c0_i32_0 = arith.constant 0 : i32
    %c0_i32_1 = arith.constant 0 : i32
    return %arg0, %c0_i32, %c0_i32_0 : i32, i32, i32
  }
}

module attributes {stable_mosaic.version = 11 : i64} {
  func.func @kernel(%arg0: i32, %arg1: memref<1x3x3x64xbf16, #tpu.memory_space<vmem>>, %arg2: memref<1024x1xbf16, #tpu.memory_space<vmem>>, %arg3: memref<1x64xf32, #tpu.memory_space<vmem>>, %arg4: memref<1x64xf32, #tpu.memory_space<vmem>>, %arg5: memref<1x1xf32, #tpu.memory_space<vmem>>, %arg6: memref<1x2x2x1xf32, #tpu.memory_space<vmem>>) attributes {dimension_semantics = [#tpu.dimension_semantics<parallel>], iteration_bounds = array<i64: 2>, scalar_prefetch = 0 : i64, scratch_operands = 0 : i64, tpu.core_type = #tpu.core_type<tc>, window_params = [{transform_indices = @transform_0, window_bounds = array<i64: 1, 3, 3, 64>}, {pipeline_mode = #tpu.pipeline_mode<synchronous>, transform_indices = @transform_1, window_bounds = array<i64: 1024, 1>}, {pipeline_mode = #tpu.pipeline_mode<synchronous>, transform_indices = @transform_2, window_bounds = array<i64: 1, 64>}, {pipeline_mode = #tpu.pipeline_mode<synchronous>, transform_indices = @transform_3, window_bounds = array<i64: 1, 64>}, {pipeline_mode = #tpu.pipeline_mode<synchronous>, transform_indices = @transform_4, window_bounds = array<i64: 1, 1>}, {transform_indices = @transform_5, window_bounds = array<i64: 1, 2, 2, 1>}]} {
    %c0 = arith.constant 0 : index
    %c0_0 = arith.constant 0 : index
    %c0_1 = arith.constant 0 : index
    %c0_2 = arith.constant 0 : index
    %0 = vector.load %arg1[%c0, %c0_0, %c0_1, %c0_2] : memref<1x3x3x64xbf16, #tpu.memory_space<vmem>>, vector<1x3x3x64xbf16>
    %1 = vector.shape_cast %0 : vector<1x3x3x64xbf16> to vector<3x3x64xbf16>
    %2 = arith.extf %1 : vector<3x3x64xbf16> to vector<3x3x64xf32>
    %c0_3 = arith.constant 0 : index
    %c0_4 = arith.constant 0 : index
    %3 = vector.load %arg3[%c0_3, %c0_4] : memref<1x64xf32, #tpu.memory_space<vmem>>, vector<1x64xf32>
    %4 = vector.shape_cast %3 : vector<1x64xf32> to vector<1x1x64xf32>
    %5 = vector.broadcast %4 : vector<1x1x64xf32> to vector<3x3x64xf32>
    %6 = arith.mulf %2, %5 : vector<3x3x64xf32>
    %c0_5 = arith.constant 0 : index
    %c0_6 = arith.constant 0 : index
    %7 = vector.load %arg4[%c0_5, %c0_6] : memref<1x64xf32, #tpu.memory_space<vmem>>, vector<1x64xf32>
    %8 = vector.shape_cast %7 : vector<1x64xf32> to vector<1x1x64xf32>
    %9 = vector.broadcast %8 : vector<1x1x64xf32> to vector<3x3x64xf32>
    %10 = arith.addf %6, %9 : vector<3x3x64xf32>
    %cst = arith.constant 2.000000e-01 : f32
    %11 = vector.broadcast %cst : f32 to vector<3x3x64xf32>
    %12 = arith.mulf %11, %10 : vector<3x3x64xf32>
    %13 = arith.maximumf %10, %12 : vector<3x3x64xf32>
    %cst_7 = arith.constant 0.000000e+00 : f32
    %14 = vector.broadcast %cst_7 : f32 to vector<1x3x64xf32>
    %15 = tpu.concatenate %14, %13, %14 in 0 : vector<1x3x64xf32>, vector<3x3x64xf32>, vector<1x3x64xf32> -> vector<5x3x64xf32>
    %cst_8 = arith.constant 0.000000e+00 : f32
    %16 = vector.broadcast %cst_8 : f32 to vector<5x1x64xf32>
    %17 = tpu.concatenate %16, %15, %16 in 1 : vector<5x1x64xf32>, vector<5x3x64xf32>, vector<5x1x64xf32> -> vector<5x5x64xf32>
    %c0_9 = arith.constant 0 : index
    %c0_10 = arith.constant 0 : index
    %18 = vector.load %arg5[%c0_9, %c0_10] : memref<1x1xf32, #tpu.memory_space<vmem>>, vector<1x1xf32>
    %19 = vector.extract_strided_slice %17 {offsets = [0, 0, 0], sizes = [1, 5, 64], strides = [1, 1, 1]} : vector<5x5x64xf32> to vector<1x5x64xf32>
    %20 = vector.shape_cast %19 : vector<1x5x64xf32> to vector<5x64xf32>
    %21 = vector.extract_strided_slice %17 {offsets = [1, 0, 0], sizes = [1, 5, 64], strides = [1, 1, 1]} : vector<5x5x64xf32> to vector<1x5x64xf32>
    %22 = vector.shape_cast %21 : vector<1x5x64xf32> to vector<5x64xf32>
    %23 = vector.extract_strided_slice %17 {offsets = [2, 0, 0], sizes = [1, 5, 64], strides = [1, 1, 1]} : vector<5x5x64xf32> to vector<1x5x64xf32>
    %24 = vector.shape_cast %23 : vector<1x5x64xf32> to vector<5x64xf32>
    %25 = vector.extract_strided_slice %17 {offsets = [3, 0, 0], sizes = [1, 5, 64], strides = [1, 1, 1]} : vector<5x5x64xf32> to vector<1x5x64xf32>
    %26 = vector.shape_cast %25 : vector<1x5x64xf32> to vector<5x64xf32>
    %27 = vector.extract_strided_slice %17 {offsets = [4, 0, 0], sizes = [1, 5, 64], strides = [1, 1, 1]} : vector<5x5x64xf32> to vector<1x5x64xf32>
    %28 = vector.shape_cast %27 : vector<1x5x64xf32> to vector<5x64xf32>
    %29 = vector.extract_strided_slice %20 {offsets = [0, 0], sizes = [2, 64], strides = [1, 1]} : vector<5x64xf32> to vector<2x64xf32>
    %30 = vector.extract_strided_slice %20 {offsets = [1, 0], sizes = [2, 64], strides = [1, 1]} : vector<5x64xf32> to vector<2x64xf32>
    %31 = vector.extract_strided_slice %20 {offsets = [2, 0], sizes = [2, 64], strides = [1, 1]} : vector<5x64xf32> to vector<2x64xf32>
    %32 = vector.extract_strided_slice %20 {offsets = [3, 0], sizes = [2, 64], strides = [1, 1]} : vector<5x64xf32> to vector<2x64xf32>
    %33 = vector.extract_strided_slice %22 {offsets = [0, 0], sizes = [2, 64], strides = [1, 1]} : vector<5x64xf32> to vector<2x64xf32>
    %34 = vector.extract_strided_slice %22 {offsets = [1, 0], sizes = [2, 64], strides = [1, 1]} : vector<5x64xf32> to vector<2x64xf32>
    %35 = vector.extract_strided_slice %22 {offsets = [2, 0], sizes = [2, 64], strides = [1, 1]} : vector<5x64xf32> to vector<2x64xf32>
    %36 = vector.extract_strided_slice %22 {offsets = [3, 0], sizes = [2, 64], strides = [1, 1]} : vector<5x64xf32> to vector<2x64xf32>
    %37 = vector.extract_strided_slice %24 {offsets = [0, 0], sizes = [2, 64], strides = [1, 1]} : vector<5x64xf32> to vector<2x64xf32>
    %38 = vector.extract_strided_slice %24 {offsets = [1, 0], sizes = [2, 64], strides = [1, 1]} : vector<5x64xf32> to vector<2x64xf32>
    %39 = vector.extract_strided_slice %24 {offsets = [2, 0], sizes = [2, 64], strides = [1, 1]} : vector<5x64xf32> to vector<2x64xf32>
    %40 = vector.extract_strided_slice %24 {offsets = [3, 0], sizes = [2, 64], strides = [1, 1]} : vector<5x64xf32> to vector<2x64xf32>
    %41 = vector.extract_strided_slice %26 {offsets = [0, 0], sizes = [2, 64], strides = [1, 1]} : vector<5x64xf32> to vector<2x64xf32>
    %42 = vector.extract_strided_slice %26 {offsets = [1, 0], sizes = [2, 64], strides = [1, 1]} : vector<5x64xf32> to vector<2x64xf32>
    %43 = vector.extract_strided_slice %26 {offsets = [2, 0], sizes = [2, 64], strides = [1, 1]} : vector<5x64xf32> to vector<2x64xf32>
    %44 = vector.extract_strided_slice %26 {offsets = [3, 0], sizes = [2, 64], strides = [1, 1]} : vector<5x64xf32> to vector<2x64xf32>
    %45 = tpu.concatenate %29, %30, %31, %32, %33, %34, %35, %36, %37, %38, %39, %40, %41, %42, %43, %44 in 1 : vector<2x64xf32>, vector<2x64xf32>, vector<2x64xf32>, vector<2x64xf32>, vector<2x64xf32>, vector<2x64xf32>, vector<2x64xf32>, vector<2x64xf32>, vector<2x64xf32>, vector<2x64xf32>, vector<2x64xf32>, vector<2x64xf32>, vector<2x64xf32>, vector<2x64xf32>, vector<2x64xf32>, vector<2x64xf32> -> vector<2x1024xf32>
    %46 = vector.extract_strided_slice %22 {offsets = [0, 0], sizes = [2, 64], strides = [1, 1]} : vector<5x64xf32> to vector<2x64xf32>
    %47 = vector.extract_strided_slice %22 {offsets = [1, 0], sizes = [2, 64], strides = [1, 1]} : vector<5x64xf32> to vector<2x64xf32>
    %48 = vector.extract_strided_slice %22 {offsets = [2, 0], sizes = [2, 64], strides = [1, 1]} : vector<5x64xf32> to vector<2x64xf32>
    %49 = vector.extract_strided_slice %22 {offsets = [3, 0], sizes = [2, 64], strides = [1, 1]} : vector<5x64xf32> to vector<2x64xf32>
    %50 = vector.extract_strided_slice %24 {offsets = [0, 0], sizes = [2, 64], strides = [1, 1]} : vector<5x64xf32> to vector<2x64xf32>
    %51 = vector.extract_strided_slice %24 {offsets = [1, 0], sizes = [2, 64], strides = [1, 1]} : vector<5x64xf32> to vector<2x64xf32>
    %52 = vector.extract_strided_slice %24 {offsets = [2, 0], sizes = [2, 64], strides = [1, 1]} : vector<5x64xf32> to vector<2x64xf32>
    %53 = vector.extract_strided_slice %24 {offsets = [3, 0], sizes = [2, 64], strides = [1, 1]} : vector<5x64xf32> to vector<2x64xf32>
    %54 = vector.extract_strided_slice %26 {offsets = [0, 0], sizes = [2, 64], strides = [1, 1]} : vector<5x64xf32> to vector<2x64xf32>
    %55 = vector.extract_strided_slice %26 {offsets = [1, 0], sizes = [2, 64], strides = [1, 1]} : vector<5x64xf32> to vector<2x64xf32>
    %56 = vector.extract_strided_slice %26 {offsets = [2, 0], sizes = [2, 64], strides = [1, 1]} : vector<5x64xf32> to vector<2x64xf32>
    %57 = vector.extract_strided_slice %26 {offsets = [3, 0], sizes = [2, 64], strides = [1, 1]} : vector<5x64xf32> to vector<2x64xf32>
    %58 = vector.extract_strided_slice %28 {offsets = [0, 0], sizes = [2, 64], strides = [1, 1]} : vector<5x64xf32> to vector<2x64xf32>
    %59 = vector.extract_strided_slice %28 {offsets = [1, 0], sizes = [2, 64], strides = [1, 1]} : vector<5x64xf32> to vector<2x64xf32>
    %60 = vector.extract_strided_slice %28 {offsets = [2, 0], sizes = [2, 64], strides = [1, 1]} : vector<5x64xf32> to vector<2x64xf32>
    %61 = vector.extract_strided_slice %28 {offsets = [3, 0], sizes = [2, 64], strides = [1, 1]} : vector<5x64xf32> to vector<2x64xf32>
    %62 = tpu.concatenate %46, %47, %48, %49, %50, %51, %52, %53, %54, %55, %56, %57, %58, %59, %60, %61 in 1 : vector<2x64xf32>, vector<2x64xf32>, vector<2x64xf32>, vector<2x64xf32>, vector<2x64xf32>, vector<2x64xf32>, vector<2x64xf32>, vector<2x64xf32>, vector<2x64xf32>, vector<2x64xf32>, vector<2x64xf32>, vector<2x64xf32>, vector<2x64xf32>, vector<2x64xf32>, vector<2x64xf32>, vector<2x64xf32> -> vector<2x1024xf32>
    %63 = tpu.concatenate %45, %62 in 0 : vector<2x1024xf32>, vector<2x1024xf32> -> vector<4x1024xf32>
    %64 = arith.truncf %63 : vector<4x1024xf32> to vector<4x1024xbf16>
    %c0_11 = arith.constant 0 : index
    %c0_12 = arith.constant 0 : index
    %65 = vector.load %arg2[%c0_11, %c0_12] : memref<1024x1xbf16, #tpu.memory_space<vmem>>, vector<1024x1xbf16>
    %cst_13 = arith.constant dense<0.000000e+00> : vector<4x1xf32>
    %66 = tpu.matmul %64, %65, %cst_13 {dimension_numbers = #tpu.dot_dimension_numbers<[1], [0], [0], [1], [0, 0, 1, 1], [], []>} : vector<4x1024xbf16>, vector<1024x1xbf16>, vector<4x1xf32> -> vector<4x1xf32>
    %67 = vector.broadcast %18 : vector<1x1xf32> to vector<4x1xf32>
    %68 = arith.addf %66, %67 : vector<4x1xf32>
    %69 = vector.extract_strided_slice %68 {offsets = [0, 0], sizes = [2, 1], strides = [1, 1]} : vector<4x1xf32> to vector<2x1xf32>
    %c0_14 = arith.constant 0 : index
    %c0_15 = arith.constant 0 : index
    %c0_16 = arith.constant 0 : index
    %c0_17 = arith.constant 0 : index
    %70 = vector.load %arg6[%c0_14, %c0_15, %c0_16, %c0_17] : memref<1x2x2x1xf32, #tpu.memory_space<vmem>>, vector<1x1x2x1xf32>
    %71 = vector.shape_cast %70 : vector<1x1x2x1xf32> to vector<2x1xf32>
    %72 = vector.shape_cast %69 : vector<2x1xf32> to vector<1x1x2x1xf32>
    tpu.vector_store %arg6[%c0_14, %c0_15, %c0_16, %c0_17], %72 {strides = array<i32>} : memref<1x2x2x1xf32, #tpu.memory_space<vmem>>, vector<1x1x2x1xf32>,
    %73 = vector.extract_strided_slice %68 {offsets = [2, 0], sizes = [2, 1], strides = [1, 1]} : vector<4x1xf32> to vector<2x1xf32>
    %c0_18 = arith.constant 0 : index
    %c1 = arith.constant 1 : index
    %c0_19 = arith.constant 0 : index
    %c0_20 = arith.constant 0 : index
    %74 = vector.load %arg6[%c0_18, %c1, %c0_19, %c0_20] : memref<1x2x2x1xf32, #tpu.memory_space<vmem>>, vector<1x1x2x1xf32>
    %75 = vector.shape_cast %74 : vector<1x1x2x1xf32> to vector<2x1xf32>
    %76 = vector.shape_cast %73 : vector<2x1xf32> to vector<1x1x2x1xf32>
    tpu.vector_store %arg6[%c0_18, %c1, %c0_19, %c0_20], %76 {strides = array<i32>} : memref<1x2x2x1xf32, #tpu.memory_space<vmem>>, vector<1x1x2x1xf32>,
    return
  }
  func.func @transform_0(%arg0: i32) -> (i32, i32, i32, i32) {
    %c0_i32 = arith.constant 0 : i32
    %c0_i32_0 = arith.constant 0 : i32
    %c0_i32_1 = arith.constant 0 : i32
    %c0_i32_2 = arith.constant 0 : i32
    return %arg0, %c0_i32, %c0_i32_0, %c0_i32_1 : i32, i32, i32, i32
  }
  func.func @transform_1(%arg0: i32) -> (i32, i32) {
    %c0_i32 = arith.constant 0 : i32
    %c0_i32_0 = arith.constant 0 : i32
    %c0_i32_1 = arith.constant 0 : i32
    return %c0_i32, %c0_i32_0 : i32, i32
  }
  func.func @transform_2(%arg0: i32) -> (i32, i32) {
    %c0_i32 = arith.constant 0 : i32
    %c0_i32_0 = arith.constant 0 : i32
    %c0_i32_1 = arith.constant 0 : i32
    return %c0_i32, %c0_i32_0 : i32, i32
  }
  func.func @transform_3(%arg0: i32) -> (i32, i32) {
    %c0_i32 = arith.constant 0 : i32
    %c0_i32_0 = arith.constant 0 : i32
    %c0_i32_1 = arith.constant 0 : i32
    return %c0_i32, %c0_i32_0 : i32, i32
  }
  func.func @transform_4(%arg0: i32) -> (i32, i32) {
    %c0_i32 = arith.constant 0 : i32
    %c0_i32_0 = arith.constant 0 : i32
    %c0_i32_1 = arith.constant 0 : i32
    return %c0_i32, %c0_i32_0 : i32, i32
  }
  func.func @transform_5(%arg0: i32) -> (i32, i32, i32, i32) {
    %c0_i32 = arith.constant 0 : i32
    %c0_i32_0 = arith.constant 0 : i32
    %c0_i32_1 = arith.constant 0 : i32
    %c0_i32_2 = arith.constant 0 : i32
    return %arg0, %c0_i32, %c0_i32_0, %c0_i32_1 : i32, i32, i32, i32
  }
}

</mosaic_0001>

<bundles_post_ra>
// kernel: nlayer_discriminator_forward.5
= control target key start
LH: loop header
LB: loop body
LE: loop exit
PB: predicated region body
PF: predicated region fallthrough
CT: control target
= control target key end

     0   :  { %s2020_s12 = smov 0   ;;  %s2600_s0 = inlined_call_operand.vmem [shape: bf16[2,17,17,12], index: 0, kind: input, shape index: {}]   ;;  %s2601_s1 = inlined_call_operand.vmem [shape: bf16[48,8], index: 1, kind: input, shape index: {}]   ;;  %s2602_s2 = inlined_call_operand.vmem [shape: f32[1,8], index: 2, kind: input, shape index: {}]   ;;  %s2603_s3 = inlined_call_operand.vmem [shape: bf16[2,16,16,8], index: 3, kind: output, shape index: {}]  }
   0x1 LB: > { %s1437_s13 = sadd.s32 4294967295, %s1995_s12   ;;  %p1441_p0 = scmp.ge.s32.totalorder %s1995_s12, 1  ;;  %s1995_s12 = sphi %s2020_s12, %s13_s12  }
   0x2   : > { %p137_p1 = scmp.lt.s32.totalorder %s1995_s12, 3 }
   0x4   : > { %p138_p2 = pnand %p1441_p0, %p137_p1 }
   0x5   : > { %p161_p3 = scmp.lt.s32.totalorder (!%p138_p2), %s1437_s13, 1  ;;  %vm238_vm0 = vcmask (!%p138_p2), 1046528   ;;  %s1997_s18 = smov (!%p138_p2), 24   ;;  %v1983_v55 = vld [vmem:[%s2601_s1] sm:$0xff] (!%p138_p2)   ;;  %v1985_v59 = vld [vmem:[%s2601_s1 + $0x8] sm:$0xff] (!%p138_p2)   ;;  %vm270_vm1 = vcmask (!%p138_p2), 97280  }
   0x6   : > { %141 = sbr.rel (%p138_p2) target bundleno = 459 (0x1cb), region = 32  ;;  %s1998_s19 = smov (!%p138_p2), 12   ;;  %v1984_v58 = vld [vmem:[%s2601_s1] sm:$0xff] (!%p138_p2)   ;;  %v1986_v60 = vld [vmem:[%s2601_s1 + $0x8] sm:$0xff] (!%p138_p2)   ;;  %1687 = vmatprep.subr.bf16.mxu0 (!%p138_p2), %v1983_v55  ;;  %vm273_vm2 = vcmask (!%p138_p2), 195584   ;;  %vm276_vm3 = vcmask (!%p138_p2), 293888  }
   0x7   : > { %1709 = vmatprep.subr.bf16.mxu1 (!%p138_p2), %v1984_v58  ;;  %1688 = vmatpush3.bf16.msra.mxu0 (!%p138_p2), %v1983_v55  ;;  %s1999_s5 = smov (!%p138_p2), 36   ;;  %vm541_vm4 = vcmask (!%p138_p2), 392192   ;;  %vm710_vm5 = vcmask (!%p138_p2), 60416  }
   0x8   : > { %1710 = vmatpush3.bf16.msra.mxu1 (!%p138_p2), %v1984_v58  ;;  %1689 = vmatprep.subr.bf16.mxu0 (!%p138_p2), %v1985_v59 }
   0x9   : > { %1711 = vmatprep.subr.bf16.mxu1 (!%p138_p2), %v1986_v60 }
   0xb   : > { %1690 = vmatpush3.bf16.msra.mxu0 (!%p138_p2), %v1985_v59 }
   0xc   : > { %1712 = vmatpush3.bf16.msra.mxu1 (!%p138_p2), %v1986_v60 }
   0xd   : > { %s2605_s13 = smov (!%p161_p3, %s1437_s13), 1 }
   0xe   : > { %s1731_s14 = smul.u32 204, %s2605_s13  ;;  %s1583_s8 = sshll.u32 %s2605_s13, 7 }
   0xf   : > { %s2507_s11 = scalar_lea.vmem %s2603_s3, %s1583_s8 }
  0x10   : > { %s2034_s17 = scalar_lea.vmem %s2600_s0, %s1731_s14 }
  0x11   : > { %v1514_v0 = vld [vmem:[%s2034_s17 + $0x6c] sm:$0xff]   ;;  %v1656_v2 = vld [vmem:[%s2034_s17 + $0x18] sm:$0xff]   ;;  %v2048_v7 = vld [vmem:[%s2034_s17] sm:$0xff]  }
  0x12   : > { %v1445_v1 = vld [vmem:[%s2034_s17 + $0xc] sm:$0xff]   ;;  %v2039_v3 = vunpack.c.l.bf16 %v1514_v0  ;;  %v2041_v4 = vunpack.c.h.bf16 %v1514_v0  ;;  %v175_v8 = vld [vmem:[%s2034_s17 + $0x8] sm:$0x1]  ;;  %v1447_v9 = vld [vmem:[%s2034_s17 + $0x14] sm:$0x1]  ;;  %v2052_v10 = vunpack.c.l.bf16 %v1656_v2  ;;  %v2054_v11 = vunpack.c.h.bf16 %v1656_v2 }
  0x13   : > { %v2043_v5 = vunpack.c.l.bf16 %v1445_v1  ;;  %v2045_v6 = vunpack.c.h.bf16 %v1445_v1  ;;  %v1618_v12 = vunpack.c.l.bf16 %v2048_v7  ;;  %v1619_v13 = vunpack.c.h.bf16 %v2048_v7  ;;  %v1660_v14 = vld [vmem:[%s2034_s17 + $0x60] sm:$0xff]   ;;  %v1513_v19 = vld [vmem:[%s2034_s17 + $0x68] sm:$0x1]  ;;  %v1516_v20 = vld [vmem:[%s2034_s17 + $0x74] sm:$0x1] }
  0x14   : > { %v1748_v15 = vpack.i.bf16 %v2041_v4, %v2039_v3  ;;  %v178_v17 = vunpack.c.l.bf16 %v175_v8  ;;  %v185_v18 = vunpack.c.l.bf16 %v1447_v9  ;;  %v1753_v21 = vpack.i.bf16 %v2054_v11, %v2052_v10  ;;  %v1661_v37 = vld [vmem:[%s2034_s17 + $0x78] sm:$0xff]   ;;  %v1519_v41 = vld [vmem:[%s2034_s17 + $0x80] sm:$0x1]  ;;  %v1451_v0 = vld [vmem:[%s2034_s17 + $0x24] sm:$0xff]  }
  0x15   : > { %v1743_v16 = vpack.i.bf16 %v2045_v6, %v2043_v5  ;;  %v239_v22 = vrot.slane %v1618_v12, 1  ;;  %v240_v23 = vrot.slane %v1619_v13, 1  ;;  %v259_v24 = vrot.slane %v2043_v5, 1  ;;  %v1450_v50 = vld [vmem:[%s2034_s17 + $0x20] sm:$0x1]  ;;  %v1658_v60 = vld [vmem:[%s2034_s17 + $0x48] sm:$0xff]  }
  0x16   : > { %1749 = vrot.lane.b32.xlu0 %v1748_v15, %s1997_s18  ;;  %v242_v25 = vrot.slane %v178_v17, 1  ;;  %v260_v26 = vrot.slane %v2045_v6, 1  ;;  %v262_v27 = vrot.slane %v185_v18, 1  ;;  %v2075_v28 = vunpack.c.l.bf16 %v1660_v14  ;;  %v1453_v9 = vld [vmem:[%s2034_s17 + $0x2c] sm:$0x1]  ;;  %v1988_v17 = vld [vmem:[%s2601_s1 + $0x10] sm:$0xff]  }
  0x17   : > { %1744 = vrot.lane.b32.xlu1 %v1743_v16, %s1997_s18  ;;  %v241_v29 = vsel %vm238_vm0, %v239_v22, %v240_v23  ;;  %v2078_v30 = vunpack.c.h.bf16 %v1660_v14  ;;  %v788_v31 = vunpack.c.l.bf16 %v1513_v19  ;;  %v795_v32 = vunpack.c.l.bf16 %v1516_v20  ;;  %v1987_v14 = vld [vmem:[%s2601_s1 + $0x10] sm:$0xff]   ;;  %v1520_v22 = vld [vmem:[%s2034_s17 + $0x84] sm:$0xff]   ;;  %1713 = vmatprep.subr.bf16.mxu1 %v1988_v17 }
  0x18   : > { %v243_v33 = vsel %vm238_vm0, %v240_v23, %v242_v25  ;;  %v261_v34 = vsel %vm238_vm0, %v259_v24, %v260_v26  ;;  %v263_v35 = vsel %vm238_vm0, %v260_v26, %v262_v27  ;;  %v848_v36 = vrot.slane %v2075_v28, 1  ;;  %v1522_v23 = vld [vmem:[%s2034_s17 + $0x8c] sm:$0x1]  ;;  %1691 = vmatprep.subr.bf16.mxu0 %v1987_v14  ;;  %1714 = vmatpush3.bf16.msra.mxu1 %v1988_v17 }
  0x19   : > { %v1758_v38 = vpack.i.bf16 %v243_v33, %v241_v29  ;;  %v2086_v39 = vrot.slane %v2078_v30, 1  ;;  %v851_v40 = vrot.slane %v788_v31, 1  ;;  %v1768_v42 = vpack.i.bf16 %v263_v35, %v261_v34  ;;  %1692 = vmatpush3.bf16.msra.mxu0 %v1987_v14  ;;  %v2195_v14 = vld [vmem:[%s2034_s17 + $0x44] sm:$0x1] }
  0x1a   : > { %v868_v43 = vrot.slane %v2039_v3, 1  ;;  %v869_v44 = vrot.slane %v2041_v4, 1  ;;  %v871_v45 = vrot.slane %v795_v32, 1  ;;  %v2099_v48 = vunpack.c.l.bf16 %v1661_v37 }
  0x1b   : > { %1754 = vrot.lane.b32.xlu1 %v1753_v21, %s1997_s18  ;;  %1759 = vrot.lane.b32.xlu0 %v1758_v38, %s1998_s19  ;;  %v2095_v46 = vsel %vm238_vm0, %v848_v36, %v2086_v39  ;;  %v852_v47 = vsel %vm238_vm0, %v2086_v39, %v851_v40  ;;  %v2101_v49 = vunpack.c.h.bf16 %v1661_v37  ;;  %v802_v54 = vunpack.c.l.bf16 %v1519_v41  ;;  %v1662_v36 = vld [vmem:[%s2034_s17 + $0x90] sm:$0xff]   ;;  %v1525_v37 = vld [vmem:[%s2034_s17 + $0x98] sm:$0x1] }
  0x1c   : > { %v1763_v51 = vpack.i.bf16 %v852_v47, %v2095_v46  ;;  %v870_v52 = vsel %vm238_vm0, %v868_v43, %v869_v44  ;;  %v872_v53 = vsel %vm238_vm0, %v869_v44, %v871_v45  ;;  %v192_v57 = vunpack.c.l.bf16 %v1450_v50  ;;  %v1456_v45 = vld [vmem:[%s2034_s17 + $0x38] sm:$0x1] }
  0x1d   : > { %v1773_v56 = vpack.i.bf16 %v872_v53, %v870_v52  ;;  %v900_v61 = vrot.slane %v2099_v48, 1  ;;  %v901_v62 = vrot.slane %v2101_v49, 1  ;;  %v903_v63 = vrot.slane %v802_v54, 1 }
  0x1e   : > { %v294_v1 = vrot.slane %v2052_v10, 1  ;;  %v295_v2 = vrot.slane %v2054_v11, 1  ;;  %v297_v8 = vrot.slane %v192_v57, 1  ;;  %v1788_v15 = vpack.i.bf16 %v2101_v49, %v2099_v48 }
  0x1f   : > { %1769 = vrot.lane.b32.xlu1 %v1768_v42, %s1998_s19  ;;  %1764 = vrot.lane.b32.xlu0 %v1763_v51, %s1998_s19  ;;  %v2133_v16 = vunpack.c.l.bf16 %v1451_v0  ;;  %v902_v18 = vsel %vm238_vm0, %v900_v61, %v901_v62  ;;  %v904_v19 = vsel %vm238_vm0, %v901_v62, %v903_v63  ;;  %v2141_v20 = vunpack.c.h.bf16 %v1451_v0  ;;  %v1457_v0 = vld [vmem:[%s2034_s17 + $0x3c] sm:$0xff]  }
  0x20   : > { %v199_v21 = vunpack.c.l.bf16 %v1453_v9  ;;  %v296_v24 = vsel %vm238_vm0, %v294_v1, %v295_v2  ;;  %v298_v25 = vsel %vm238_vm0, %v295_v2, %v297_v8  ;;  %v1798_v26 = vpack.i.bf16 %v904_v19, %v902_v18  ;;  %v1462_v1 = vld [vmem:[%s2034_s17 + $0x50] sm:$0x1] }
  0x21   : > { %v2148_v27 = vunpack.c.l.bf16 %v1520_v22  ;;  %v2150_v29 = vunpack.c.h.bf16 %v1520_v22  ;;  %v809_v31 = vunpack.c.l.bf16 %v1522_v23  ;;  %v1793_v32 = vpack.i.bf16 %v298_v25, %v296_v24 }
  0x22   : > { %v326_v33 = vrot.slane %v2133_v16, 1  ;;  %v327_v34 = vrot.slane %v2141_v20, 1  ;;  %v329_v35 = vrot.slane %v199_v21, 1  ;;  %v2165_v47 = vunpack.c.l.bf16 %v1662_v36  ;;  %v1463_v21 = vld [vmem:[%s2034_s17 + $0x54] sm:$0xff]  }
  0x23   : > { %1774 = vrot.lane.b32.xlu1 %v1773_v56, %s1998_s19  ;;  %1779 = vrot.lane.b32.xlu0 %v1768_v42, %s1999_s5  ;;  %v932_v38 = vrot.slane %v2148_v27, 1  ;;  %v933_v40 = vrot.slane %v2150_v29, 1  ;;  %v935_v41 = vrot.slane %v809_v31, 1  ;;  %v1657_v42 = vld [vmem:[%s2034_s17 + $0x30] sm:$0xff]   ;;  %v2167_v50 = vunpack.c.h.bf16 %v1662_v36 }
  0x24   : > { %v328_v43 = vsel %vm238_vm0, %v326_v33, %v327_v34  ;;  %v330_v44 = vsel %vm238_vm0, %v327_v34, %v329_v35  ;;  %v816_v51 = vunpack.c.l.bf16 %v1525_v37  ;;  %v2169_v52 = vunpack.c.l.bf16 %v1657_v42  ;;  %v1532_v31 = vld [vmem:[%s2034_s17 + $0xb4] sm:$0xff]   ;;  %v1526_v35 = vld [vmem:[%s2034_s17 + $0x9c] sm:$0xff]  }
  0x25   : > { %v2171_v53 = vunpack.c.h.bf16 %v1657_v42  ;;  %v2174_v54 = vpack.i.bf16 %v330_v44, %v328_v43  ;;  %v934_v55 = vsel %vm238_vm0, %v932_v38, %v933_v40  ;;  %v206_v57 = vunpack.c.l.bf16 %v1456_v45  ;;  %v1534_v45 = vld [vmem:[%s2034_s17 + $0xbc] sm:$0x1] }
  0x26   : > { %v1813_v58 = vpack.i.bf16 %v2141_v20, %v2133_v16  ;;  %v1823_v59 = vpack.i.bf16 %v2150_v29, %v2148_v27  ;;  %v964_v61 = vrot.slane %v2165_v47, 1  ;;  %v965_v62 = vrot.slane %v2167_v50, 1 }
  0x27   : > { %1789 = vrot.lane.b32.xlu1 %v1788_v15, %s1997_s18  ;;  %1784 = vrot.lane.b32.xlu0 %v1773_v56, %s1999_s5  ;;  %v936_v56 = vsel %vm238_vm0, %v933_v40, %v935_v41  ;;  %v967_v63 = vrot.slane %v816_v51, 1  ;;  %v1838_v8 = vpack.i.bf16 %v2171_v53, %v2169_v52  ;;  %v1848_v9 = vpack.i.bf16 %v2167_v50, %v2165_v47 }
  0x28   : > { %v2188_v2 = vpack.i.bf16 %v936_v56, %v934_v55  ;;  %v358_v15 = vrot.slane %v2169_v52, 1  ;;  %v359_v17 = vrot.slane %v2171_v53, 1  ;;  %v361_v18 = vrot.slane %v206_v57, 1 }
  0x29   : > { %v2201_v19 = vunpack.c.l.bf16 %v1658_v60  ;;  %v2205_v22 = vunpack.c.l.bf16 %v1457_v0  ;;  %v2207_v23 = vunpack.c.h.bf16 %v1457_v0  ;;  %v2209_v24 = vunpack.c.h.bf16 %v1658_v60  ;;  %v2236_v60 = vld [vmem:[%s2034_s17 + $0xc0] sm:$0xff]  }
  0x2a   : > { %v220_v25 = vunpack.c.l.bf16 %v1462_v1  ;;  %v968_v33 = vsel %vm238_vm0, %v965_v62, %v967_v63  ;;  %v213_v34 = vunpack.c.l.bf16 %v2195_v14  ;;  %v2219_v40 = vunpack.c.l.bf16 %v1463_v21 }
  0x2b   : > { %1799 = vrot.lane.b32.xlu1 %v1798_v26, %s1999_s5  ;;  %1794 = vrot.lane.b32.xlu0 %v1793_v32, %s1999_s5  ;;  %v422_v36 = vrot.slane %v2201_v19, 1  ;;  %v423_v37 = vrot.slane %v2209_v24, 1  ;;  %v2221_v41 = vunpack.c.h.bf16 %v1463_v21  ;;  %v360_v42 = vsel %vm238_vm0, %v358_v15, %v359_v17 }
  0x2c   : > { %v425_v38 = vrot.slane %v220_v25, 1  ;;  %v362_v43 = vsel %vm238_vm0, %v359_v17, %v361_v18  ;;  %v2228_v51 = vunpack.c.l.bf16 %v1532_v31  ;;  %v2231_v56 = vunpack.c.l.bf16 %v1526_v35  ;;  %v1537_v25 = vld [vmem:[%s2034_s17 + $0xc8] sm:$0x1] }
  0x2d   : > { %v424_v57 = vsel %vm238_vm0, %v422_v36, %v423_v37  ;;  %v455_v63 = vrot.slane %v2221_v41, 1  ;;  %v1853_v0 = vpack.i.bf16 %v362_v43, %v360_v42  ;;  %v2242_v1 = vunpack.c.h.bf16 %v1532_v31  ;;  %v1528_v36 = vld [vmem:[%s2034_s17 + $0xa4] sm:$0x1] }
  0x2e   : > { %v837_v14 = vunpack.c.l.bf16 %v1534_v45  ;;  %v390_v15 = vrot.slane %v2205_v22, 1  ;;  %v1060_v18 = vrot.slane %v2228_v51, 1  ;;  %v1654_v21 = vunpack.c.l.bf16 %v2236_v60 }
  0x2f   : > { %1809 = vrot.lane.b32.xlu1 %v1798_v26, %s1998_s19  ;;  %1804 = vrot.lane.b32.xlu0 %v1793_v32, %s1998_s19  ;;  %v1465_v26 = vld [vmem:[%s2034_s17 + $0x5c] sm:$0x1]  ;;  %v966_v32 = vsel %vm238_vm0, %v964_v61, %v965_v62  ;;  %v454_v62 = vrot.slane %v2219_v40, 1 }
  0x30   : > { %v227_v44 = vunpack.c.l.bf16 %v1465_v26  ;;  %v1858_v55 = vpack.i.bf16 %v968_v33, %v966_v32  ;;  %v1468_v26 = vld [vmem:[%s2034_s17 + $0x68] sm:$0x1]  ;;  %v391_v32 = vrot.slane %v2207_v23, 1  ;;  %v1061_v33 = vrot.slane %v2242_v1, 1 }
  0x31   : > { %v456_v17 = vsel %vm238_vm0, %v454_v62, %v455_v63  ;;  %v1092_v42 = vrot.slane %v1654_v21, 1  ;;  %v234_v45 = vunpack.c.l.bf16 %v1468_v26 }
  0x32   : > { %v1062_v43 = vsel %vm238_vm0, %v1060_v18, %v1061_v33 }
  0x33   : > { %1819 = vrot.lane.b32.xlu1 %v2174_v54, %s1998_s19  ;;  %1814 = vrot.lane.b32.xlu0 %v1813_v58, %s1997_s18  ;;  %v426_v58 = vsel %vm238_vm0, %v423_v37, %v425_v38  ;;  %v1655_v38 = vunpack.c.h.bf16 %v2236_v60 }
  0x34   : > { %v2238_v61 = vpack.i.bf16 %v426_v58, %v424_v57  ;;  %v393_v57 = vrot.slane %v213_v34, 1  ;;  %v392_v34 = vsel %vm238_vm0, %v390_v15, %v391_v32  ;;  %v1873_v15 = vpack.i.bf16 %v2207_v23, %v2205_v22 }
  0x35   : > { %v1093_v62 = vrot.slane %v1655_v38, 1 }
  0x37   : > { %1829 = vrot.lane.b32.xlu1 %v2188_v2, %s1998_s19  ;;  %1824 = vrot.lane.b32.xlu0 %v1823_v59, %s1997_s18  ;;  %v457_v59 = vrot.slane %v227_v44, 1  ;;  %v1094_v18 = vsel %vm238_vm0, %v1092_v42, %v1093_v62  ;;  %v1663_v42 = vld [vmem:[%s2034_s17 + $0xa8] sm:$0xff]  }
  0x39   : > { %v458_v31 = vsel %vm238_vm0, %v455_v63, %v457_v59  ;;  %v2269_v63 = vunpack.c.h.bf16 %v1526_v35  ;;  %v823_v59 = vunpack.c.l.bf16 %v1528_v36  ;;  %v394_v35 = vsel %vm238_vm0, %v391_v32, %v393_v57 }
  0x3a   : > { %v2257_v37 = vpack.i.bf16 %v458_v31, %v456_v17  ;;  %v489_v17 = vrot.slane %v234_v45, 1  ;;  %v996_v31 = vrot.slane %v2231_v56, 1  ;;  %v1898_v45 = vpack.i.bf16 %v2209_v24, %v2201_v19 }
  0x3b   : > { %1839 = vrot.lane.b32.xlu1 %v1838_v8, %s1997_s18  ;;  %1834 = vrot.lane.b32.xlu0 %v2174_v54, %s1999_s5  ;;  %v1063_v8 = vrot.slane %v837_v14, 1  ;;  %v844_v54 = vunpack.c.l.bf16 %v1537_v25 }
  0x3d   : > { %v1064_v44 = vsel %vm238_vm0, %v1061_v33, %v1063_v8  ;;  %v1095_v14 = vrot.slane %v844_v54, 1  ;;  %v997_v33 = vrot.slane %v2269_v63, 1  ;;  %v999_v8 = vrot.slane %v823_v59, 1 }
  0x3e   : > { %v1948_v58 = vpack.i.bf16 %v1064_v44, %v1062_v43  ;;  %v1531_v43 = vld [vmem:[%s2034_s17 + $0xb0] sm:$0x1]  ;;  %v2294_v44 = vunpack.c.l.bf16 %v1663_v42 }
  0x3f   : > { %1849 = vrot.lane.b32.xlu1 %v1848_v9, %s1997_s18  ;;  %1844 = vrot.lane.b32.xlu0 %v2188_v2, %s1999_s5  ;;  %v1096_v25 = vsel %vm238_vm0, %v1093_v62, %v1095_v14  ;;  %v490_v9 = vsel %vm238_vm0, %v2086_v39, %v489_v17  ;;  %v1878_v39 = vpack.i.bf16 %v394_v35, %v392_v34  ;;  %v830_v54 = vunpack.c.l.bf16 %v1531_v43 }
  0x40   : > { %v1978_v26 = vpack.i.bf16 %v1096_v25, %v1094_v18  ;;  %v1973_v2 = vpack.i.bf16 %v490_v9, %v2095_v46  ;;  %v998_v36 = vsel %vm238_vm0, %v996_v31, %v997_v33  ;;  %v1000_v46 = vsel %vm238_vm0, %v997_v33, %v999_v8 }
  0x41   : > { %v1888_v32 = vpack.i.bf16 %v1000_v46, %v998_v36  ;;  %v1028_v57 = vrot.slane %v2294_v44, 1  ;;  %v1031_v59 = vrot.slane %v830_v54, 1  ;;  %v1933_v9 = vpack.i.bf16 %v2221_v41, %v2219_v40 }
  0x42   : > { %v1943_v34 = vpack.i.bf16 %v2242_v1, %v2228_v51  ;;  %v1958_v35 = vpack.i.bf16 %v2078_v30, %v2075_v28 }
  0x43   : > { %1859 = vrot.lane.b32.xlu1 %v1858_v55, %s1999_s5  ;;  %1854 = vrot.lane.b32.xlu0 %v1853_v0, %s1999_s5 }
  0x47   : > { %1869 = vrot.lane.b32.xlu1 %v1858_v55, %s1998_s19  ;;  %1864 = vrot.lane.b32.xlu0 %v1853_v0, %s1998_s19  ;;  %v1883_v55 = vpack.i.bf16 %v2269_v63, %v2231_v56  ;;  %v2296_v0 = vunpack.c.h.bf16 %v1663_v42 }
  0x49   : > { %v1029_v62 = vrot.slane %v2296_v0, 1  ;;  %v1908_v14 = vpack.i.bf16 %v2296_v0, %v2294_v44 }
  0x4b   : > { %1879 = vrot.lane.b32.xlu1 %v1878_v39, %s1998_s19  ;;  %1874 = vrot.lane.b32.xlu0 %v1873_v15, %s1997_s18  ;;  %v1030_v17 = vsel %vm238_vm0, %v1028_v57, %v1029_v62  ;;  %v1032_v18 = vsel %vm238_vm0, %v1029_v62, %v1031_v59 }
  0x4c   : > { %v1918_v25 = vpack.i.bf16 %v1032_v18, %v1030_v17 }
  0x4f   : > { %1889 = vrot.lane.b32.xlu1 %v1888_v32, %s1998_s19  ;;  %1884 = vrot.lane.b32.xlu0 %v1883_v55, %s1997_s18 }
  0x53   : > { %1899 = vrot.lane.b32.xlu1 %v1898_v45, %s1997_s18  ;;  %1894 = vrot.lane.b32.xlu0 %v1878_v39, %s1999_s5 }
  0x57   : > { %1909 = vrot.lane.b32.xlu1 %v1908_v14, %s1997_s18  ;;  %1904 = vrot.lane.b32.xlu0 %v1888_v32, %s1999_s5 }
  0x5b   : > { %1919 = vrot.lane.b32.xlu1 %v1918_v25, %s1999_s5  ;;  %1914 = vrot.lane.b32.xlu0 %v2238_v61, %s1999_s5 }
  0x5f   : > { %1929 = vrot.lane.b32.xlu1 %v1918_v25, %s1998_s19  ;;  %1924 = vrot.lane.b32.xlu0 %v2238_v61, %s1998_s19  ;;  %v1968_v61 = vpack.i.bf16 %v1655_v38, %v1654_v21 }
  0x63   : > { %1939 = vrot.lane.b32.xlu1 %v2257_v37, %s1998_s19  ;;  %1934 = vrot.lane.b32.xlu0 %v1933_v9, %s1997_s18 }
  0x67   : > { %1949 = vrot.lane.b32.xlu1 %v1948_v58, %s1998_s19  ;;  %1944 = vrot.lane.b32.xlu0 %v1943_v34, %s1997_s18 }
  0x6b   : > { %1959 = vrot.lane.b32.xlu1 %v1958_v35, %s1997_s18  ;;  %1954 = vrot.lane.b32.xlu0 %v2257_v37, %s1999_s5 }
  0x6f   : > { %1969 = vrot.lane.b32.xlu1 %v1968_v61, %s1997_s18  ;;  %1964 = vrot.lane.b32.xlu0 %v1948_v58, %s1999_s5 }
  0x73   : > { %1979 = vrot.lane.b32.xlu1 %v1978_v26, %s1999_s5  ;;  %1974 = vrot.lane.b32.xlu0 %v1973_v2, %s1999_s5 }
  0x88   : > { %v1750_v31 = vpop.permute.xlu0 %1749 }
  0x89   : > { %v1745_v33 = vpop.permute.xlu1 %1744  ;;  %v1752_v32 = vunpack.i.h.bf16 %v1750_v31  ;;  %v1751_v25 = vunpack.i.l.bf16 %v1750_v31 }
  0x8a   : > { %v1747_v46 = vunpack.i.h.bf16 %v1745_v33  ;;  %v1746_v42 = vunpack.i.l.bf16 %v1745_v33 }
  0x8d   : > { %v2340_v8 = vpop.permute.xlu1 %1754  ;;  %v1760_v39 = vpop.permute.xlu0 %1759 }
  0x8e   : > { %v1762_v15 = vunpack.i.h.bf16 %v1760_v39  ;;  %v1761_v36 = vunpack.i.l.bf16 %v1760_v39  ;;  %v1757_v9 = vunpack.i.h.bf16 %v2340_v8 }
  0x90   : > { %v272_v37 = vsel %vm270_vm1, %v1619_v13, %v1762_v15  ;;  %v271_v58 = vsel %vm270_vm1, %v1618_v12, %v1761_v36  ;;  %v1756_v36 = vunpack.i.l.bf16 %v2340_v8 }
  0x91   : > { %v1770_v60 = vpop.permute.xlu1 %1769  ;;  %v1765_v21 = vpop.permute.xlu0 %1764  ;;  %v274_v7 = vsel %vm273_vm2, %v271_v58, %v1746_v42  ;;  %v275_v12 = vsel %vm273_vm2, %v272_v37, %v1747_v46 }
  0x92   : > { %v1767_v38 = vunpack.i.h.bf16 %v1765_v21  ;;  %v1766_v26 = vunpack.i.l.bf16 %v1765_v21  ;;  %v1772_v55 = vunpack.i.h.bf16 %v1770_v60  ;;  %v1771_v57 = vunpack.i.l.bf16 %v1770_v60 }
  0x94   : > { %v880_v13 = vsel %vm270_vm1, %v2078_v30, %v1767_v38  ;;  %v879_v62 = vsel %vm270_vm1, %v2075_v28, %v1766_v26  ;;  %v306_v28 = vsel %vm270_vm1, %v2045_v6, %v1772_v55  ;;  %v305_v21 = vsel %vm270_vm1, %v2043_v5, %v1771_v57 }
  0x95   : > { %v1775_v2 = vpop.permute.xlu1 %1774  ;;  %v1780_v43 = vpop.permute.xlu0 %1779  ;;  %v881_v60 = vsel %vm273_vm2, %v879_v62, %v1751_v25  ;;  %v882_v31 = vsel %vm273_vm2, %v880_v13, %v1752_v32  ;;  %v308_v57 = vsel %vm273_vm2, %v306_v28, %v1757_v9 }
  0x96   : > { %v1782_v54 = vunpack.i.h.bf16 %v1780_v43  ;;  %v1781_v45 = vunpack.i.l.bf16 %v1780_v43  ;;  %v1777_v59 = vunpack.i.h.bf16 %v1775_v2  ;;  %v1776_v34 = vunpack.i.l.bf16 %v1775_v2 }
  0x98   : > { %v277_v17 = vsel %vm276_vm3, %v274_v7, %v1781_v45  ;;  %v278_v18 = vsel %vm276_vm3, %v275_v12, %v1782_v54  ;;  %v912_v38 = vsel %vm270_vm1, %v2041_v4, %v1777_v59  ;;  %v911_v6 = vsel %vm270_vm1, %v2039_v3, %v1776_v34 }
  0x99   : > { %v1790_v14 = vpop.permute.xlu1 %1789  ;;  %v1785_v35 = vpop.permute.xlu0 %1784  ;;  %v503_v61 = vpack.c.bf16 %v278_v18, %v277_v17  ;;  %v307_v45 = vsel %vm273_vm2, %v305_v21, %v1756_v36 }
  0x9a   : > { %v1792_v30 = vunpack.i.h.bf16 %v1790_v14  ;;  %v1791_v33 = vunpack.i.l.bf16 %v1790_v14  ;;  %v1787_v39 = vunpack.i.h.bf16 %v1785_v35  ;;  %v1786_v15 = vunpack.i.l.bf16 %v1785_v35 }
  0x9b   : > { %1693 = vmatprep.mubr.msk.bf16.mxu0 %vm541_vm4, %v503_v61 }
  0x9c   : > { %v883_v58 = vsel %vm276_vm3, %v881_v60, %v1786_v15  ;;  %v884_v8 = vsel %vm276_vm3, %v882_v31, %v1787_v39  ;;  %v913_v43 = vsel %vm273_vm2, %v911_v6, %v1791_v33  ;;  %v914_v32 = vsel %vm273_vm2, %v912_v38, %v1792_v30 }
  0x9d   : > { %v1800_v37 = vpop.permute.xlu1 %1799  ;;  %v1795_v46 = vpop.permute.xlu0 %1794  ;;  %v1109_v42 = vpack.c.bf16 %v884_v8, %v883_v58 }
  0x9e   : > { %v1802_v26 = vunpack.i.h.bf16 %v1800_v37  ;;  %v1801_v2 = vunpack.i.l.bf16 %v1800_v37  ;;  %v1797_v5 = vunpack.i.h.bf16 %v1795_v46  ;;  %v1796_v55 = vunpack.i.l.bf16 %v1795_v46 }
  0x9f   : > { %1715 = vmatprep.mubr.msk.bf16.mxu1 %vm541_vm4, %v1109_v42 }
  0xa0   : > { %v915_v4 = vsel %vm276_vm3, %v913_v43, %v1801_v2  ;;  %v916_v54 = vsel %vm276_vm3, %v914_v32, %v1802_v26  ;;  %v310_v13 = vsel %vm276_vm3, %v308_v57, %v1797_v5  ;;  %v309_v7 = vsel %vm276_vm3, %v307_v45, %v1796_v55 }
  0xa1   : > { %v1110_v3 = vpack.c.bf16 %v916_v54, %v915_v4  ;;  %v1810_v12 = vpop.permute.xlu1 %1809  ;;  %v504_v62 = vpack.c.bf16 %v310_v13, %v309_v7  ;;  %v1805_v59 = vpop.permute.xlu0 %1804 }
  0xa2   : > { %v1812_v25 = vunpack.i.h.bf16 %v1810_v12  ;;  %v1807_v9 = vunpack.i.h.bf16 %v1805_v59  ;;  %v1806_v35 = vunpack.i.l.bf16 %v1805_v59  ;;  %v1811_v15 = vunpack.i.l.bf16 %v1810_v12 }
  0xa3   : > { %1716 = vmatmul.mubr.msk.bf16.vlgmr.msra.gmra.mrb[0].mxu1 %vm541_vm4, %v1110_v3  ;;  %1694 = vmatmul.mubr.msk.bf16.vlgmr.msra.gmra.mrb[0].mxu0 %vm541_vm4, %v504_v62 }
  0xa4   : > { %v944_v39 = vsel %vm270_vm1, %v2101_v49, %v1812_v25  ;;  %v338_v60 = vsel %vm270_vm1, %v2054_v11, %v1807_v9  ;;  %v337_v31 = vsel %vm270_vm1, %v2052_v10, %v1806_v35  ;;  %v943_v11 = vsel %vm270_vm1, %v2099_v48, %v1811_v15 }
  0xa5   : > { %v1820_v14 = vpop.permute.xlu1 %1819  ;;  %v1815_v17 = vpop.permute.xlu0 %1814 }
  0xa6   : > { %v1817_v61 = vunpack.i.h.bf16 %v1815_v17  ;;  %v1816_v30 = vunpack.i.l.bf16 %v1815_v17  ;;  %v1822_v36 = vunpack.i.h.bf16 %v1820_v14  ;;  %v1821_v26 = vunpack.i.l.bf16 %v1820_v14 }
  0xa8   : > { %v339_v37 = vsel %vm273_vm2, %v337_v31, %v1816_v30  ;;  %v340_v58 = vsel %vm273_vm2, %v338_v60, %v1817_v61  ;;  %v370_v10 = vsel %vm270_vm1, %v2141_v20, %v1822_v36  ;;  %v369_v48 = vsel %vm270_vm1, %v2133_v16, %v1821_v26 }
  0xa9   : > { %v1830_v18 = vpop.permute.xlu1 %1829  ;;  %v1825_v34 = vpop.permute.xlu0 %1824 }
  0xaa   : > { %v1827_v8 = vunpack.i.h.bf16 %v1825_v34  ;;  %v1826_v6 = vunpack.i.l.bf16 %v1825_v34  ;;  %v1832_v2 = vunpack.i.h.bf16 %v1830_v18  ;;  %v1831_v43 = vunpack.i.l.bf16 %v1830_v18 }
  0xac   : > { %v946_v57 = vsel %vm273_vm2, %v944_v39, %v1827_v8  ;;  %v945_v3 = vsel %vm273_vm2, %v943_v11, %v1826_v6  ;;  %v976_v20 = vsel %vm270_vm1, %v2150_v29, %v1832_v2  ;;  %v975_v14 = vsel %vm270_vm1, %v2148_v27, %v1831_v43 }
  0xad   : > { %v1840_v33 = vpop.permute.xlu1 %1839  ;;  %v1835_v28 = vpop.permute.xlu0 %1834 }
  0xae   : > { %v1837_v21 = vunpack.i.h.bf16 %v1835_v28  ;;  %v1836_v38 = vunpack.i.l.bf16 %v1835_v28  ;;  %v1842_v13 = vunpack.i.h.bf16 %v1840_v33  ;;  %v1841_v7 = vunpack.i.l.bf16 %v1840_v33 }
  0xb0   : > { %v341_v49 = vsel %vm276_vm3, %v339_v37, %v1836_v38  ;;  %v342_v46 = vsel %vm276_vm3, %v340_v58, %v1837_v21  ;;  %v371_v29 = vsel %vm273_vm2, %v369_v48, %v1841_v7  ;;  %v372_v30 = vsel %vm273_vm2, %v370_v10, %v1842_v13 }
  0xb1   : > { %v1850_v42 = vpop.permute.xlu1 %1849  ;;  %v505_v32 = vpack.c.bf16 %v342_v46, %v341_v49  ;;  %v1845_v5 = vpop.permute.xlu0 %1844 }
  0xb2   : > { %v1852_v55 = vunpack.i.h.bf16 %v1850_v42  ;;  %v1851_v4 = vunpack.i.l.bf16 %v1850_v42  ;;  %v1847_v54 = vunpack.i.h.bf16 %v1845_v5  ;;  %v1846_v45 = vunpack.i.l.bf16 %v1845_v5 }
  0xb3   : > { %1697 = vmatprep.mubr.msk.bf16.mxu0 %vm541_vm4, %v505_v32 }
  0xb4   : > { %v947_v12 = vsel %vm276_vm3, %v945_v3, %v1846_v45  ;;  %v948_v62 = vsel %vm276_vm3, %v946_v57, %v1847_v54  ;;  %v977_v9 = vsel %vm273_vm2, %v975_v14, %v1851_v4  ;;  %v978_v35 = vsel %vm273_vm2, %v976_v20, %v1852_v55 }
  0xb5   : > { %v1860_v59 = vpop.permute.xlu1 %1859  ;;  %v1111_v17 = vpack.c.bf16 %v948_v62, %v947_v12  ;;  %v1855_v34 = vpop.permute.xlu0 %1854 }
  0xb6   : > { %v1862_v18 = vunpack.i.h.bf16 %v1860_v59  ;;  %v1861_v25 = vunpack.i.l.bf16 %v1860_v59  ;;  %v1857_v16 = vunpack.i.h.bf16 %v1855_v34  ;;  %v1856_v61 = vunpack.i.l.bf16 %v1855_v34 }
  0xb7   : > { %1719 = vmatprep.mubr.msk.bf16.mxu1 %vm541_vm4, %v1111_v17 }
  0xb8   : > { %v979_v33 = vsel %vm276_vm3, %v977_v9, %v1861_v25  ;;  %v980_v39 = vsel %vm276_vm3, %v978_v35, %v1862_v18  ;;  %v374_v15 = vsel %vm276_vm3, %v372_v30, %v1857_v16  ;;  %v373_v36 = vsel %vm276_vm3, %v371_v29, %v1856_v61 }
  0xb9   : > { %v1112_v27 = vpack.c.bf16 %v980_v39, %v979_v33  ;;  %v1870_v28 = vpop.permute.xlu1 %1869  ;;  %v506_v60 = vpack.c.bf16 %v374_v15, %v373_v36  ;;  %v1865_v31 = vpop.permute.xlu0 %1864 }
  0xba   : > { %v1872_v58 = vunpack.i.h.bf16 %v1870_v28  ;;  %v1867_v6 = vunpack.i.h.bf16 %v1865_v31  ;;  %v1866_v26 = vunpack.i.l.bf16 %v1865_v31  ;;  %v1871_v11 = vunpack.i.l.bf16 %v1870_v28 }
  0xbb   : > { %1720 = vmatmul.mubr.msk.bf16.gmra.mrb[4].mxu1 %vm541_vm4, %v1112_v27  ;;  %1698 = vmatmul.mubr.msk.bf16.gmra.mrb[4].mxu0 %vm541_vm4, %v506_v60 }
  0xbc   : > { %v1008_v42 = vsel %vm270_vm1, %v2167_v50, %v1872_v58  ;;  %v402_v32 = vsel %vm270_vm1, %v2171_v53, %v1867_v6  ;;  %v401_v5 = vsel %vm270_vm1, %v2169_v52, %v1866_v26  ;;  %v1007_v53 = vsel %vm270_vm1, %v2165_v47, %v1871_v11 }
  0xbd   : > { %v1880_v21 = vpop.permute.xlu1 %1879  ;;  %v1875_v38 = vpop.permute.xlu0 %1874 }
  0xbe   : > { %v1877_v2 = vunpack.i.h.bf16 %v1875_v38  ;;  %v1876_v49 = vunpack.i.l.bf16 %v1875_v38  ;;  %v1882_v10 = vunpack.i.h.bf16 %v1880_v21  ;;  %v1881_v13 = vunpack.i.l.bf16 %v1880_v21 }
  0xc0   : > { %v403_v54 = vsel %vm273_vm2, %v401_v5, %v1876_v49  ;;  %v404_v45 = vsel %vm273_vm2, %v402_v32, %v1877_v2  ;;  %v434_v52 = vsel %vm270_vm1, %v2207_v23, %v1882_v10  ;;  %v433_v47 = vsel %vm270_vm1, %v2205_v22, %v1881_v13 }
  0xc1   : > { %v1890_v37 = vpop.permute.xlu1 %1889  ;;  %v1885_v8 = vpop.permute.xlu0 %1884 }
  0xc2   : > { %v1887_v57 = vunpack.i.h.bf16 %v1885_v8  ;;  %v1886_v3 = vunpack.i.l.bf16 %v1885_v8  ;;  %v1892_v7 = vunpack.i.h.bf16 %v1890_v37  ;;  %v1891_v12 = vunpack.i.l.bf16 %v1890_v37 }
  0xc4   : > { %v1010_v34 = vsel %vm273_vm2, %v1008_v42, %v1887_v57  ;;  %v1009_v9 = vsel %vm273_vm2, %v1007_v53, %v1886_v3  ;;  %v1040_v23 = vsel %vm270_vm1, %v2269_v63, %v1892_v7  ;;  %v1039_v33 = vsel %vm270_vm1, %v2231_v56, %v1891_v12 }
  0xc5   : > { %v1900_v46 = vpop.permute.xlu1 %1899  ;;  %v1895_v43 = vpop.permute.xlu0 %1894 }
  0xc6   : > { %v1897_v55 = vunpack.i.h.bf16 %v1895_v43  ;;  %v1896_v4 = vunpack.i.l.bf16 %v1895_v43  ;;  %v1902_v35 = vunpack.i.h.bf16 %v1900_v46  ;;  %v1901_v16 = vunpack.i.l.bf16 %v1900_v46 }
  0xc8   : > { %v405_v50 = vsel %vm276_vm3, %v403_v54, %v1896_v4  ;;  %v406_v48 = vsel %vm276_vm3, %v404_v45, %v1897_v55  ;;  %v435_v63 = vsel %vm273_vm2, %v433_v47, %v1901_v16  ;;  %v436_v21 = vsel %vm273_vm2, %v434_v52, %v1902_v35 }
  0xc9   : > { %v1910_v20 = vpop.permute.xlu1 %1909  ;;  %v507_v62 = vpack.c.bf16 %v406_v48, %v405_v50  ;;  %v1905_v59 = vpop.permute.xlu0 %1904 }
  0xca   : > { %v1912_v14 = vunpack.i.h.bf16 %v1910_v20  ;;  %v1911_v17 = vunpack.i.l.bf16 %v1910_v20  ;;  %v1907_v18 = vunpack.i.h.bf16 %v1905_v59  ;;  %v1906_v25 = vunpack.i.l.bf16 %v1905_v59 }
  0xcb   : > { %1701 = vmatprep.mubr.msk.bf16.mxu0 %vm541_vm4, %v507_v62 }
  0xcc   : > { %v1011_v61 = vsel %vm276_vm3, %v1009_v9, %v1906_v25  ;;  %v1012_v29 = vsel %vm276_vm3, %v1010_v34, %v1907_v18  ;;  %v1041_v28 = vsel %vm273_vm2, %v1039_v33, %v1911_v17  ;;  %v1042_v60 = vsel %vm273_vm2, %v1040_v23, %v1912_v14 }
  0xcd   : > { %v1920_v30 = vpop.permute.xlu1 %1919  ;;  %v1113_v39 = vpack.c.bf16 %v1012_v29, %v1011_v61  ;;  %v1915_v36 = vpop.permute.xlu0 %1914 }
  0xce   : > { %v1922_v27 = vunpack.i.h.bf16 %v1920_v30  ;;  %v1921_v15 = vunpack.i.l.bf16 %v1920_v30  ;;  %v1917_v22 = vunpack.i.h.bf16 %v1915_v36  ;;  %v1916_v31 = vunpack.i.l.bf16 %v1915_v36 }
  0xcf   : > { %1723 = vmatprep.mubr.msk.bf16.mxu1 %vm541_vm4, %v1113_v39 }
  0xd0   : > { %v1043_v38 = vsel %vm276_vm3, %v1041_v28, %v1921_v15  ;;  %v1044_v37 = vsel %vm276_vm3, %v1042_v60, %v1922_v27  ;;  %v438_v58 = vsel %vm276_vm3, %v436_v21, %v1917_v22  ;;  %v437_v8 = vsel %vm276_vm3, %v435_v63, %v1916_v31 }
  0xd1   : > { %v1114_v56 = vpack.c.bf16 %v1044_v37, %v1043_v38  ;;  %v1930_v6 = vpop.permute.xlu1 %1929  ;;  %v508_v26 = vpack.c.bf16 %v438_v58, %v437_v8  ;;  %v1925_v2 = vpop.permute.xlu0 %1924 }
  0xd2   : > { %v1932_v11 = vunpack.i.h.bf16 %v1930_v6  ;;  %v1927_v43 = vunpack.i.h.bf16 %v1925_v2  ;;  %v1926_v32 = vunpack.i.l.bf16 %v1925_v2  ;;  %v1931_v45 = vunpack.i.l.bf16 %v1930_v6 }
  0xd3   : > { %1724 = vmatmul.mubr.msk.bf16.gmra.mrb[8].mxu1 %vm541_vm4, %v1114_v56  ;;  %1702 = vmatmul.mubr.msk.bf16.gmra.mrb[8].mxu0 %vm541_vm4, %v508_v26  ;;  %v2493_v26 = vld [vmem:[%s2602_s2] ss:$0 sm:$0xff] }
  0xd4   : > { %v1072_v54 = vsel %vm270_vm1, %v2296_v0, %v1932_v11  ;;  %v466_v13 = vsel %vm270_vm1, %v2209_v24, %v1927_v43  ;;  %v465_v7 = vsel %vm270_vm1, %v2201_v19, %v1926_v32  ;;  %v1071_v24 = vsel %vm270_vm1, %v2294_v44, %v1931_v45 }
  0xd5   : > { %v1940_v49 = vpop.permute.xlu1 %1939  ;;  %v1935_v46 = vpop.permute.xlu0 %1934 }
  0xd6   : > { %v1937_v5 = vunpack.i.h.bf16 %v1935_v46  ;;  %v1936_v55 = vunpack.i.l.bf16 %v1935_v46  ;;  %v1942_v57 = vunpack.i.h.bf16 %v1940_v49  ;;  %v1941_v62 = vunpack.i.l.bf16 %v1940_v49 }
  0xd8   : > { %v467_v20 = vsel %vm273_vm2, %v465_v7, %v1936_v55  ;;  %v468_v53 = vsel %vm273_vm2, %v466_v13, %v1937_v5  ;;  %v498_v19 = vsel %vm270_vm1, %v2221_v41, %v1942_v57  ;;  %v497_v44 = vsel %vm270_vm1, %v2219_v40, %v1941_v62 }
  0xd9   : > { %v1950_v42 = vpop.permute.xlu1 %1949  ;;  %v1945_v10 = vpop.permute.xlu0 %1944 }
  0xda   : > { %v1947_v52 = vunpack.i.h.bf16 %v1945_v10  ;;  %v1946_v12 = vunpack.i.l.bf16 %v1945_v10  ;;  %v1952_v59 = vunpack.i.h.bf16 %v1950_v42  ;;  %v1951_v18 = vunpack.i.l.bf16 %v1950_v42 }
  0xdc   : > { %v1074_v23 = vsel %vm273_vm2, %v1072_v54, %v1947_v52  ;;  %v1073_v61 = vsel %vm273_vm2, %v1071_v24, %v1946_v12  ;;  %v1104_v41 = vsel %vm270_vm1, %v2242_v1, %v1952_v59  ;;  %v1103_v15 = vsel %vm270_vm1, %v2228_v51, %v1951_v18 }
  0xdd   : > { %v1960_v4 = vpop.permute.xlu1 %1959  ;;  %v1955_v3 = vpop.permute.xlu0 %1954 }
  0xde   : > { %v1957_v50 = vunpack.i.h.bf16 %v1955_v3  ;;  %v1956_v48 = vunpack.i.l.bf16 %v1955_v3  ;;  %v1962_v29 = vunpack.i.h.bf16 %v1960_v4  ;;  %v1961_v30 = vunpack.i.l.bf16 %v1960_v4 }
  0xe0   : > { %v469_v0 = vsel %vm276_vm3, %v467_v20, %v1956_v48  ;;  %v470_v14 = vsel %vm276_vm3, %v468_v53, %v1957_v50  ;;  %v499_v1 = vsel %vm273_vm2, %v497_v44, %v1961_v30  ;;  %v500_v38 = vsel %vm273_vm2, %v498_v19, %v1962_v29 }
  0xe1   : > { %v1970_v17 = vpop.permute.xlu1 %1969  ;;  %v509_v25 = vpack.c.bf16 %v470_v14, %v469_v0  ;;  %v1965_v34 = vpop.permute.xlu0 %1964 }
  0xe2   : > { %v1972_v9 = vunpack.i.h.bf16 %v1970_v17  ;;  %v1971_v35 = vunpack.i.l.bf16 %v1970_v17  ;;  %v1967_v16 = vunpack.i.h.bf16 %v1965_v34  ;;  %v1966_v47 = vunpack.i.l.bf16 %v1965_v34 }
  0xe3   : > { %1705 = vmatprep.mubr.msk.bf16.mxu0 %vm541_vm4, %v509_v25 }
  0xe4   : > { %v1075_v33 = vsel %vm276_vm3, %v1073_v61, %v1966_v47  ;;  %v1076_v39 = vsel %vm276_vm3, %v1074_v23, %v1967_v16  ;;  %v1105_v31 = vsel %vm273_vm2, %v1103_v15, %v1971_v35  ;;  %v1106_v63 = vsel %vm273_vm2, %v1104_v41, %v1972_v9 }
  0xe5   : > { %v1980_v27 = vpop.permute.xlu1 %1979  ;;  %v1115_v36 = vpack.c.bf16 %v1076_v39, %v1075_v33  ;;  %v1975_v22 = vpop.permute.xlu0 %1974 }
  0xe6   : > { %v1982_v28 = vunpack.i.h.bf16 %v1980_v27  ;;  %v1981_v60 = vunpack.i.l.bf16 %v1980_v27  ;;  %v1977_v40 = vunpack.i.h.bf16 %v1975_v22  ;;  %v1976_v21 = vunpack.i.l.bf16 %v1975_v22 }
  0xe7   : > { %1727 = vmatprep.mubr.msk.bf16.mxu1 %vm541_vm4, %v1115_v36 }
  0xe8   : > { %v1107_v37 = vsel %vm276_vm3, %v1105_v31, %v1981_v60  ;;  %v1108_v56 = vsel %vm276_vm3, %v1106_v63, %v1982_v28  ;;  %v502_v58 = vsel %vm276_vm3, %v500_v38, %v1977_v40  ;;  %v501_v8 = vsel %vm276_vm3, %v499_v1, %v1976_v21 }
  0xe9   : > { %v1116_v51 = vpack.c.bf16 %v1108_v56, %v1107_v37  ;;  %v510_v6 = vpack.c.bf16 %v502_v58, %v501_v8 }
  0xeb   : > { %1728 = vmatmul.mubr.msk.bf16.gmra.mrb[12].mxu1 %vm541_vm4, %v1116_v51  ;;  %1706 = vmatmul.mubr.msk.bf16.gmra.mrb[12].mxu0 %vm541_vm4, %v510_v6 }
 0x176   : > { %v1717_v2 = vpop.f32.mrb[0].mxu1  ;;  %v1695_v49 = vpop.f32.mrb[0].mxu0 }
 0x177   : > { %v1208_v46 = vadd.f32 %v1717_v2, %v2493_v26  ;;  %v1199_v42 = vpop.f32.mrb[1].mxu1  ;;  %v609_v11 = vadd.f32 %v1695_v49, %v2493_v26  ;;  %v600_v10 = vpop.f32.mrb[1].mxu0 }
 0x178   : > { %v1200_v43 = vadd.f32 %v2493_v26, %v1199_v42  ;;  %v1718_v32 = vpop.f32.mrb[2].mxu1  ;;  %v601_v55 = vadd.f32 %v2493_v26, %v600_v10  ;;  %v1696_v4 = vpop.f32.mrb[2].mxu0 }
 0x179   : > { %v1264_v5 = vmul.f32 0.2, %v1208_v46  ;;  %v1211_v54 = vadd.f32 %v1718_v32, %v2493_v26  ;;  %v1202_v45 = vpop.f32.mrb[3].mxu1  ;;  %v665_v57 = vmul.f32 0.2, %v609_v11  ;;  %v612_v13 = vadd.f32 %v1696_v4, %v2493_v26  ;;  %v603_v7 = vpop.f32.mrb[3].mxu0 }
 0x17a   : > { %v1262_v3 = vmul.f32 0.2, %v1200_v43  ;;  %v1203_v50 = vadd.f32 %v2493_v26, %v1202_v45  ;;  %v663_v20 = vmul.f32 0.2, %v601_v55  ;;  %v604_v52 = vadd.f32 %v2493_v26, %v603_v7 }
 0x17b   : > { %v1280_v48 = vmax.f32 %v1208_v46, %v1264_v5  ;;  %v1265_v53 = vmul.f32 0.2, %v1211_v54  ;;  %v681_v12 = vmax.f32 %v609_v11, %v665_v57  ;;  %v666_v59 = vmul.f32 0.2, %v612_v13 }
 0x17c   : > { %v1278_v62 = vmax.f32 %v1200_v43, %v1262_v3  ;;  %v1263_v0 = vmul.f32 0.2, %v1203_v50  ;;  %v679_v17 = vmax.f32 %v601_v55, %v663_v20  ;;  %v664_v19 = vmul.f32 0.2, %v604_v52 }
 0x17d   : > { %v1602_v14 = vpack.c.bf16 %v1280_v48, %v1280_v48  ;;  %v1281_v24 = vmax.f32 %v1211_v54, %v1265_v53  ;;  %v1586_v18 = vpack.c.bf16 %v681_v12, %v681_v12  ;;  %v682_v34 = vmax.f32 %v612_v13, %v666_v59 }
 0x17e   : > { %v1600_v25 = vpack.c.bf16 %v1278_v62, %v1278_v62  ;;  %v1279_v9 = vmax.f32 %v1203_v50, %v1263_v0  ;;  %v1584_v35 = vpack.c.bf16 %v679_v17, %v679_v17  ;;  %v680_v47 = vmax.f32 %v604_v52, %v664_v19 }
 0x17f   : > { %1555 = vst.msk [vmem:[%s2507_s11 + $0x48] sm:$0xf] %vm710_vm5, %v1602_v14  ;;  %v1603_v16 = vpack.c.bf16 %v1281_v24, %v1281_v24  ;;  %1485 = vst.msk [vmem:[%s2507_s11 + $0x8] sm:$0xf] %vm710_vm5, %v1586_v18  ;;  %v1587_v23 = vpack.c.bf16 %v682_v34, %v682_v34 }
 0x180   : > { %1551 = vst.msk [vmem:[%s2507_s11 + $0x40] sm:$0xf] %vm710_vm5, %v1600_v25  ;;  %v1601_v61 = vpack.c.bf16 %v1279_v9, %v1279_v9  ;;  %711 = vst.msk [vmem:[%s2507_s11] sm:$0xf] %vm710_vm5, %v1584_v35  ;;  %v1585_v29 = vpack.c.bf16 %v680_v47, %v680_v47 }
 0x181   : > { %1556 = vst.msk [vmem:[%s2507_s11 + $0x4c] sm:$0xf] %vm710_vm5, %v1603_v16  ;;  %1486 = vst.msk [vmem:[%s2507_s11 + $0xc] sm:$0xf] %vm710_vm5, %v1587_v23 }
 0x182   : > { %1552 = vst.msk [vmem:[%s2507_s11 + $0x44] sm:$0xf] %vm710_vm5, %v1601_v61  ;;  %712 = vst.msk [vmem:[%s2507_s11 + $0x4] sm:$0xf] %vm710_vm5, %v1585_v29 }
 0x18e   : > { %v1721_v30 = vpop.f32.mrb[4].mxu1  ;;  %v1699_v44 = vpop.f32.mrb[4].mxu0 }
 0x18f   : > { %v1224_v41 = vadd.f32 %v1721_v30, %v2493_v26  ;;  %v1215_v33 = vpop.f32.mrb[5].mxu1  ;;  %v625_v39 = vadd.f32 %v1699_v44, %v2493_v26  ;;  %v616_v27 = vpop.f32.mrb[5].mxu0 }
 0x190   : > { %v1216_v15 = vadd.f32 %v2493_v26, %v1215_v33  ;;  %v1722_v36 = vpop.f32.mrb[6].mxu1  ;;  %v617_v60 = vadd.f32 %v2493_v26, %v616_v27  ;;  %v1700_v22 = vpop.f32.mrb[6].mxu0 }
 0x191   : > { %v1268_v28 = vmul.f32 0.2, %v1224_v41  ;;  %v1227_v31 = vadd.f32 %v1722_v36, %v2493_v26  ;;  %v1218_v63 = vpop.f32.mrb[7].mxu1  ;;  %v669_v40 = vmul.f32 0.2, %v625_v39  ;;  %v628_v1 = vadd.f32 %v1700_v22, %v2493_v26  ;;  %v619_v38 = vpop.f32.mrb[7].mxu0 }
 0x192   : > { %v1266_v21 = vmul.f32 0.2, %v1216_v15  ;;  %v1219_v37 = vadd.f32 %v2493_v26, %v1218_v63  ;;  %v667_v51 = vmul.f32 0.2, %v617_v60  ;;  %v620_v8 = vadd.f32 %v2493_v26, %v619_v38 }
 0x193   : > { %v1284_v56 = vmax.f32 %v1224_v41, %v1268_v28  ;;  %v1269_v58 = vmul.f32 0.2, %v1227_v31  ;;  %v685_v6 = vmax.f32 %v625_v39, %v669_v40  ;;  %v670_v49 = vmul.f32 0.2, %v628_v1 }
 0x194   : > { %v1282_v2 = vmax.f32 %v1216_v15, %v1266_v21  ;;  %v1267_v46 = vmul.f32 0.2, %v1219_v37  ;;  %v683_v11 = vmax.f32 %v617_v60, %v667_v51  ;;  %v668_v43 = vmul.f32 0.2, %v620_v8 }
 0x195   : > { %v1606_v42 = vpack.c.bf16 %v1284_v56, %v1284_v56  ;;  %v1285_v10 = vmax.f32 %v1227_v31, %v1269_v58  ;;  %v1590_v32 = vpack.c.bf16 %v685_v6, %v685_v6  ;;  %v686_v55 = vmax.f32 %v628_v1, %v670_v49 }
 0x196   : > { %v1604_v5 = vpack.c.bf16 %v1282_v2, %v1282_v2  ;;  %v1283_v4 = vmax.f32 %v1219_v37, %v1267_v46  ;;  %v1588_v54 = vpack.c.bf16 %v683_v11, %v683_v11  ;;  %v684_v57 = vmax.f32 %v620_v8, %v668_v43 }
 0x197   : > { %1563 = vst.msk [vmem:[%s2507_s11 + $0x58] sm:$0xf] %vm710_vm5, %v1606_v42  ;;  %v1607_v45 = vpack.c.bf16 %v1285_v10, %v1285_v10  ;;  %1493 = vst.msk [vmem:[%s2507_s11 + $0x18] sm:$0xf] %vm710_vm5, %v1590_v32  ;;  %v1591_v3 = vpack.c.bf16 %v686_v55, %v686_v55 }
 0x198   : > { %1559 = vst.msk [vmem:[%s2507_s11 + $0x50] sm:$0xf] %vm710_vm5, %v1604_v5  ;;  %v1605_v13 = vpack.c.bf16 %v1283_v4, %v1283_v4  ;;  %1489 = vst.msk [vmem:[%s2507_s11 + $0x10] sm:$0xf] %vm710_vm5, %v1588_v54  ;;  %v1589_v7 = vpack.c.bf16 %v684_v57, %v684_v57 }
 0x199   : > { %1564 = vst.msk [vmem:[%s2507_s11 + $0x5c] sm:$0xf] %vm710_vm5, %v1607_v45  ;;  %1494 = vst.msk [vmem:[%s2507_s11 + $0x1c] sm:$0xf] %vm710_vm5, %v1591_v3 }
 0x19a   : > { %1560 = vst.msk [vmem:[%s2507_s11 + $0x54] sm:$0xf] %vm710_vm5, %v1605_v13  ;;  %1490 = vst.msk [vmem:[%s2507_s11 + $0x14] sm:$0xf] %vm710_vm5, %v1589_v7 }
 0x1a6   : > { %v1725_v50 = vpop.f32.mrb[8].mxu1  ;;  %v1703_v48 = vpop.f32.mrb[8].mxu0 }
 0x1a7   : > { %v1240_v20 = vadd.f32 %v1725_v50, %v2493_v26  ;;  %v1231_v53 = vpop.f32.mrb[9].mxu1  ;;  %v641_v52 = vadd.f32 %v1703_v48, %v2493_v26  ;;  %v632_v12 = vpop.f32.mrb[9].mxu0 }
 0x1a8   : > { %v1232_v62 = vadd.f32 %v2493_v26, %v1231_v53  ;;  %v1726_v59 = vpop.f32.mrb[10].mxu1  ;;  %v633_v14 = vadd.f32 %v2493_v26, %v632_v12  ;;  %v1704_v17 = vpop.f32.mrb[10].mxu0 }
 0x1a9   : > { %v1272_v0 = vmul.f32 0.2, %v1240_v20  ;;  %v1243_v24 = vadd.f32 %v1726_v59, %v2493_v26  ;;  %v1234_v19 = vpop.f32.mrb[11].mxu1  ;;  %v673_v18 = vmul.f32 0.2, %v641_v52  ;;  %v644_v34 = vadd.f32 %v1704_v17, %v2493_v26  ;;  %v635_v9 = vpop.f32.mrb[11].mxu0 }
 0x1aa   : > { %v1270_v25 = vmul.f32 0.2, %v1232_v62  ;;  %v1235_v35 = vadd.f32 %v2493_v26, %v1234_v19  ;;  %v671_v47 = vmul.f32 0.2, %v633_v14  ;;  %v636_v61 = vadd.f32 %v2493_v26, %v635_v9 }
 0x1ab   : > { %v1288_v16 = vmax.f32 %v1240_v20, %v1272_v0  ;;  %v1273_v23 = vmul.f32 0.2, %v1243_v24  ;;  %v689_v29 = vmax.f32 %v641_v52, %v673_v18  ;;  %v674_v44 = vmul.f32 0.2, %v644_v34 }
 0x1ac   : > { %v1286_v30 = vmax.f32 %v1232_v62, %v1270_v25  ;;  %v1271_v41 = vmul.f32 0.2, %v1235_v35  ;;  %v687_v39 = vmax.f32 %v633_v14, %v671_v47  ;;  %v672_v15 = vmul.f32 0.2, %v636_v61 }
 0x1ad   : > { %v1610_v33 = vpack.c.bf16 %v1288_v16, %v1288_v16  ;;  %v1289_v27 = vmax.f32 %v1243_v24, %v1273_v23  ;;  %v1594_v36 = vpack.c.bf16 %v689_v29, %v689_v29  ;;  %v690_v60 = vmax.f32 %v644_v34, %v674_v44 }
 0x1ae   : > { %v1608_v28 = vpack.c.bf16 %v1286_v30, %v1286_v30  ;;  %v1287_v22 = vmax.f32 %v1235_v35, %v1271_v41  ;;  %v1592_v31 = vpack.c.bf16 %v687_v39, %v687_v39  ;;  %v688_v40 = vmax.f32 %v636_v61, %v672_v15 }
 0x1af   : > { %1571 = vst.msk [vmem:[%s2507_s11 + $0x68] sm:$0xf] %vm710_vm5, %v1610_v33  ;;  %v1611_v63 = vpack.c.bf16 %v1289_v27, %v1289_v27  ;;  %1501 = vst.msk [vmem:[%s2507_s11 + $0x28] sm:$0xf] %vm710_vm5, %v1594_v36  ;;  %v1595_v21 = vpack.c.bf16 %v690_v60, %v690_v60 }
 0x1b0   : > { %1567 = vst.msk [vmem:[%s2507_s11 + $0x60] sm:$0xf] %vm710_vm5, %v1608_v28  ;;  %v1609_v1 = vpack.c.bf16 %v1287_v22, %v1287_v22  ;;  %1497 = vst.msk [vmem:[%s2507_s11 + $0x20] sm:$0xf] %vm710_vm5, %v1592_v31  ;;  %v1593_v38 = vpack.c.bf16 %v688_v40, %v688_v40 }
 0x1b1   : > { %1572 = vst.msk [vmem:[%s2507_s11 + $0x6c] sm:$0xf] %vm710_vm5, %v1611_v63  ;;  %1502 = vst.msk [vmem:[%s2507_s11 + $0x2c] sm:$0xf] %vm710_vm5, %v1595_v21 }
 0x1b2   : > { %1568 = vst.msk [vmem:[%s2507_s11 + $0x64] sm:$0xf] %vm710_vm5, %v1609_v1  ;;  %1498 = vst.msk [vmem:[%s2507_s11 + $0x24] sm:$0xf] %vm710_vm5, %v1593_v38 }
 0x1be   : > { %v1729_v37 = vpop.f32.mrb[12].mxu1  ;;  %v1707_v56 = vpop.f32.mrb[12].mxu0 }
 0x1bf   : > { %v1256_v51 = vadd.f32 %v1729_v37, %v2493_v26  ;;  %v1247_v58 = vpop.f32.mrb[13].mxu1  ;;  %v657_v8 = vadd.f32 %v1707_v56, %v2493_v26  ;;  %v648_v6 = vpop.f32.mrb[13].mxu0 }
 0x1c0   : > { %v1248_v2 = vadd.f32 %v2493_v26, %v1247_v58  ;;  %v1730_v49 = vpop.f32.mrb[14].mxu1  ;;  %v649_v42 = vadd.f32 %v2493_v26, %v648_v6  ;;  %v1708_v11 = vpop.f32.mrb[14].mxu0 }
 0x1c1   : > { %v1276_v46 = vmul.f32 0.2, %v1256_v51  ;;  %v1259_v10 = vadd.f32 %v1730_v49, %v2493_v26  ;;  %v1250_v43 = vpop.f32.mrb[15].mxu1  ;;  %v677_v32 = vmul.f32 0.2, %v657_v8  ;;  %v660_v55 = vadd.f32 %v1708_v11, %v2493_v26  ;;  %v651_v4 = vpop.f32.mrb[15].mxu0 }
 0x1c2   : > { %v1274_v5 = vmul.f32 0.2, %v1248_v2  ;;  %v1251_v54 = vadd.f32 %v2493_v26, %v1250_v43  ;;  %v675_v57 = vmul.f32 0.2, %v649_v42  ;;  %v652_v13 = vadd.f32 %v2493_v26, %v651_v4 }
 0x1c3   : > { %v1292_v45 = vmax.f32 %v1256_v51, %v1276_v46  ;;  %v1277_v3 = vmul.f32 0.2, %v1259_v10  ;;  %v693_v7 = vmax.f32 %v657_v8, %v677_v32  ;;  %v678_v48 = vmul.f32 0.2, %v660_v55 }
 0x1c4   : > { %v1290_v50 = vmax.f32 %v1248_v2, %v1274_v5  ;;  %v1275_v20 = vmul.f32 0.2, %v1251_v54  ;;  %v691_v52 = vmax.f32 %v649_v42, %v675_v57  ;;  %v676_v62 = vmul.f32 0.2, %v652_v13 }
 0x1c5   : > { %v1614_v53 = vpack.c.bf16 %v1292_v45, %v1292_v45  ;;  %v1293_v12 = vmax.f32 %v1259_v10, %v1277_v3  ;;  %v1598_v59 = vpack.c.bf16 %v693_v7, %v693_v7  ;;  %v694_v14 = vmax.f32 %v660_v55, %v678_v48 }
 0x1c6   : > { %v1612_v0 = vpack.c.bf16 %v1290_v50, %v1290_v50  ;;  %v1291_v17 = vmax.f32 %v1251_v54, %v1275_v20  ;;  %v1596_v26 = vpack.c.bf16 %v691_v52, %v691_v52  ;;  %v692_v19 = vmax.f32 %v652_v13, %v676_v62 }
 0x1c7   : > { %1579 = vst.msk [vmem:[%s2507_s11 + $0x78] sm:$0xf] %vm710_vm5, %v1614_v53  ;;  %v1615_v24 = vpack.c.bf16 %v1293_v12, %v1293_v12  ;;  %1509 = vst.msk [vmem:[%s2507_s11 + $0x38] sm:$0xf] %vm710_vm5, %v1598_v59  ;;  %v1599_v18 = vpack.c.bf16 %v694_v14, %v694_v14 }
 0x1c8   : > { %1575 = vst.msk [vmem:[%s2507_s11 + $0x70] sm:$0xf] %vm710_vm5, %v1612_v0  ;;  %v1613_v25 = vpack.c.bf16 %v1291_v17, %v1291_v17  ;;  %1505 = vst.msk [vmem:[%s2507_s11 + $0x30] sm:$0xf] %vm710_vm5, %v1596_v26  ;;  %v1597_v34 = vpack.c.bf16 %v692_v19, %v692_v19 }
 0x1c9   : > { %1580 = vst.msk [vmem:[%s2507_s11 + $0x7c] sm:$0xf] %vm710_vm5, %v1615_v24  ;;  %1510 = vst.msk [vmem:[%s2507_s11 + $0x3c] sm:$0xf] %vm710_vm5, %v1599_v18 }
 0x1ca   : > { %1576 = vst.msk [vmem:[%s2507_s11 + $0x74] sm:$0xf] %vm710_vm5, %v1613_v25  ;;  %1506 = vst.msk [vmem:[%s2507_s11 + $0x34] sm:$0xf] %vm710_vm5, %v1597_v34 }
 0x1cb PF: > { %s13_s12 = sadd.s32 1, %s1995_s12  }
 0x1cc   : > { %p10_p4 = scmp.ge.s32.totalorder %s13_s12, 4  }
 0x1ce   :  { %12 = sbr.rel (!%p10_p4) target bundleno = 1 (0x1), region = 93 }

// kernel: nlayer_discriminator_forward.6
= control target key start
LH: loop header
LB: loop body
LE: loop exit
PB: predicated region body
PF: predicated region fallthrough
CT: control target
= control target key end

     0   :  { %s953_s15 = smov 0   ;;  %s1144_s0 = inlined_call_operand.vmem [shape: bf16[2,9,9,32], index: 0, kind: input, shape index: {}]   ;;  %s1145_s1 = inlined_call_operand.vmem [shape: bf16[128,16], index: 1, kind: input, shape index: {}]   ;;  %s1146_s2 = inlined_call_operand.vmem [shape: bf16[2,8,8,16], index: 2, kind: output, shape index: {0}]   ;;  %s1147_s3 = inlined_call_operand.vmem [shape: f32[2,1,16], index: 3, kind: output, shape index: {1}]   ;;  %s1148_s4 = inlined_call_operand.vmem [shape: f32[2,1,16], index: 4, kind: output, shape index: {2}]  }
   0x1 LB: > { %s735_s16 = sadd.s32 4294967295, %s923_s15   ;;  %p739_p0 = scmp.ge.s32.totalorder %s923_s15, 1  ;;  %s923_s15 = sphi %s953_s15, %s15_s15  }
   0x2   : > { %p167_p1 = scmp.lt.s32.totalorder %s923_s15, 3 }
   0x4   : > { %p168_p2 = pnand %p739_p0, %p167_p1 }
   0x5   : > { %p199_p3 = scmp.lt.s32.totalorder (!%p168_p2), %s735_s16, 1  ;;  %v909_v0 = vld [vmem:[%s1145_s1] sm:$0xff] (!%p168_p2)   ;;  %v910_v1 = vld [vmem:[%s1145_s1 + $0x8] sm:$0xff] (!%p168_p2)   ;;  %v911_v2 = vld [vmem:[%s1145_s1 + $0x10] sm:$0xff] (!%p168_p2)   ;;  %vm262_vm0 = vcmask (!%p168_p2), 1046528   ;;  %s925_s29 = smov (!%p168_p2), 64  }
   0x6   : > { %171 = sbr.rel (%p168_p2) target bundleno = 401 (0x191), region = 28  ;;  %797 = vmatprep.subr.bf16.mxu0 (!%p168_p2), %v909_v0  ;;  %821 = vmatprep.subr.bf16.mxu1 (!%p168_p2), %v909_v0  ;;  %v912_v19 = vld [vmem:[%s1145_s1 + $0x18] sm:$0xff] (!%p168_p2)   ;;  %v913_v39 = vld [vmem:[%s1145_s1 + $0x20] sm:$0xff] (!%p168_p2)   ;;  %s926_s6 = smov (!%p168_p2), 32   ;;  %v914_v59 = vld [vmem:[%s1145_s1 + $0x28] sm:$0xff] (!%p168_p2)   ;;  %vm280_vm1 = vcmask (!%p168_p2), 261120  }
   0x7   : > { %798 = vmatpush3.bf16.msra.mxu0 (!%p168_p2), %v909_v0  ;;  %829 = vmatpush3.bf16.msra.mxu1 (!%p168_p2), %v909_v0  ;;  %s927_s9 = smov (!%p168_p2), 96   ;;  %vm282_vm2 = vcmask (!%p168_p2), 523264   ;;  %vm284_vm3 = vcmask (!%p168_p2), 785408   ;;  %vm538_vm4 = vcmask (!%p168_p2), 130048   ;;  %vm595_vm5 = vcmask (!%p168_p2), 125952  }
   0x8   : > { %799 = vmatprep.subr.bf16.mxu0 (!%p168_p2), %v910_v1  ;;  %822 = vmatprep.subr.bf16.mxu1 (!%p168_p2), %v910_v1  ;;  %vm627_vm6 = vcmask (!%p168_p2), 122880  }
   0xb   : > { %800 = vmatpush3.bf16.msra.mxu0 (!%p168_p2), %v910_v1  ;;  %830 = vmatpush3.bf16.msra.mxu1 (!%p168_p2), %v910_v1 }
   0xc   : > { %801 = vmatprep.subr.bf16.mxu0 (!%p168_p2), %v911_v2  ;;  %823 = vmatprep.subr.bf16.mxu1 (!%p168_p2), %v911_v2 }
   0xd   : > { %s1150_s16 = smov (!%p199_p3, %s735_s16), 1 }
   0xe   : > { %s837_s21 = smul.u32 72, %s1150_s16  ;;  %s780_s14 = sshll.u32 %s1150_s16, 5 }
   0xf   : > { %802 = vmatpush3.bf16.msra.mxu0 %v911_v2  ;;  %831 = vmatpush3.bf16.msra.mxu1 %v911_v2  ;;  %s1099_s19 = scalar_lea.vmem %s1146_s2, %s780_s14  ;;  %s211_s22 = scalar_lea.vmem %s1147_s3, %s1150_s16 }
  0x10   : > { %s976_s26 = scalar_lea.vmem %s1144_s0, %s837_s21  ;;  %803 = vmatprep.subr.bf16.mxu0 %v912_v19  ;;  %824 = vmatprep.subr.bf16.mxu1 %v912_v19  ;;  %s214_s25 = scalar_lea.vmem %s1148_s4, %s1150_s16 }
  0x11   : > { %v751_v3 = vld [vmem:[%s976_s26 + $0x28] ss:$8 sps:$4 sm:$0xff]   ;;  %v746_v5 = vld [vmem:[%s976_s26 + $0x14] sm:$0x1]  ;;  %v747_v10 = vld [vmem:[%s976_s26 + $0x18] ss:$8 sps:$4 sm:$0xff]  }
  0x12   : > { %v743_v4 = vld [vmem:[%s976_s26 + $0x8] ss:$8 sps:$4 sm:$0xff]   ;;  %v981_v6 = vunpack.c.l.bf16 %v751_v3  ;;  %v983_v7 = vunpack.c.h.bf16 %v751_v3  ;;  %v748_v11 = vld [vmem:[%s976_s26 + $0x1c] sm:$0x1]  ;;  %v744_v12 = vld [vmem:[%s976_s26 + $0xc] sm:$0x1]  ;;  %v229_v13 = vunpack.c.l.bf16 %v746_v5  ;;  %v992_v14 = vunpack.c.l.bf16 %v747_v10 }
  0x13   : > { %v985_v8 = vunpack.c.l.bf16 %v743_v4  ;;  %v987_v9 = vunpack.c.h.bf16 %v743_v4  ;;  %v234_v15 = vunpack.c.l.bf16 %v748_v11  ;;  %v994_v16 = vunpack.c.h.bf16 %v747_v10  ;;  %v997_v17 = vld [vmem:[%s976_s26] ss:$56 sps:$4 sm:$0xff]   ;;  %v217_v18 = vld [vmem:[%s976_s26 + $0x4] sm:$0x1]  ;;  %v752_v33 = vld [vmem:[%s976_s26 + $0x2c] sm:$0x1]  ;;  %804 = vmatpush3.bf16.msra.mxu0 %v912_v19  ;;  %832 = vmatpush3.bf16.msra.mxu1 %v912_v19 }
  0x14   : > { %v859_v20 = vpack.i.bf16 %v983_v7, %v981_v6  ;;  %v224_v23 = vunpack.c.l.bf16 %v744_v12  ;;  %v750_v24 = vld [vmem:[%s976_s26 + $0x24] sm:$0x1]  ;;  %v295_v25 = vrot.slane %v229_v13, 1  ;;  %v311_v26 = vrot.slane %v992_v14, 1  ;;  %v754_v34 = vld [vmem:[%s976_s26 + $0x34] sm:$0x1]  ;;  %805 = vmatprep.subr.bf16.mxu0 %v913_v39  ;;  %825 = vmatprep.subr.bf16.mxu1 %v913_v39 }
  0x15   : > { %v849_v21 = vpack.i.bf16 %v987_v9, %v985_v8  ;;  %v294_v22 = vrot.slane %v987_v9, 1  ;;  %v312_v27 = vrot.slane %v234_v15, 1  ;;  %v854_v28 = vpack.i.bf16 %v994_v16, %v992_v14  ;;  %v756_v44 = vld [vmem:[%s976_s26 + $0x3c] sm:$0x1]  ;;  %v757_v49 = vld [vmem:[%s976_s26 + $0x40] sm:$0xf] }
  0x16   : > { %860 = vrot.lane.b32.xlu1 %v859_v20, %s925_s29  ;;  %v274_v29 = vrot.slane %v985_v8, 1  ;;  %v275_v30 = vrot.slane %v224_v23, 1  ;;  %v218_v31 = vunpack.c.l.bf16 %v997_v17  ;;  %v219_v32 = vunpack.c.l.bf16 %v217_v18  ;;  %v758_v54 = vld [vmem:[%s976_s26 + $0x44] sm:$0x1]  ;;  %v915_v12 = vld [vmem:[%s1145_s1 + $0x30] sm:$0xff]   ;;  %v916_v19 = vld [vmem:[%s1145_s1 + $0x38] sm:$0xff]  }
  0x17   : > { %850 = vrot.lane.b32.xlu0 %v849_v21, %s925_s29  ;;  %v296_v35 = vsel %vm262_vm0, %v294_v22, %v295_v25  ;;  %v313_v36 = vsel %vm262_vm0, %v311_v26, %v312_v27  ;;  %v239_v37 = vunpack.c.l.bf16 %v750_v24  ;;  %v328_v38 = vrot.slane %v994_v16, 1  ;;  %806 = vmatpush3.bf16.msra.mxu0 %v913_v39 }
  0x18   : > { %v869_v40 = vpack.i.bf16 %v313_v36, %v296_v35  ;;  %v276_v41 = vsel %vm262_vm0, %v274_v29, %v275_v30  ;;  %v263_v42 = vrot.slane %v218_v31, 1  ;;  %v264_v43 = vrot.slane %v219_v32, 1  ;;  %833 = vmatpush3.bf16.msra.mxu1 %v913_v39  ;;  %807 = vmatprep.subr.bf16.mxu0 %v914_v59 }
  0x19   : > { %v874_v45 = vpack.i.bf16 %v296_v35, %v276_v41  ;;  %v329_v46 = vrot.slane %v239_v37, 1  ;;  %v244_v47 = vunpack.c.l.bf16 %v752_v33  ;;  %v345_v48 = vrot.slane %v981_v6, 1  ;;  %826 = vmatprep.subr.bf16.mxu1 %v914_v59 }
  0x1a   : > { %870 = vrot.lane.b32.xlu1 %v869_v40, %s926_s6  ;;  %v265_v50 = vsel %vm262_vm0, %v263_v42, %v264_v43  ;;  %v249_v51 = vunpack.c.l.bf16 %v754_v34  ;;  %v362_v52 = vrot.slane %v983_v7, 1  ;;  %v1035_v53 = vunpack.c.h.bf16 %v997_v17 }
  0x1b   : > { %855 = vrot.lane.b32.xlu0 %v854_v28, %s925_s29  ;;  %v864_v55 = vpack.i.bf16 %v276_v41, %v265_v50  ;;  %v330_v56 = vsel %vm262_vm0, %v328_v38, %v329_v46  ;;  %v346_v57 = vrot.slane %v244_v47, 1  ;;  %v254_v58 = vunpack.c.l.bf16 %v756_v44  ;;  %808 = vmatpush3.bf16.msra.mxu0 %v914_v59 }
  0x1c   : > { %v363_v60 = vrot.slane %v249_v51, 1  ;;  %v379_v61 = vrot.slane %v1035_v53, 1  ;;  %v258_v62 = vunpack.c.l.bf16 %v757_v49  ;;  %v259_v1 = vunpack.c.l.bf16 %v758_v54  ;;  %834 = vmatpush3.bf16.msra.mxu1 %v914_v59  ;;  %809 = vmatprep.subr.bf16.mxu0 %v915_v12 }
  0x1d   : > { %v347_v63 = vsel %vm262_vm0, %v345_v48, %v346_v57  ;;  %v380_v0 = vrot.slane %v254_v58, 1  ;;  %v879_v2 = vpack.i.bf16 %v330_v56, %v313_v36  ;;  %827 = vmatprep.subr.bf16.mxu1 %v915_v12 }
  0x1e   : > { %875 = vrot.lane.b32.xlu1 %v874_v45, %s927_s9  ;;  %v884_v3 = vpack.i.bf16 %v347_v63, %v330_v56  ;;  %v364_v4 = vsel %vm262_vm0, %v362_v52, %v363_v60  ;;  %v396_v10 = vrot.slane %v258_v62, 1  ;;  %v397_v11 = vrot.slane %v259_v1, 1 }
  0x1f   : > { %865 = vrot.lane.b32.xlu0 %v864_v55, %s926_s6  ;;  %v381_v5 = vsel %vm262_vm0, %v379_v61, %v380_v0  ;;  %v894_v13 = vpack.i.bf16 %v364_v4, %v347_v63  ;;  %810 = vmatpush3.bf16.msra.mxu0 %v915_v12  ;;  %v899_v20 = vpack.i.bf16 %v258_v62, %v1035_v53 }
  0x20   : > { %v889_v15 = vpack.i.bf16 %v381_v5, %v364_v4  ;;  %v398_v18 = vsel %vm262_vm0, %v396_v10, %v397_v11  ;;  %835 = vmatpush3.bf16.msra.mxu1 %v915_v12  ;;  %811 = vmatprep.subr.bf16.mxu0 %v916_v19 }
  0x21   : > { %v904_v21 = vpack.i.bf16 %v398_v18, %v381_v5  ;;  %828 = vmatprep.subr.bf16.mxu1 %v916_v19 }
  0x22   : > { %880 = vrot.lane.b32.xlu1 %v879_v2, %s927_s9 }
  0x23   : > { %885 = vrot.lane.b32.xlu0 %v884_v3, %s926_s6  ;;  %812 = vmatpush3.bf16.msra.mxu0 %v916_v19 }
  0x24   : > { %836 = vmatpush3.bf16.msra.mxu1 %v916_v19 }
  0x26   : > { %895 = vrot.lane.b32.xlu1 %v894_v13, %s927_s9 }
  0x27   : > { %890 = vrot.lane.b32.xlu0 %v889_v15, %s926_s6 }
  0x2a   : > { %905 = vrot.lane.b32.xlu1 %v904_v21, %s927_s9 }
  0x2b   : > { %900 = vrot.lane.b32.xlu0 %v899_v20, %s925_s29 }
  0x88   : > { %v861_v22 = vpop.permute.xlu1 %860 }
  0x89   : > { %v851_v23 = vpop.permute.xlu0 %850  ;;  %v863_v55 = vunpack.i.h.bf16 %v861_v22  ;;  %v862_v56 = vunpack.i.l.bf16 %v861_v22 }
  0x8a   : > { %v853_v30 = vunpack.i.h.bf16 %v851_v23  ;;  %v852_v32 = vunpack.i.l.bf16 %v851_v23 }
  0x8c   : > { %v871_v24 = vpop.permute.xlu1 %870 }
  0x8d   : > { %v856_v25 = vpop.permute.xlu0 %855  ;;  %v873_v26 = vunpack.i.h.bf16 %v871_v24  ;;  %v872_v27 = vunpack.i.l.bf16 %v871_v24 }
  0x8e   : > { %v858_v35 = vunpack.i.h.bf16 %v856_v25  ;;  %v857_v36 = vunpack.i.l.bf16 %v856_v25 }
  0x8f   : > { %v334_v39 = vsel %vm280_vm1, %v992_v14, %v873_v26  ;;  %v317_v40 = vsel %vm280_vm1, %v987_v9, %v872_v27 }
  0x90   : > { %v876_v28 = vpop.permute.xlu1 %875  ;;  %v335_v50 = vsel %vm282_vm2, %v334_v39, %v858_v35  ;;  %v318_v9 = vsel %vm282_vm2, %v317_v40, %v857_v36 }
  0x91   : > { %v866_v29 = vpop.permute.xlu0 %865  ;;  %v878_v37 = vunpack.i.h.bf16 %v876_v28  ;;  %v877_v38 = vunpack.i.l.bf16 %v876_v28 }
  0x92   : > { %v868_v33 = vunpack.i.h.bf16 %v866_v29  ;;  %v867_v34 = vunpack.i.l.bf16 %v866_v29 }
  0x94   : > { %v281_v41 = vsel %vm280_vm1, %v218_v31, %v867_v34  ;;  %v300_v42 = vsel %vm280_vm1, %v985_v8, %v868_v33  ;;  %v881_v43 = vpop.permute.xlu1 %880 }
  0x95   : > { %v886_v44 = vpop.permute.xlu0 %885  ;;  %v283_v45 = vsel %vm282_vm2, %v281_v41, %v852_v32  ;;  %v301_v46 = vsel %vm282_vm2, %v300_v42, %v853_v30  ;;  %v883_v47 = vunpack.i.h.bf16 %v881_v43  ;;  %v882_v48 = vunpack.i.l.bf16 %v881_v43 }
  0x96   : > { %v888_v49 = vunpack.i.h.bf16 %v886_v44  ;;  %v887_v14 = vunpack.i.l.bf16 %v886_v44  ;;  %v285_v17 = vsel %vm284_vm3, %v283_v45, %v877_v38  ;;  %v302_v31 = vsel %vm284_vm3, %v301_v46, %v878_v37 }
  0x97   : > { %v405_v51 = vpack.c.bf16 %v302_v31, %v285_v17  ;;  %v319_v8 = vsel %vm284_vm3, %v318_v9, %v882_v48  ;;  %v336_v52 = vsel %vm284_vm3, %v335_v50, %v883_v47 }
  0x98   : > { %v351_v54 = vsel %vm280_vm1, %v994_v16, %v887_v14  ;;  %v896_v57 = vpop.permute.xlu1 %895  ;;  %v406_v59 = vpack.c.bf16 %v336_v52, %v319_v8  ;;  %v368_v60 = vsel %vm280_vm1, %v981_v6, %v888_v49 }
  0x99   : > { %v891_v58 = vpop.permute.xlu0 %890  ;;  %v898_v61 = vunpack.i.h.bf16 %v896_v57  ;;  %v897_v62 = vunpack.i.l.bf16 %v896_v57  ;;  %813 = vmatprep.mubr.bf16.mxu0 %v405_v51  ;;  %v352_v1 = vsel %vm282_vm2, %v351_v54, %v862_v56  ;;  %v369_v2 = vsel %vm282_vm2, %v368_v60, %v863_v55 }
  0x9a   : > { %v893_v63 = vunpack.i.h.bf16 %v891_v58  ;;  %v892_v0 = vunpack.i.l.bf16 %v891_v58  ;;  %814 = vmatmul.mubr.bf16.vlgmr.msra.gmra.mrb[0].mxu0 %v406_v59 }
  0x9b   : > { %v353_v16 = vsel %vm284_vm3, %v352_v1, %v897_v62  ;;  %v370_v3 = vsel %vm284_vm3, %v369_v2, %v898_v61 }
  0x9c   : > { %v906_v5 = vpop.permute.xlu1 %905  ;;  %v407_v10 = vpack.c.bf16 %v370_v3, %v353_v16  ;;  %v402_v15 = vsel %vm280_vm1, %v1035_v53, %v893_v63  ;;  %v385_v18 = vsel %vm280_vm1, %v983_v7, %v892_v0 }
  0x9d   : > { %v901_v4 = vpop.permute.xlu0 %900  ;;  %v908_v12 = vunpack.i.h.bf16 %v906_v5  ;;  %v907_v13 = vunpack.i.l.bf16 %v906_v5 }
  0x9e   : > { %v903_v11 = vunpack.i.h.bf16 %v901_v4  ;;  %v902_v6 = vunpack.i.l.bf16 %v901_v4  ;;  %817 = vmatprep.mubr.bf16.mxu1 %v407_v10 }
  0xa0   : > { %v386_v19 = vsel %vm282_vm2, %v385_v18, %v902_v6  ;;  %v403_v20 = vsel %vm282_vm2, %v402_v15, %v903_v11 }
  0xa1   : > { %v387_v21 = vsel %vm284_vm3, %v386_v19, %v907_v13  ;;  %v404_v22 = vsel %vm284_vm3, %v403_v20, %v908_v12 }
  0xa2   : > { %v408_v23 = vpack.c.bf16 %v404_v22, %v387_v21 }
  0xa4   : > { %818 = vmatmul.mubr.bf16.vlgmr.msra.gmra.mrb[0].mxu1 %v408_v23 }
 0x16d   : > { %v815_v24 = vpop.f32.mrb[0].mxu0 }
 0x16e   : > { %v507_v25 = vpop.f32.mrb[1].mxu0  ;;  %v563_v53 = vmul.f32 %v815_v24, %v815_v24  ;;  %v542_v37 = vsel %vm538_vm4, %v815_v24, 0.0 }
 0x16f   : > { %v561_v26 = vmul.f32 %v507_v25, %v507_v25  ;;  %v816_v7 = vpop.f32.mrb[2].mxu0  ;;  %v539_v29 = vsel %vm538_vm4, %v507_v25, 0.0 }
 0x170   : > { %v592_v27 = vpack.c.bf16 %v816_v7, %v815_v24  ;;  %v510_v28 = vpop.f32.mrb[3].mxu0  ;;  %v782_v30 = vpack.c.bf16 %v816_v7, %v816_v7  ;;  %v564_v39 = vmul.f32 %v816_v7, %v816_v7  ;;  %v572_v43 = vsel %vm538_vm4, %v563_v53, 0.0 }
 0x171   : > { %v540_v32 = vsel %vm538_vm4, %v510_v28, 0.0  ;;  %v562_v33 = vmul.f32 %v510_v28, %v510_v28  ;;  %v591_v35 = vpack.c.bf16 %v510_v28, %v507_v25  ;;  %v781_v36 = vpack.c.bf16 %v510_v28, %v510_v28 }
 0x172   : > { %769 = vst.msk [vmem:[%s1099_s19 + $0x8] sm:$0xf] %vm595_vm5, %v592_v27  ;;  %v541_v34 = vadd.f32 %v540_v32, %v539_v29  ;;  %v569_v38 = vsel %vm538_vm4, %v561_v26, 0.0  ;;  %771 = vst.msk [vmem:[%s1099_s19 + $0xc] sm:$0xf] %vm595_vm5, %v782_v30  ;;  %v544_v44 = vsel %vm538_vm4, %v816_v7, 0.0 }
 0x173   : > { %v570_v40 = vsel %vm538_vm4, %v562_v33, 0.0  ;;  %596 = vst.msk [vmem:[%s1099_s19] sm:$0xf] %vm595_vm5, %v591_v35  ;;  %768 = vst.msk [vmem:[%s1099_s19 + $0x4] sm:$0xf] %vm595_vm5, %v781_v36  ;;  %v574_v48 = vsel %vm538_vm4, %v564_v39, 0.0 }
 0x174   : > { %v543_v41 = vadd.f32 %v542_v37, %v541_v34  ;;  %v571_v42 = vadd.f32 %v570_v40, %v569_v38 }
 0x176   : > { %v573_v45 = vadd.f32 %v572_v43, %v571_v42  ;;  %v545_v47 = vadd.f32 %v544_v44, %v543_v41 }
 0x177   : > { %v819_v46 = vpop.f32.mrb[0].mxu1 }
 0x178   : > { %v523_v49 = vpop.f32.mrb[1].mxu1  ;;  %v575_v9 = vadd.f32 %v574_v48, %v573_v45  ;;  %v567_v56 = vmul.f32 %v819_v46, %v819_v46  ;;  %v550_v60 = vsel %vm538_vm4, %v819_v46, 0.0 }
 0x179   : > { %v546_v14 = vsel %vm538_vm4, %v523_v49, 0.0  ;;  %v565_v50 = vmul.f32 %v523_v49, %v523_v49  ;;  %v820_v17 = vpop.f32.mrb[2].mxu1 }
 0x17a   : > { %v547_v31 = vadd.f32 %v546_v14, %v545_v47  ;;  %v526_v51 = vpop.f32.mrb[3].mxu1  ;;  %v594_v52 = vpack.c.bf16 %v820_v17, %v819_v46  ;;  %v784_v54 = vpack.c.bf16 %v820_v17, %v820_v17  ;;  %v568_v63 = vmul.f32 %v820_v17, %v820_v17 }
 0x17b   : > { %v576_v8 = vsel %vm538_vm4, %v565_v50, 0.0  ;;  %v548_v55 = vsel %vm538_vm4, %v526_v51, 0.0  ;;  %v566_v59 = vmul.f32 %v526_v51, %v526_v51  ;;  %v593_v61 = vpack.c.bf16 %v526_v51, %v523_v49 }
 0x17c   : > { %v577_v57 = vadd.f32 %v576_v8, %v575_v9  ;;  %v549_v58 = vadd.f32 %v548_v55, %v547_v31  ;;  %775 = vst.msk [vmem:[%s1099_s19 + $0x18] sm:$0xf] %vm595_vm5, %v594_v52  ;;  %777 = vst.msk [vmem:[%s1099_s19 + $0x1c] sm:$0xf] %vm595_vm5, %v784_v54  ;;  %v783_v62 = vpack.c.bf16 %v526_v51, %v526_v51  ;;  %v552_v2 = vsel %vm538_vm4, %v820_v17, 0.0 }
 0x17d   : > { %v578_v1 = vsel %vm538_vm4, %v566_v59, 0.0  ;;  %772 = vst.msk [vmem:[%s1099_s19 + $0x10] sm:$0xf] %vm595_vm5, %v593_v61  ;;  %v580_v3 = vsel %vm538_vm4, %v567_v56, 0.0  ;;  %v582_v10 = vsel %vm538_vm4, %v568_v63, 0.0 }
 0x17e   : > { %v551_v0 = vadd.f32 %v550_v60, %v549_v58  ;;  %v579_v16 = vadd.f32 %v578_v1, %v577_v57  ;;  %774 = vst.msk [vmem:[%s1099_s19 + $0x14] sm:$0xf] %vm595_vm5, %v783_v62 }
 0x180   : > { %v553_v4 = vadd.f32 %v552_v2, %v551_v0  ;;  %v581_v5 = vadd.f32 %v580_v3, %v579_v16 }
 0x182   : > { %v554_v11 = vrot.slane %v553_v4, 4  ;;  %v583_v6 = vadd.f32 %v582_v10, %v581_v5 }
 0x184   : > { %v555_v12 = vadd.f32 %v554_v11, %v553_v4  ;;  %v584_v13 = vrot.slane %v583_v6, 4 }
 0x186   : > { %v556_v15 = vrot.slane %v555_v12, 2  ;;  %v585_v18 = vadd.f32 %v584_v13, %v583_v6 }
 0x188   : > { %v557_v19 = vadd.f32 %v556_v15, %v555_v12  ;;  %v586_v20 = vrot.slane %v585_v18, 2 }
 0x18a   : > { %v558_v21 = vrot.slane %v557_v19, 1  ;;  %v587_v22 = vadd.f32 %v586_v20, %v585_v18 }
 0x18c   : > { %v559_v23 = vadd.f32 %v558_v21, %v557_v19  ;;  %v588_v24 = vrot.slane %v587_v22, 1 }
 0x18e   : > { %628 = vst.msk [vmem:[%s211_s22] sm:$0x1] %vm627_vm6, %v559_v23  ;;  %v589_v25 = vadd.f32 %v588_v24, %v587_v22 }
 0x190   : > { %629 = vst.msk [vmem:[%s214_s25] sm:$0x1] %vm627_vm6, %v589_v25 }
 0x191 PF: > { %s15_s15 = sadd.s32 1, %s923_s15  }
 0x192   : > { %p12_p4 = scmp.ge.s32.totalorder %s15_s15, 4  }
 0x194   :  { %14 = sbr.rel (!%p12_p4) target bundleno = 1 (0x1), region = 97 }

// kernel: nlayer_discriminator_forward.7
= control target key start
LH: loop header
LB: loop body
LE: loop exit
PB: predicated region body
PF: predicated region fallthrough
CT: control target
= control target key end

     0   :  { %s739_s15 = smov 0   ;;  %s820_s0 = inlined_call_operand.vmem [shape: bf16[2,5,5,64], index: 0, kind: input, shape index: {}]   ;;  %s821_s1 = inlined_call_operand.vmem [shape: bf16[256,32], index: 1, kind: input, shape index: {}]   ;;  %s822_s2 = inlined_call_operand.vmem [shape: bf16[2,4,4,32], index: 2, kind: output, shape index: {0}]   ;;  %s823_s3 = inlined_call_operand.vmem [shape: f32[2,1,32], index: 3, kind: output, shape index: {1}]   ;;  %s824_s4 = inlined_call_operand.vmem [shape: f32[2,1,32], index: 4, kind: output, shape index: {2}]  }
   0x1 LB: > { %s610_s16 = sadd.s32 4294967295, %s710_s15   ;;  %p614_p0 = scmp.ge.s32.totalorder %s710_s15, 1  ;;  %s710_s15 = sphi %s739_s15, %s15_s15  }
   0x2   : > { %p167_p1 = scmp.lt.s32.totalorder %s710_s15, 3 }
   0x4   : > { %p168_p2 = pnand %p614_p0, %p167_p1 }
   0x5   : > { %p199_p3 = scmp.lt.s32.totalorder (!%p168_p2), %s610_s16, 1  ;;  %v688_v0 = vld [vmem:[%s821_s1 + $0x40] sm:$0xff] (!%p168_p2)   ;;  %v690_v2 = vld [vmem:[%s821_s1 + $0x48] sm:$0xff] (!%p168_p2)   ;;  %v692_v4 = vld [vmem:[%s821_s1 + $0x50] sm:$0xff] (!%p168_p2)   ;;  %s712_s11 = smov (!%p168_p2), 64   ;;  %vm240_vm0 = vcmask (!%p168_p2), 523264   ;;  %v479_v57 = vlaneseq (!%p168_p2) }
   0x6   : > { %171 = sbr.rel (%p168_p2) target bundleno = 386 (0x182), region = 28  ;;  %v689_v1 = vld [vmem:[%s821_s1] sm:$0xff] (!%p168_p2)   ;;  %645 = vmatprep.subr.bf16.mxu0 (!%p168_p2), %v688_v0  ;;  %v691_v3 = vld [vmem:[%s821_s1 + $0x8] sm:$0xff] (!%p168_p2)   ;;  %v693_v13 = vld [vmem:[%s821_s1 + $0x10] sm:$0xff] (!%p168_p2)   ;;  %vm273_vm1 = vcmask (!%p168_p2), 1043456   ;;  %vm449_vm2 = vcmask (!%p168_p2), 261120  }
   0x7   : > { %646 = vmatpush3.bf16.msra.mxu0 (!%p168_p2), %v689_v1  ;;  %v694_v16 = vld [vmem:[%s821_s1 + $0x58] sm:$0xff] (!%p168_p2)   ;;  %v696_v24 = vld [vmem:[%s821_s1 + $0x60] sm:$0xff] (!%p168_p2)   ;;  %v698_v27 = vld [vmem:[%s821_s1 + $0x68] sm:$0xff] (!%p168_p2)   ;;  %v713_v55 = vmov (!%p168_p2), 1983009808   ;;  %v480_v60 = vshrl.u32 (!%p168_p2), %v479_v57, 7 }
   0x8   : > { %647 = vmatprep.subr.bf16.mxu0 (!%p168_p2), %v690_v2  ;;  %v695_v23 = vld [vmem:[%s821_s1 + $0x18] sm:$0xff] (!%p168_p2)   ;;  %v697_v26 = vld [vmem:[%s821_s1 + $0x20] sm:$0xff] (!%p168_p2)   ;;  %v699_v28 = vld [vmem:[%s821_s1 + $0x28] sm:$0xff] (!%p168_p2)   ;;  %v477_v56 = vunpack.c.l.s4 (!%p168_p2), %v713_v55  ;;  %vm473_vm3 = vcmask (!%p168_p2), 254976   ;;  %vm502_vm4 = vcmask (!%p168_p2), 253952  }
   0x9   : > { %v700_v29 = vld [vmem:[%s821_s1 + $0x70] sm:$0xff] (!%p168_p2)   ;;  %v702_v31 = vld [vmem:[%s821_s1 + $0x78] sm:$0xff] (!%p168_p2)  }
   0xa   : > { %v701_v30 = vld [vmem:[%s821_s1 + $0x30] sm:$0xff] (!%p168_p2)   ;;  %v703_v32 = vld [vmem:[%s821_s1 + $0x38] sm:$0xff] (!%p168_p2)   ;;  %v478_v59 = vunpack.c.0.s8 (!%p168_p2), %v477_v56 }
   0xb   : > { %648 = vmatpush3.bf16.msra.mxu0 (!%p168_p2), %v691_v3 }
   0xc   : > { %649 = vmatprep.subr.bf16.mxu0 (!%p168_p2), %v692_v4  ;;  %v481_v3 = vsub.s32 (!%p168_p2), %v478_v59, %v480_v60 }
   0xd   : > { %s826_s16 = smov (!%p199_p3, %s610_s16), 1 }
   0xe   : > { %s667_s23 = smul.u32 20, %s826_s16  ;;  %s211_s10 = scalar_lea.vmem %s823_s3, %s826_s16 }
   0xf   : > { %650 = vmatpush3.bf16.msra.mxu0 %v693_v13  ;;  %s214_s13 = scalar_lea.vmem %s824_s4, %s826_s16 }
  0x10   : > { %s203_s30 = scalar_lea.vmem %s820_s0, %s667_s23  ;;  %651 = vmatprep.subr.bf16.mxu0 %v694_v16 }
  0x11   : > { %v619_v5 = vld [vmem:[%s203_s30 + $0x8] sm:$0x7]  ;;  %v621_v6 = vld [vmem:[%s203_s30 + $0x10] sm:$0x7]  ;;  %v618_v7 = vld [vmem:[%s203_s30 + $0x4] sm:$0x7] }
  0x12   : > { %v223_v8 = vunpack.c.l.bf16 %v619_v5  ;;  %v229_v9 = vunpack.c.l.bf16 %v621_v6  ;;  %v220_v10 = vunpack.c.l.bf16 %v618_v7  ;;  %v620_v11 = vld [vmem:[%s203_s30 + $0xc] sm:$0x7]  ;;  %v216_v12 = vld [vmem:[%s203_s30] sm:$0x7]  ;;  %s644_s30 = sshll.u32 %s826_s16, 3 }
  0x13   : > { %v226_v14 = vunpack.c.l.bf16 %v620_v11  ;;  %v217_v15 = vunpack.c.l.bf16 %v216_v12  ;;  %652 = vmatpush3.bf16.msra.mxu0 %v695_v23  ;;  %s208_s7 = scalar_lea.vmem %s822_s2, %s644_s30 }
  0x14   : > { %v244_v17 = vrot.slane %v223_v8, 1  ;;  %v256_v18 = vrot.slane %v229_v9, 1  ;;  %v236_v19 = vrot.slane %v220_v10, 1  ;;  %653 = vmatprep.subr.bf16.mxu0 %v696_v24 }
  0x15   : > { %v250_v20 = vrot.slane %v226_v14, 1  ;;  %v231_v21 = vrot.slane %v217_v15, 1 }
  0x16   : > { %v678_v22 = vpack.i.bf16 %v256_v18, %v244_v17 }
  0x17   : > { %232 = vrot.lane.b32.xlu1 %v231_v21, %s712_s11  ;;  %v683_v25 = vpack.i.bf16 %v250_v20, %v236_v19  ;;  %654 = vmatpush3.bf16.msra.mxu0 %v697_v26 }
  0x18   : > { %679 = vrot.lane.b32.xlu0 %v678_v22, %s712_s11  ;;  %655 = vmatprep.subr.bf16.mxu0 %v698_v27 }
  0x1b   : > { %656 = vmatpush3.bf16.msra.mxu0 %v699_v28 }
  0x1c   : > { %684 = vrot.lane.b32.xlu0 %v683_v25, %s712_s11  ;;  %657 = vmatprep.subr.bf16.mxu0 %v700_v29 }
  0x1f   : > { %658 = vmatpush3.bf16.msra.mxu0 %v701_v30 }
  0x20   : > { %659 = vmatprep.subr.bf16.mxu0 %v702_v31 }
  0x23   : > { %660 = vmatpush3.bf16.msra.mxu0 %v703_v32 }
  0x89   : > { %v233_v39 = vpop.permute.xlu1 %232 }
  0x8a   : > { %v680_v33 = vpop.permute.xlu0 %679  ;;  %v241_v44 = vsel %vm240_vm0, %v217_v15, %v233_v39 }
  0x8b   : > { %v682_v34 = vunpack.i.h.bf16 %v680_v33  ;;  %v681_v35 = vunpack.i.l.bf16 %v680_v33 }
  0x8d   : > { %v248_v36 = vsel %vm240_vm0, %v223_v8, %v681_v35  ;;  %v260_v37 = vsel %vm240_vm0, %v229_v9, %v682_v34 }
  0x8e   : > { %v685_v38 = vpop.permute.xlu0 %684  ;;  %v264_v42 = vrot.slane %v248_v36, 4  ;;  %v270_v43 = vrot.slane %v260_v37, 4 }
  0x8f   : > { %v687_v40 = vunpack.i.h.bf16 %v685_v38  ;;  %v686_v41 = vunpack.i.l.bf16 %v685_v38 }
  0x91   : > { %v242_v45 = vsel %vm240_vm0, %v220_v10, %v686_v41  ;;  %v254_v46 = vsel %vm240_vm0, %v226_v14, %v687_v40 }
  0x92   : > { %v263_v47 = vrot.slane %v242_v45, 4  ;;  %v269_v48 = vrot.slane %v254_v46, 4  ;;  %v275_v49 = vsel %vm273_vm1, %v242_v45, %v264_v42  ;;  %v277_v50 = vsel %vm273_vm1, %v254_v46, %v270_v43 }
  0x93   : > { %v279_v51 = vpack.c.bf16 %v277_v50, %v275_v49 }
  0x94   : > { %v274_v52 = vsel %vm273_vm1, %v241_v44, %v263_v47  ;;  %v276_v53 = vsel %vm273_vm1, %v248_v36, %v269_v48 }
  0x95   : > { %440 = vmatprep.mubr.bf16.mxu0 %v279_v51  ;;  %v278_v54 = vpack.c.bf16 %v276_v53, %v274_v52 }
  0x97   : > { %441 = vmatmul.mubr.bf16.vlgmr.msra.gmra.mrb[0].mxu0 %v278_v54 }
 0x16a   : > { %v661_v58 = vpop.f32.mrb[0].mxu0 }
 0x16b   : > { %v662_v61 = vpop.f32.mrb[1].mxu0 }
 0x16c   : > { %v663_v62 = vadd.f32 %v662_v61, %v661_v58  ;;  %v664_v63 = vpop.f32.mrb[2].mxu0 }
 0x16d   : > { %v665_v0 = vpop.f32.mrb[3].mxu0 }
 0x16e   : > { %v460_v1 = vmul.f32 %v663_v62, %v663_v62  ;;  %v666_v2 = vadd.f32 %v665_v0, %v664_v63  ;;  %v450_v4 = vsel %vm449_vm2, %v663_v62, 0.0 }
 0x170   : > { %v451_v5 = vsel %vm449_vm2, %v666_v2, 0.0  ;;  %v461_v6 = vmul.f32 %v666_v2, %v666_v2  ;;  %v472_v7 = vpack.c.bf16 %v666_v2, %v663_v62  ;;  %v639_v9 = vpack.c.bf16 %v666_v2, %v666_v2 }
 0x171   : > { %v452_v8 = vadd.f32 %v451_v5, %v450_v4  ;;  %v462_v10 = vsel %vm449_vm2, %v460_v1, 0.0 }
 0x172   : > { %v463_v11 = vsel %vm449_vm2, %v461_v6, 0.0  ;;  %474 = vst.msk [vmem:[%s208_s7] sm:$0x3] %vm473_vm3, %v472_v7  ;;  %v482_v12 = vrot.slane %v472_v7, %v481_v3  ;;  %v494_v15 = vrot.slane %v639_v9, %v481_v3 }
 0x173   : > { %v453_v13 = vrot.slane %v452_v8, 4  ;;  %v464_v14 = vadd.f32 %v463_v11, %v462_v10 }
 0x174   : > { %v483_v16 = vcombine.high %v482_v12, %v482_v12  ;;  %640 = vst.msk [vmem:[%s208_s7 + $0x4] sm:$0x3] %vm473_vm3, %v494_v15  ;;  %v498_v19 = vcombine.high %v494_v15, %v494_v15 }
 0x175   : > { %v454_v17 = vadd.f32 %v453_v13, %v452_v8  ;;  %v465_v18 = vrot.slane %v464_v14, 4 }
 0x176   : > { %638 = vst.msk [vmem:[%s208_s7 + $0x2] sm:$0x3] %vm473_vm3, %v483_v16  ;;  %641 = vst.msk [vmem:[%s208_s7 + $0x6] sm:$0x3] %vm473_vm3, %v498_v19 }
 0x177   : > { %v455_v20 = vrot.slane %v454_v17, 2  ;;  %v466_v21 = vadd.f32 %v465_v18, %v464_v14 }
 0x179   : > { %v456_v22 = vadd.f32 %v455_v20, %v454_v17  ;;  %v467_v23 = vrot.slane %v466_v21, 2 }
 0x17b   : > { %v457_v24 = vrot.slane %v456_v22, 1  ;;  %v468_v25 = vadd.f32 %v467_v23, %v466_v21 }
 0x17d   : > { %v458_v26 = vadd.f32 %v457_v24, %v456_v22  ;;  %v469_v27 = vrot.slane %v468_v25, 1 }
 0x17f   : > { %v470_v28 = vadd.f32 %v469_v27, %v468_v25  ;;  %503 = vst.msk [vmem:[%s211_s10] sm:$0x1] %vm502_vm4, %v458_v26 }
 0x181   : > { %504 = vst.msk [vmem:[%s214_s13] sm:$0x1] %vm502_vm4, %v470_v28 }
 0x182 PF: > { %s15_s15 = sadd.s32 1, %s710_s15  }
 0x183   : > { %p12_p4 = scmp.ge.s32.totalorder %s15_s15, 4  }
 0x185   :  { %14 = sbr.rel (!%p12_p4) target bundleno = 1 (0x1), region = 89 }

// kernel: nlayer_discriminator_forward.8
= control target key start
LH: loop header
LB: loop body
LE: loop exit
PB: predicated region body
PF: predicated region fallthrough
CT: control target
= control target key end

     0   :  { %s1206_s21 = smov 0   ;;  %s1432_s0 = inlined_call_operand.vmem [shape: bf16[2,4,4,32], index: 0, kind: input, shape index: {}]   ;;  %s1433_s1 = inlined_call_operand.vmem [shape: bf16[512,64], index: 1, kind: input, shape index: {}]   ;;  %s1434_s2 = inlined_call_operand.vmem [shape: f32[1,32], index: 2, kind: input, shape index: {}]   ;;  %s1435_s3 = inlined_call_operand.vmem [shape: f32[1,32], index: 3, kind: input, shape index: {}]   ;;  %s1436_s4 = inlined_call_operand.vmem [shape: bf16[2,3,3,64], index: 4, kind: output, shape index: {0}]   ;;  %s1437_s5 = inlined_call_operand.vmem [shape: f32[2,1,64], index: 5, kind: output, shape index: {1}]   ;;  %s1438_s6 = inlined_call_operand.vmem [shape: f32[2,1,64], index: 6, kind: output, shape index: {2}]  }
   0x1 LB: > { %s986_s22 = sadd.s32 4294967295, %s1164_s21   ;;  %p990_p0 = scmp.ge.s32.totalorder %s1164_s21, 1  ;;  %s1164_s21 = sphi %s1206_s21, %s17_s21  }
   0x2   : > { %p217_p1 = scmp.lt.s32.totalorder %s1164_s21, 3 }
   0x4   : > { %p218_p2 = pnand %p990_p0, %p217_p1 }
   0x5   : > { %p253_p3 = scmp.lt.s32.totalorder (!%p218_p2), %s986_s22, 1  ;;  %v1126_v0 = vld [vmem:[%s1433_s1 + $0x40] sm:$0xff] (!%p218_p2)   ;;  %v1166_v4 = vmov (!%p218_p2), 0.0   ;;  %v1130_v15 = vld [vmem:[%s1433_s1 + $0x48] sm:$0xff] (!%p218_p2)   ;;  %vm323_vm0 = vcmask (!%p218_p2), 1040384   ;;  %vm329_vm1 = vcmask (!%p218_p2), 1044480  }
   0x6   : > { %221 = sbr.rel (%p218_p2) target bundleno = 410 (0x19a), region = 36  ;;  %v1127_v1 = vld [vmem:[%s1433_s1 + $0xc0] sm:$0xff] (!%p218_p2)   ;;  %1038 = vmatprep.subr.bf16.mxu0 (!%p218_p2), %v1126_v0  ;;  %v313_v5 = vrot.slane (!%p218_p2), %v1166_v4, 7  ;;  %v1131_v21 = vld [vmem:[%s1433_s1 + $0xc8] sm:$0xff] (!%p218_p2)   ;;  %v1134_v30 = vld [vmem:[%s1433_s1 + $0x50] sm:$0xff] (!%p218_p2)   ;;  %s1167_s23 = smov (!%p218_p2), 64  }
   0x7   : > { %v1128_v2 = vld [vmem:[%s1433_s1] sm:$0xff] (!%p218_p2)   ;;  %1060 = vmatprep.subr.bf16.mxu1 (!%p218_p2), %v1127_v1  ;;  %v1132_v23 = vld [vmem:[%s1433_s1 + $0x8] sm:$0xff] (!%p218_p2)   ;;  %v1135_v35 = vld [vmem:[%s1433_s1 + $0xd0] sm:$0xff] (!%p218_p2)   ;;  %s1168_s24 = smov (!%p218_p2), 32   ;;  %s1169_s13 = smov (!%p218_p2), 96   ;;  %vm387_vm2 = vcmask (!%p218_p2), 261120  }
   0x8   : > { %v994_v3 = vld [vmem:[%s1434_s2] ss:$0 sm:$0xff] (!%p218_p2)  ;;  %1039 = vmatpush3.bf16.msra.mxu0 (!%p218_p2), %v1128_v2  ;;  %v324_v20 = vsel (!%p218_p2), %vm323_vm0, 0.0, %v313_v5  ;;  %v1133_v27 = vld [vmem:[%s1433_s1 + $0x88] sm:$0xff] (!%p218_p2)   ;;  %v1136_v36 = vld [vmem:[%s1433_s1 + $0x10] sm:$0xff] (!%p218_p2)   ;;  %vm389_vm3 = vcmask (!%p218_p2), 523264  }
   0x9   : > { %v1129_v6 = vld [vmem:[%s1433_s1 + $0x80] sm:$0xff] (!%p218_p2)   ;;  %1040 = vmatprep.subr.bf16.mxu0 (!%p218_p2), %v1130_v15  ;;  %v1252_v29 = vsel (!%p218_p2), %vm329_vm1, %v324_v20, 0.0  ;;  %v1137_v42 = vld [vmem:[%s1433_s1 + $0x90] sm:$0xff] (!%p218_p2)   ;;  %v1138_v46 = vld [vmem:[%s1433_s1 + $0x58] sm:$0xff] (!%p218_p2)   ;;  %vm391_vm4 = vcmask (!%p218_p2), 785408   ;;  %vm439_vm5 = vcmask (!%p218_p2), 1042432  }
   0xa   : > { %v995_v9 = vld [vmem:[%s1435_s3] ss:$0 sm:$0xff] (!%p218_p2)  ;;  %1061 = vmatpush3.bf16.msra.mxu1 (!%p218_p2), %v1129_v6  ;;  %v336_v41 = vrot.slane (!%p218_p2), %v1252_v29, 1  ;;  %v1139_v48 = vld [vmem:[%s1433_s1 + $0xd8] sm:$0xff] (!%p218_p2)   ;;  %v340_v5 = vrot.slane (!%p218_p2), %v1252_v29, 2  ;;  %v344_v15 = vrot.slane (!%p218_p2), %v1252_v29, 3 }
   0xb   : > { %1062 = vmatprep.subr.bf16.mxu1 (!%p218_p2), %v1131_v21  ;;  %v1140_v52 = vld [vmem:[%s1433_s1 + $0x18] sm:$0xff] (!%p218_p2)   ;;  %v1142_v2 = vld [vmem:[%s1433_s1 + $0x60] sm:$0xff] (!%p218_p2)   ;;  %vm444_vm6 = vcmask (!%p218_p2), 1045504   ;;  %vm815_vm7 = vcmask (!%p218_p2), 517120   ;;  %vm816_vm8 = vsmask.f32 (!%p218_p2), 1280 }
   0xc   : > { %1041 = vmatpush3.bf16.msra.mxu0 (!%p218_p2), %v1132_v23  ;;  %v1141_v1 = vld [vmem:[%s1433_s1 + $0x98] sm:$0xff] (!%p218_p2)   ;;  %v1143_v6 = vld [vmem:[%s1433_s1 + $0xe0] sm:$0xff] (!%p218_p2)   ;;  %v1151_v23 = vld [vmem:[%s1433_s1 + $0xf0] sm:$0xff] (!%p218_p2)   ;;  %vm864_vm9 = vcmask (!%p218_p2), 1042434   ;;  %vm792_vm10 = vcmask (!%p218_p2), 516096   ;;  %vm866_vm15 = vcmask (!%p218_p2), 1044484  }
   0xd   : > { %s1442_s22 = smov (!%p253_p3, %s986_s22), 1  ;;  %1042 = vmatprep.subr.bf16.mxu0 %v1134_v30  ;;  %v1156_v30 = vld [vmem:[%s1433_s1 + $0x38] sm:$0xff]   ;;  %vm1394_vm11 = vmand %vm815_vm7, %vm816_vm8  ;;  %vm830_vm12 = vsmask.f32 256  ;;  %vm831_vm13 = vsmask.f32 2312 }
   0xe   : > { %s1037_s29 = sshll.u32 %s1442_s22, 3  ;;  %1063 = vmatpush3.bf16.msra.mxu1 %v1133_v27  ;;  %v1154_v27 = vld [vmem:[%s1433_s1 + $0x78] sm:$0xff]   ;;  %s1082_s8 = smul.u32 6, %s1442_s22  ;;  %vm865_vm14 = vmor %vm323_vm0, %vm864_vm9 }
   0xf   : > { %s257_s10 = scalar_lea.vmem %s1432_s0, %s1037_s29  ;;  %1064 = vmatprep.subr.bf16.mxu1 %v1135_v35  ;;  %s265_s14 = scalar_lea.vmem %s1437_s5, %s1442_s22 }
  0x10   : > { %v271_v7 = vld [vmem:[%s257_s10 + $0x2] sm:$0x3]  ;;  %v273_v8 = vld [vmem:[%s257_s10 + $0x6] sm:$0x3]  ;;  %v272_v10 = vld [vmem:[%s257_s10 + $0x4] sm:$0x3]  ;;  %1043 = vmatpush3.bf16.msra.mxu0 %v1136_v36  ;;  %s1392_s11 = scalar_lea.vmem %s1436_s4, %s1082_s8  ;;  %s268_s17 = scalar_lea.vmem %s1438_s6, %s1442_s22 }
  0x11   : > { %v275_v11 = vunpack.c.l.bf16 %v271_v7  ;;  %v277_v12 = vunpack.c.l.bf16 %v273_v8  ;;  %v276_v13 = vunpack.c.l.bf16 %v272_v10  ;;  %v270_v14 = vld [vmem:[%s257_s10] sm:$0x3]  ;;  %1044 = vmatprep.subr.bf16.mxu0 %v1138_v46 }
  0x12   : > { %v274_v16 = vunpack.c.l.bf16 %v270_v14  ;;  %1065 = vmatpush3.bf16.msra.mxu1 %v1137_v42  ;;  %v1144_v10 = vld [vmem:[%s1433_s1 + $0x20] sm:$0xff]  }
  0x13   : > { %v286_v17 = vmul.f32 %v994_v3, %v275_v11  ;;  %v288_v18 = vmul.f32 %v994_v3, %v277_v12  ;;  %v287_v19 = vmul.f32 %v994_v3, %v276_v13  ;;  %1066 = vmatprep.subr.bf16.mxu1 %v1139_v48  ;;  %v1145_v11 = vld [vmem:[%s1433_s1 + $0xa0] sm:$0xff]   ;;  %v1146_v12 = vld [vmem:[%s1433_s1 + $0x68] sm:$0xff]  }
  0x14   : > { %v285_v22 = vmul.f32 %v994_v3, %v274_v16  ;;  %1045 = vmatpush3.bf16.msra.mxu0 %v1140_v52 }
  0x15   : > { %v297_v24 = vadd.f32 %v995_v9, %v286_v17  ;;  %v299_v25 = vadd.f32 %v995_v9, %v288_v18  ;;  %v298_v26 = vadd.f32 %v995_v9, %v287_v19  ;;  %1046 = vmatprep.subr.bf16.mxu0 %v1142_v2  ;;  %v1147_v17 = vld [vmem:[%s1433_s1 + $0xe8] sm:$0xff]  }
  0x16   : > { %v296_v28 = vadd.f32 %v995_v9, %v285_v22  ;;  %1067 = vmatpush3.bf16.msra.mxu1 %v1141_v1  ;;  %v1148_v18 = vld [vmem:[%s1433_s1 + $0x28] sm:$0xff]   ;;  %v1150_v22 = vld [vmem:[%s1433_s1 + $0x70] sm:$0xff]  }
  0x17   : > { %v301_v31 = vmul.f32 0.2, %v297_v24  ;;  %v303_v32 = vmul.f32 0.2, %v299_v25  ;;  %v302_v33 = vmul.f32 0.2, %v298_v26  ;;  %1068 = vmatprep.subr.bf16.mxu1 %v1143_v6 }
  0x18   : > { %v300_v34 = vmul.f32 0.2, %v296_v28  ;;  %1047 = vmatpush3.bf16.msra.mxu0 %v1144_v10  ;;  %v1149_v19 = vld [vmem:[%s1433_s1 + $0xa8] sm:$0xff]  }
  0x19   : > { %v305_v37 = vmax.f32 %v297_v24, %v301_v31  ;;  %v307_v38 = vmax.f32 %v299_v25, %v303_v32  ;;  %v306_v39 = vmax.f32 %v298_v26, %v302_v33  ;;  %1048 = vmatprep.subr.bf16.mxu0 %v1146_v12  ;;  %v1152_v24 = vld [vmem:[%s1433_s1 + $0x30] sm:$0xff]   ;;  %v1157_v31 = vld [vmem:[%s1433_s1 + $0xb8] sm:$0xff]  }
  0x1a   : > { %v304_v40 = vmax.f32 %v296_v28, %v300_v34  ;;  %1069 = vmatpush3.bf16.msra.mxu1 %v1145_v11  ;;  %v1153_v25 = vld [vmem:[%s1433_s1 + $0xb0] sm:$0xff]   ;;  %v1155_v28 = vld [vmem:[%s1433_s1 + $0xf8] sm:$0xff]  }
  0x1b   : > { %v315_v43 = vrot.slane %v305_v37, 7  ;;  %v317_v44 = vrot.slane %v307_v38, 7  ;;  %v316_v45 = vrot.slane %v306_v39, 7  ;;  %1070 = vmatprep.subr.bf16.mxu1 %v1147_v17 }
  0x1c   : > { %v314_v47 = vrot.slane %v304_v40, 7  ;;  %1049 = vmatpush3.bf16.msra.mxu0 %v1148_v18 }
  0x1d   : > { %v326_v49 = vsel %vm323_vm0, 0.0, %v315_v43  ;;  %v328_v50 = vsel %vm323_vm0, 0.0, %v317_v44  ;;  %v327_v51 = vsel %vm323_vm0, 0.0, %v316_v45  ;;  %1050 = vmatprep.subr.bf16.mxu0 %v1150_v22 }
  0x1e   : > { %v1280_v53 = vsel %vm329_vm1, %v326_v49, 0.0  ;;  %v1283_v54 = vsel %vm329_vm1, %v328_v50, 0.0  ;;  %v1286_v55 = vsel %vm329_vm1, %v327_v51, 0.0  ;;  %v325_v56 = vsel %vm323_vm0, 0.0, %v314_v47  ;;  %1071 = vmatpush3.bf16.msra.mxu1 %v1149_v19  ;;  %vm867_vm0 = vmor %vm865_vm14, %vm866_vm15 }
  0x1f   : > { %v366_v57 = vrot.slane %v1280_v53, 2  ;;  %v407_v58 = vrot.slane %v1283_v54, 2  ;;  %v362_v59 = vrot.slane %v1280_v53, 1  ;;  %v403_v60 = vrot.slane %v1283_v54, 1  ;;  %1072 = vmatprep.subr.bf16.mxu1 %v1151_v23 }
  0x20   : > { %v1294_v61 = vsel %vm329_vm1, %v325_v56, 0.0  ;;  %v375_v3 = vrot.slane %v1286_v55, 1  ;;  %v370_v4 = vrot.slane %v1280_v53, 3  ;;  %v411_v8 = vrot.slane %v1283_v54, 3  ;;  %1051 = vmatpush3.bf16.msra.mxu0 %v1152_v24 }
  0x21   : > { %v1106_v62 = vpack.i.bf16 %v407_v58, %v366_v57  ;;  %v1096_v63 = vpack.i.bf16 %v403_v60, %v362_v59  ;;  %v349_v0 = vrot.slane %v1294_v61, 1  ;;  %v353_v9 = vrot.slane %v1294_v61, 2  ;;  %1052 = vmatprep.subr.bf16.mxu0 %v1154_v27 }
  0x22   : > { %v1116_v13 = vpack.i.bf16 %v411_v8, %v370_v4  ;;  %v357_v16 = vrot.slane %v1294_v61, 3  ;;  %v379_v21 = vrot.slane %v1286_v55, 2  ;;  %v383_v26 = vrot.slane %v1286_v55, 3  ;;  %1073 = vmatpush3.bf16.msra.mxu1 %v1153_v25 }
  0x23   : > { %1107 = vrot.lane.b32.xlu1 %v1106_v62, %s1167_s23  ;;  %1097 = vrot.lane.b32.xlu0 %v1096_v63, %s1168_s24  ;;  %v1101_v7 = vpack.i.bf16 %v349_v0, %v336_v41  ;;  %v1111_v14 = vpack.i.bf16 %v353_v9, %v340_v5  ;;  %v1170_v23 = vmov 1983009808   ;;  %v825_v25 = vlaneseq }
  0x24   : > { %v1121_v20 = vpack.i.bf16 %v357_v16, %v344_v15  ;;  %1074 = vmatprep.subr.bf16.mxu1 %v1155_v28  ;;  %1053 = vmatpush3.bf16.msra.mxu0 %v1156_v30  ;;  %v823_v24 = vunpack.c.l.s4 %v1170_v23  ;;  %vm868_vm1 = vcmask 1046534  }
  0x26   : > { %1075 = vmatpush3.bf16.msra.mxu1 %v1157_v31 }
  0x27   : > { %376 = vrot.lane.b32.xlu1 %v375_v3, %s1168_s24  ;;  %1102 = vrot.lane.b32.xlu0 %v1101_v7, %s1168_s24 }
  0x2b   : > { %1117 = vrot.lane.b32.xlu1 %v1116_v13, %s1169_s13  ;;  %1112 = vrot.lane.b32.xlu0 %v1111_v14, %s1167_s23 }
  0x2f   : > { %1122 = vrot.lane.b32.xlu1 %v1121_v20, %s1169_s13  ;;  %380 = vrot.lane.b32.xlu0 %v379_v21, %s1167_s23 }
  0x33   : > { %384 = vrot.lane.b32.xlu0 %v383_v26, %s1169_s13 }
  0x95   : > { %v1108_v32 = vpop.permute.xlu1 %1107  ;;  %v1098_v33 = vpop.permute.xlu0 %1097 }
  0x96   : > { %v1100_v36 = vunpack.i.h.bf16 %v1098_v33  ;;  %v1099_v37 = vunpack.i.l.bf16 %v1098_v33  ;;  %v1110_v38 = vunpack.i.h.bf16 %v1108_v32  ;;  %v1109_v39 = vunpack.i.l.bf16 %v1108_v32 }
  0x98   : > { %v415_v43 = vsel %vm387_vm2, %v1283_v54, %v1100_v36  ;;  %v396_v44 = vsel %vm387_vm2, %v1280_v53, %v1099_v37  ;;  %v826_v36 = vshrl.u32 %v825_v25, 7 }
  0x99   : > { %v377_v34 = vpop.permute.xlu1 %376  ;;  %v1103_v35 = vpop.permute.xlu0 %1102  ;;  %v397_v51 = vsel %vm389_vm3, %v396_v44, %v1109_v39  ;;  %v416_v52 = vsel %vm389_vm3, %v415_v43, %v1110_v38 }
  0x9a   : > { %v1105_v40 = vunpack.i.h.bf16 %v1103_v35  ;;  %v1104_v45 = vunpack.i.l.bf16 %v1103_v35  ;;  %v824_v35 = vunpack.c.0.s8 %v823_v24 }
  0x9c   : > { %v393_v50 = vsel %vm387_vm2, %v1294_v61, %v1105_v40  ;;  %v388_v54 = vsel %vm387_vm2, %v1252_v29, %v1104_v45  ;;  %v399_v61 = vsel %vm387_vm2, %v1286_v55, %v377_v34  ;;  %v818_v45 = vld [vmem:[%s1392_s11] sm:$0x3]  ;;  %vm832_vm2 = vmor %vm830_vm12, %vm831_vm13 }
  0x9d   : > { %v1118_v41 = vpop.permute.xlu1 %1117  ;;  %v1113_v42 = vpop.permute.xlu0 %1112 }
  0x9e   : > { %v1120_v46 = vunpack.i.h.bf16 %v1118_v41  ;;  %v1119_v47 = vunpack.i.l.bf16 %v1118_v41  ;;  %v1115_v48 = vunpack.i.h.bf16 %v1113_v42  ;;  %v1114_v49 = vunpack.i.l.bf16 %v1113_v42 }
  0xa0   : > { %v417_v53 = vsel %vm391_vm4, %v416_v52, %v1120_v46  ;;  %v398_v60 = vsel %vm391_vm4, %v397_v51, %v1119_v47  ;;  %v394_v62 = vsel %vm389_vm3, %v393_v50, %v1115_v48  ;;  %v390_v63 = vsel %vm389_vm3, %v388_v54, %v1114_v49 }
  0xa1   : > { %v1123_v56 = vpop.permute.xlu1 %1122  ;;  %v381_v57 = vpop.permute.xlu0 %380  ;;  %v425_v29 = vrot.slane %v417_v53, 5  ;;  %v423_v7 = vrot.slane %v398_v60, 5  ;;  %v431_v8 = vrot.slane %v398_v60, 2  ;;  %v433_v15 = vrot.slane %v417_v53, 2 }
  0xa2   : > { %v1125_v58 = vunpack.i.h.bf16 %v1123_v56  ;;  %v1124_v59 = vunpack.i.l.bf16 %v1123_v56  ;;  %v400_v3 = vsel %vm389_vm3, %v399_v61, %v381_v57  ;;  %v827_v46 = vsub.s32 %v824_v35, %v826_v36 }
  0xa4   : > { %v395_v0 = vsel %vm391_vm4, %v394_v62, %v1125_v58  ;;  %v392_v1 = vsel %vm391_vm4, %v390_v63, %v1124_v59 }
  0xa5   : > { %v422_v2 = vrot.slane %v395_v0, 5  ;;  %v385_v4 = vpop.permute.xlu0 %384  ;;  %v434_v5 = vrot.slane %v392_v1, 2  ;;  %v441_v13 = vsel %vm439_vm5, %v395_v0, %v423_v7 }
  0xa6   : > { %v401_v6 = vsel %vm391_vm4, %v400_v3, %v385_v4  ;;  %vm833_vm4 = vsmask.f32 4368  ;;  %v1033_v3 = vld [vmem:[%s1392_s11 + $0x4] sm:$0x3] }
  0xa7   : > { %v424_v9 = vrot.slane %v401_v6, 5  ;;  %v440_v10 = vsel %vm439_vm5, %v392_v1, %v422_v2  ;;  %v443_v55 = vsel %vm439_vm5, %v401_v6, %v425_v29  ;;  %v432_v11 = vrot.slane %v401_v6, 2 }
  0xa8   : > { %v448_v12 = vsel %vm444_vm6, %v443_v55, %v434_v5  ;;  %v445_v14 = vsel %vm444_vm6, %v440_v10, %v431_v8 }
  0xa9   : > { %v452_v16 = vpack.c.bf16 %v434_v5, %v448_v12  ;;  %v446_v17 = vsel %vm444_vm6, %v441_v13, %v432_v11  ;;  %v442_v18 = vsel %vm439_vm5, %v398_v60, %v424_v9  ;;  %v449_v21 = vpack.c.bf16 %v431_v8, %v445_v14  ;;  %vm869_vm5 = vmor %vm867_vm0, %vm868_vm1  ;;  %v1029_v13 = vld [vmem:[%s1392_s11 + $0x2] sm:$0x3] }
  0xaa   : > { %v450_v19 = vpack.c.bf16 %v432_v11, %v446_v17  ;;  %v447_v20 = vsel %vm444_vm6, %v442_v18, %v433_v15  ;;  %vm834_vm6 = vmor %vm832_vm2, %vm833_vm4 }
  0xab   : > { %782 = vmatprep.mubr.bf16.mxu1 %v452_v16  ;;  %v451_v22 = vpack.c.bf16 %v433_v15, %v447_v20 }
  0xac   : > { %741 = vmatprep.mubr.bf16.mxu0 %v450_v19 }
  0xad   : > { %742 = vmatmul.mubr.bf16.vlgmr.msra.gmra.mrb[0].mxu0 %v449_v21  ;;  %783 = vmatmul.mubr.bf16.vlgmr.msra.gmra.mrb[0].mxu1 %v451_v22 }
 0x180   : > { %v1054_v26 = vpop.f32.mrb[0].mxu0  ;;  %v1076_v27 = vpop.f32.mrb[0].mxu1 }
 0x181   : > { %v1055_v28 = vpop.f32.mrb[1].mxu0  ;;  %v1077_v30 = vpop.f32.mrb[1].mxu1 }
 0x182   : > { %v1056_v31 = vadd.f32 %v1055_v28, %v1054_v26  ;;  %v1078_v32 = vadd.f32 %v1077_v30, %v1076_v27  ;;  %v1057_v33 = vpop.f32.mrb[2].mxu0  ;;  %v1079_v34 = vpop.f32.mrb[2].mxu1 }
 0x183   : > { %v1058_v37 = vpop.f32.mrb[3].mxu0  ;;  %v1080_v38 = vpop.f32.mrb[3].mxu1 }
 0x184   : > { %v785_v39 = vadd.f32 %v1078_v32, %v1056_v31  ;;  %v1059_v40 = vadd.f32 %v1058_v37, %v1057_v33  ;;  %v1081_v41 = vadd.f32 %v1080_v38, %v1079_v34 }
 0x186   : > { %v802_v42 = vmul.f32 %v785_v39, %v785_v39  ;;  %v788_v43 = vadd.f32 %v1081_v41, %v1059_v40  ;;  %v791_v47 = vsel %vm389_vm3, %v785_v39, 0.0 }
 0x188   : > { %v793_v48 = vsel %vm792_vm10, %v788_v43, 0.0  ;;  %v803_v49 = vmul.f32 %v788_v43, %v788_v43  ;;  %v814_v50 = vpack.c.bf16 %v788_v43, %v785_v39  ;;  %v1031_v52 = vpack.c.bf16 %v788_v43, %v788_v43 }
 0x189   : > { %v794_v51 = vadd.f32 %v793_v48, %v791_v47  ;;  %v804_v56 = vsel %vm389_vm3, %v802_v42, 0.0  ;;  %vm835_vm3 = vsmask.f32 6424 }
 0x18a   : > { %v805_v57 = vsel %vm792_vm10, %v803_v49, 0.0  ;;  %v819_v54 = vsel %vm1394_vm11, %v814_v50, %v818_v45  ;;  %v828_v53 = vrot.slane %v814_v50, %v827_v46  ;;  %v862_v60 = vrot.slane %v1031_v52, %v827_v46  ;;  %vm836_vm7 = vmor %vm834_vm6, %vm835_vm3 }
 0x18b   : > { %v795_v58 = vrot.slane %v794_v51, 4  ;;  %v806_v59 = vadd.f32 %v805_v57, %v804_v56  ;;  %820 = vst [vmem:[%s1392_s11] sm:$0x3] %v819_v54 }
 0x18c   : > { %v829_v62 = vcombine.high %v828_v53, %v828_v53  ;;  %v838_v0 = vshrl.u32 %v828_v53, 16  ;;  %v872_v2 = vrot.slane %v862_v60, 7 }
 0x18d   : > { %v796_v63 = vadd.f32 %v795_v58, %v794_v51  ;;  %v807_v61 = vrot.slane %v806_v59, 4 }
 0x18e   : > { %v843_v1 = vshrl.u32 %v829_v62, 16  ;;  %v1032_v29 = vrot.slane %v829_v62, 9  ;;  %v846_v7 = vshll.u32 %v829_v62, 16  ;;  %v1028_v11 = vrot.slane %v838_v0, 9 }
 0x18f   : > { %v797_v4 = vrot.slane %v796_v63, 2  ;;  %v808_v5 = vadd.f32 %v807_v61, %v806_v59 }
 0x190   : > { %v845_v6 = vrot.slane %v843_v1, 7  ;;  %v873_v8 = vsel %vm869_vm5, %v1032_v29, %v872_v2 }
 0x191   : > { %v798_v9 = vadd.f32 %v797_v4, %v796_v63  ;;  %v809_v10 = vrot.slane %v808_v5, 2  ;;  %v877_v55 = vsel %vm1394_vm11, %v873_v8, %v1033_v3 }
 0x192   : > { %v848_v12 = vor.u32 %v846_v7, %v845_v6  ;;  %1034 = vst [vmem:[%s1392_s11 + $0x4] sm:$0x3] %v877_v55 }
 0x193   : > { %v799_v14 = vrot.slane %v798_v9, 1  ;;  %v810_v15 = vadd.f32 %v809_v10, %v808_v5 }
 0x194   : > { %v849_v16 = vsel %vm836_vm7, %v1028_v11, %v848_v12 }
 0x195   : > { %v800_v17 = vadd.f32 %v799_v14, %v798_v9  ;;  %v811_v18 = vrot.slane %v810_v15, 1  ;;  %v853_v19 = vsel %vm1394_vm11, %v849_v16, %v1029_v13 }
 0x196   : > { %1030 = vst [vmem:[%s1392_s11 + $0x2] sm:$0x3] %v853_v19 }
 0x197   : > { %v812_v20 = vadd.f32 %v811_v18, %v810_v15  ;;  %879 = vst.msk [vmem:[%s265_s14] sm:$0x1] %vm792_vm10, %v800_v17 }
 0x199   : > { %880 = vst.msk [vmem:[%s268_s17] sm:$0x1] %vm792_vm10, %v812_v20 }
 0x19a PF: > { %s17_s21 = sadd.s32 1, %s1164_s21  }
 0x19b   : > { %p14_p4 = scmp.ge.s32.totalorder %s17_s21, 4  }
 0x19d   :  { %16 = sbr.rel (!%p14_p4) target bundleno = 1 (0x1), region = 92 }

// kernel: nlayer_discriminator_forward.9
= control target key start
LH: loop header
LB: loop body
LE: loop exit
PB: predicated region body
PF: predicated region fallthrough
CT: control target
= control target key end

     0   :  { %s1420_s20 = smov 0   ;;  %s1699_s0 = inlined_call_operand.vmem [shape: bf16[2,3,3,64], index: 0, kind: input, shape index: {}]   ;;  %s1700_s1 = inlined_call_operand.vmem [shape: bf16[1024,1], index: 1, kind: input, shape index: {}]   ;;  %s1701_s2 = inlined_call_operand.vmem [shape: f32[1,64], index: 2, kind: input, shape index: {}]   ;;  %s1702_s3 = inlined_call_operand.vmem [shape: f32[1,64], index: 3, kind: input, shape index: {}]   ;;  %s1703_s4 = inlined_call_operand.<no memory space> [shape: f32[1,1], index: 4, kind: input, shape index: {}]   ;;  %s1704_s5 = inlined_call_operand.vmem [shape: f32[2,2,2,1], index: 5, kind: output, shape index: {}]  }
   0x1   :  { %v10_v0 = vstv %s1703_s4 }
   0x2   :  { %11 = vst [vmem:[#allocation2] sm:$0x1] %v10_v0 }
   0x3 LB: > { %s1115_s21 = sadd.s32 4294967295, %s1383_s20   ;;  %p1119_p0 = scmp.ge.s32.totalorder %s1383_s20, 1  ;;  %s1383_s20 = sphi %s1420_s20, %s17_s20  }
   0x4   : > { %p189_p1 = scmp.lt.s32.totalorder %s1383_s20, 3 }
   0x6   : > { %p190_p2 = pnand %p1119_p0, %p189_p1 }
   0x7   : > { %p217_p3 = scmp.lt.s32.totalorder (!%p190_p2), %s1115_s21, 1  ;;  %v1313_v1 = vld [vmem:[%s1700_s1 + $0x40] sm:$0xff] (!%p190_p2)   ;;  %v1385_v6 = vmov (!%p190_p2), 0.0   ;;  %vm272_vm0 = vcmask (!%p190_p2), 1040384   ;;  %v1317_v8 = vld [vmem:[%s1700_s1 + $0x48] sm:$0xff] (!%p190_p2)   ;;  %vm277_vm1 = vcmask (!%p190_p2), 1043456  }
   0x8   : > { %193 = sbr.rel (%p190_p2) target bundleno = 417 (0x1a1), region = 40  ;;  %v1314_v2 = vld [vmem:[%s1700_s1] sm:$0xff] (!%p190_p2)   ;;  %1194 = vmatprep.subr.bf16.mxu0 (!%p190_p2), %v1313_v1  ;;  %v264_v7 = vrot.slane (!%p190_p2), %v1385_v6, 7  ;;  %v1318_v16 = vld [vmem:[%s1700_s1 + $0x8] sm:$0xff] (!%p190_p2)   ;;  %v1321_v23 = vld [vmem:[%s1700_s1 + $0x50] sm:$0xff] (!%p190_p2)   ;;  %s1386_s4 = smov (!%p190_p2), 64  }
   0x9   : > { %v1315_v3 = vld [vmem:[%s1700_s1 + $0xc0] sm:$0xff] (!%p190_p2)   ;;  %1195 = vmatpush3.bf16.msra.mxu0 (!%p190_p2), %v1314_v2  ;;  %v1319_v17 = vld [vmem:[%s1700_s1 + $0xc8] sm:$0xff] (!%p190_p2)   ;;  %v1322_v27 = vld [vmem:[%s1700_s1 + $0x10] sm:$0xff] (!%p190_p2)   ;;  %vm327_vm2 = vcmask (!%p190_p2), 523264   ;;  %vm360_vm3 = vcmask (!%p190_p2), 1041408   ;;  %vm1055_vm4 = vcmask (!%p190_p2), 1024  }
   0xa   : > { %v1316_v4 = vld [vmem:[%s1700_s1 + $0x80] sm:$0xff] (!%p190_p2)   ;;  %1216 = vmatprep.subr.bf16.mxu1 (!%p190_p2), %v1315_v3  ;;  %1196 = vmatprep.subr.bf16.mxu0 (!%p190_p2), %v1317_v8  ;;  %v273_v19 = vsel (!%p190_p2), %vm272_vm0, 0.0, %v264_v7  ;;  %v1320_v22 = vld [vmem:[%s1700_s1 + $0x88] sm:$0xff] (!%p190_p2)   ;;  %v1323_v29 = vld [vmem:[%s1700_s1 + $0xd0] sm:$0xff] (!%p190_p2)   ;;  %vm1058_vm5 = vcmask (!%p190_p2), 3074  }
   0xb   : > { %v1123_v5 = vld [vmem:[%s1701_s2] ss:$0 sm:$0xff] (!%p190_p2)  ;;  %1217 = vmatpush3.bf16.msra.mxu1 (!%p190_p2), %v1316_v4  ;;  %v1472_v28 = vsel (!%p190_p2), %vm277_vm1, %v273_v19, 0.0  ;;  %v1324_v33 = vld [vmem:[%s1700_s1 + $0x90] sm:$0xff] (!%p190_p2)   ;;  %v1325_v38 = vld [vmem:[%s1700_s1 + $0x58] sm:$0xff] (!%p190_p2)  }
   0xc   : > { %v1124_v10 = vld [vmem:[%s1702_s3] ss:$0 sm:$0xff] (!%p190_p2)  ;;  %1218 = vmatprep.subr.bf16.mxu1 (!%p190_p2), %v1319_v17  ;;  %v284_v35 = vrot.slane (!%p190_p2), %v1472_v28, 1  ;;  %v290_v39 = vrot.slane (!%p190_p2), %v1472_v28, 3  ;;  %v1326_v40 = vld [vmem:[%s1700_s1 + $0x18] sm:$0xff] (!%p190_p2)   ;;  %v1333_v2 = vld [vmem:[%s1700_s1 + $0x68] sm:$0xff] (!%p190_p2)  }
   0xd   : > { %1197 = vmatpush3.bf16.msra.mxu0 (!%p190_p2), %v1318_v16  ;;  %v1327_v44 = vld [vmem:[%s1700_s1 + $0xd8] sm:$0xff] (!%p190_p2)   ;;  %v1329_v52 = vld [vmem:[%s1700_s1 + $0x60] sm:$0xff] (!%p190_p2)   ;;  %v1334_v3 = vld [vmem:[%s1700_s1 + $0x28] sm:$0xff] (!%p190_p2)  }
   0xe   : > { %1198 = vmatprep.subr.bf16.mxu0 (!%p190_p2), %v1321_v23  ;;  %v1328_v48 = vld [vmem:[%s1700_s1 + $0x98] sm:$0xff] (!%p190_p2)   ;;  %v1330_v59 = vld [vmem:[%s1700_s1 + $0x20] sm:$0xff] (!%p190_p2)   ;;  %v1335_v4 = vld [vmem:[%s1700_s1 + $0xe8] sm:$0xff] (!%p190_p2)   ;;  %v288_v23 = vrot.slane (!%p190_p2), %v1472_v28, 2 }
   0xf   : > { %s1706_s21 = smov (!%p217_p3, %s1115_s21), 1  ;;  %1219 = vmatpush3.bf16.msra.mxu1 %v1320_v22  ;;  %v1331_v60 = vld [vmem:[%s1700_s1 + $0xe0] sm:$0xff]   ;;  %v1337_v6 = vld [vmem:[%s1700_s1 + $0x70] sm:$0xff]  }
  0x10   : > { %s1282_s25 = smul.u32 6, %s1706_s21  ;;  %1220 = vmatprep.subr.bf16.mxu1 %v1323_v29  ;;  %v1332_v63 = vld [vmem:[%s1700_s1 + $0xa0] sm:$0xff]   ;;  %v1338_v7 = vld [vmem:[%s1700_s1 + $0x30] sm:$0xff]   ;;  %s1193_s13 = sshll.u32 %s1706_s21, 2 }
  0x11   : > { %1199 = vmatpush3.bf16.msra.mxu0 %v1322_v27  ;;  %v1339_v8 = vld [vmem:[%s1700_s1 + $0xf0] sm:$0xff]   ;;  %s226_s16 = scalar_lea.vmem %s1704_s5, %s1193_s13 }
  0x12   : > { %s221_s9 = scalar_lea.vmem %s1699_s0, %s1282_s25  ;;  %1200 = vmatprep.subr.bf16.mxu0 %v1325_v38 }
  0x13   : > { %v229_v9 = vld [vmem:[%s221_s9 + $0x2] sm:$0x3]  ;;  %v228_v11 = vld [vmem:[%s221_s9] sm:$0x3]  ;;  %v230_v12 = vld [vmem:[%s221_s9 + $0x4] sm:$0x3]  ;;  %1221 = vmatpush3.bf16.msra.mxu1 %v1324_v33 }
  0x14   : > { %v232_v13 = vunpack.c.l.bf16 %v229_v9  ;;  %v231_v14 = vunpack.c.l.bf16 %v228_v11  ;;  %v233_v15 = vunpack.c.l.bf16 %v230_v12  ;;  %1222 = vmatprep.subr.bf16.mxu1 %v1327_v44  ;;  %v1340_v9 = vld [vmem:[%s1700_s1 + $0xb0] sm:$0xff]   ;;  %v1342_v11 = vld [vmem:[%s1700_s1 + $0x38] sm:$0xff]  }
  0x15   : > { %1201 = vmatpush3.bf16.msra.mxu0 %v1326_v40  ;;  %v1343_v12 = vld [vmem:[%s1700_s1 + $0xf8] sm:$0xff]  }
  0x16   : > { %v242_v18 = vmul.f32 %v1123_v5, %v232_v13  ;;  %v241_v20 = vmul.f32 %v1123_v5, %v231_v14  ;;  %v243_v21 = vmul.f32 %v1123_v5, %v233_v15  ;;  %1202 = vmatprep.subr.bf16.mxu0 %v1329_v52  ;;  %v1336_v5 = vld [vmem:[%s1700_s1 + $0xa8] sm:$0xff]   ;;  %v1344_v13 = vld [vmem:[%s1700_s1 + $0xb8] sm:$0xff]   ;;  %v1345_v14 = vld [vmem:[%s1700_s1 + $0x140] sm:$0xff]  }
  0x17   : > { %1223 = vmatpush3.bf16.msra.mxu1 %v1328_v48  ;;  %v1347_v15 = vld [vmem:[%s1700_s1 + $0x1c0] sm:$0xff]  }
  0x18   : > { %v252_v24 = vadd.f32 %v1124_v10, %v242_v18  ;;  %v251_v25 = vadd.f32 %v1124_v10, %v241_v20  ;;  %v253_v26 = vadd.f32 %v1124_v10, %v243_v21  ;;  %1224 = vmatprep.subr.bf16.mxu1 %v1331_v60  ;;  %v1341_v10 = vld [vmem:[%s1700_s1 + $0x78] sm:$0xff]   ;;  %v1350_v60 = vld [vmem:[%s1700_s1 + $0x108] sm:$0xff]  }
  0x19   : > { %1203 = vmatpush3.bf16.msra.mxu0 %v1330_v59  ;;  %v1351_v59 = vld [vmem:[%s1700_s1 + $0x1c8] sm:$0xff]  }
  0x1a   : > { %v255_v30 = vmul.f32 0.2, %v252_v24  ;;  %v254_v31 = vmul.f32 0.2, %v251_v25  ;;  %v256_v32 = vmul.f32 0.2, %v253_v26  ;;  %1204 = vmatprep.subr.bf16.mxu0 %v1333_v2 }
  0x1b   : > { %1225 = vmatpush3.bf16.msra.mxu1 %v1332_v63  ;;  %v1352_v63 = vld [vmem:[%s1700_s1 + $0x188] sm:$0xff]   ;;  %v1357_v2 = vld [vmem:[%s1700_s1 + $0x158] sm:$0xff]  }
  0x1c   : > { %v258_v34 = vmax.f32 %v252_v24, %v255_v30  ;;  %v257_v36 = vmax.f32 %v251_v25, %v254_v31  ;;  %v259_v37 = vmax.f32 %v253_v26, %v256_v32  ;;  %1226 = vmatprep.subr.bf16.mxu1 %v1335_v4  ;;  %v1359_v4 = vld [vmem:[%s1700_s1 + $0x1d8] sm:$0xff]  }
  0x1d   : > { %1205 = vmatpush3.bf16.msra.mxu0 %v1334_v3  ;;  %v1356_v3 = vld [vmem:[%s1700_s1 + $0x190] sm:$0xff]  }
  0x1e   : > { %v266_v41 = vrot.slane %v258_v34, 7  ;;  %v265_v42 = vrot.slane %v257_v36, 7  ;;  %v267_v43 = vrot.slane %v259_v37, 7  ;;  %1206 = vmatprep.subr.bf16.mxu0 %v1337_v6  ;;  %v1361_v6 = vld [vmem:[%s1700_s1 + $0x160] sm:$0xff]  }
  0x1f   : > { %1227 = vmatpush3.bf16.msra.mxu1 %v1336_v5  ;;  %v1358_v5 = vld [vmem:[%s1700_s1 + $0x118] sm:$0xff]  }
  0x20   : > { %v275_v45 = vsel %vm272_vm0, 0.0, %v266_v41  ;;  %v274_v46 = vsel %vm272_vm0, 0.0, %v265_v42  ;;  %v276_v47 = vsel %vm272_vm0, 0.0, %v267_v43  ;;  %1228 = vmatprep.subr.bf16.mxu1 %v1339_v8  ;;  %v1363_v8 = vld [vmem:[%s1700_s1 + $0x1e0] sm:$0xff]  }
  0x21   : > { %v1498_v49 = vsel %vm277_vm1, %v275_v45, 0.0  ;;  %v1501_v50 = vsel %vm277_vm1, %v274_v46, 0.0  ;;  %v1504_v51 = vsel %vm277_vm1, %v276_v47, 0.0  ;;  %1207 = vmatpush3.bf16.msra.mxu0 %v1338_v7  ;;  %v1346_v47 = vld [vmem:[%s1700_s1 + $0x100] sm:$0xff]   ;;  %v1360_v7 = vld [vmem:[%s1700_s1 + $0x198] sm:$0xff]  }
  0x22   : > { %v306_v53 = vrot.slane %v1498_v49, 1  ;;  %v295_v54 = vrot.slane %v1501_v50, 1  ;;  %v301_v55 = vrot.slane %v1501_v50, 3  ;;  %v317_v56 = vrot.slane %v1504_v51, 1  ;;  %1208 = vmatprep.subr.bf16.mxu0 %v1341_v10  ;;  %v1365_v10 = vld [vmem:[%s1700_s1 + $0x168] sm:$0xff]  }
  0x23   : > { %v323_v57 = vrot.slane %v1504_v51, 3  ;;  %v312_v58 = vrot.slane %v1498_v49, 3  ;;  %1229 = vmatpush3.bf16.msra.mxu1 %v1340_v9  ;;  %v299_v18 = vrot.slane %v1501_v50, 2  ;;  %v321_v26 = vrot.slane %v1504_v51, 2  ;;  %v1362_v9 = vld [vmem:[%s1700_s1 + $0x120] sm:$0xff]  }
  0x24   : > { %v1303_v61 = vpack.i.bf16 %v306_v53, %v284_v35  ;;  %v1293_v62 = vpack.i.bf16 %v295_v54, %v301_v55  ;;  %1230 = vmatprep.subr.bf16.mxu1 %v1343_v12  ;;  %v310_v27 = vrot.slane %v1498_v49, 2  ;;  %v1348_v55 = vld [vmem:[%s1700_s1 + $0x180] sm:$0xff]  }
  0x25   : > { %v1308_v0 = vpack.i.bf16 %v317_v56, %v323_v57  ;;  %v1298_v1 = vpack.i.bf16 %v312_v58, %v290_v39  ;;  %1209 = vmatpush3.bf16.msra.mxu0 %v1342_v11  ;;  %v1349_v56 = vld [vmem:[%s1700_s1 + $0x148] sm:$0xff]   ;;  %v1364_v11 = vld [vmem:[%s1700_s1 + $0x1a0] sm:$0xff]  }
  0x26   : > { %1304 = vrot.lane.b32.xlu1 %v1303_v61, %s1386_s4  ;;  %1294 = vrot.lane.b32.xlu0 %v1293_v62, %s1386_s4  ;;  %v1353_v62 = vld [vmem:[%s1700_s1 + $0x150] sm:$0xff]  }
  0x27   : > { %1231 = vmatpush3.bf16.msra.mxu1 %v1344_v13  ;;  %1238 = vmatprep.subr.bf16.mxu0 %v1345_v14  ;;  %v1367_v13 = vld [vmem:[%s1700_s1 + $0x1e8] sm:$0xff]  }
  0x28   : > { %1260 = vmatprep.subr.bf16.mxu1 %v1347_v15  ;;  %v1366_v14 = vld [vmem:[%s1700_s1 + $0x128] sm:$0xff]   ;;  %v1369_v15 = vld [vmem:[%s1700_s1 + $0x170] sm:$0xff]  }
  0x2a   : > { %1309 = vrot.lane.b32.xlu1 %v1308_v0, %s1386_s4  ;;  %1299 = vrot.lane.b32.xlu0 %v1298_v1, %s1386_s4  ;;  %v1355_v0 = vld [vmem:[%s1700_s1 + $0x1d0] sm:$0xff]  }
  0x2b   : > { %v1354_v1 = vld [vmem:[%s1700_s1 + $0x110] sm:$0xff]  }
  0x98   : > { %v1305_v16 = vpop.permute.xlu1 %1304  ;;  %v1295_v17 = vpop.permute.xlu0 %1294 }
  0x99   : > { %v1307_v19 = vunpack.i.h.bf16 %v1305_v16  ;;  %v1306_v20 = vunpack.i.l.bf16 %v1305_v16  ;;  %v1297_v21 = vunpack.i.h.bf16 %v1295_v17  ;;  %v1296_v22 = vunpack.i.l.bf16 %v1295_v17  ;;  %v1368_v16 = vld [vmem:[%s1700_s1 + $0x1a8] sm:$0xff]  }
  0x9b   : > { %v1570_v24 = vsel %vm327_vm2, %v1498_v49, %v1307_v19  ;;  %v330_v25 = vsel %vm327_vm2, %v1501_v50, %v1297_v21  ;;  %v331_v32 = vsel %vm327_vm2, %v299_v18, %v1296_v22  ;;  %v1581_v33 = vsel %vm327_vm2, %v1472_v28, %v1306_v20  ;;  %v1371_v18 = vld [vmem:[%s1700_s1 + $0x1f0] sm:$0xff]   ;;  %v1373_v20 = vld [vmem:[%s1700_s1 + $0x178] sm:$0xff]  }
  0x9c   : > { %v344_v29 = vrot.slane %v330_v25, 6  ;;  %v1576_v30 = vpop.permute.xlu1 %1309  ;;  %v1300_v31 = vpop.permute.xlu0 %1299  ;;  %v346_v37 = vrot.slane %v1570_v24, 6  ;;  %v345_v41 = vrot.slane %v331_v32, 6  ;;  %v1370_v19 = vld [vmem:[%s1700_s1 + $0x130] sm:$0xff]   ;;  %v1375_v22 = vld [vmem:[%s1700_s1 + $0x1f8] sm:$0xff]  }
  0x9d   : > { %v1311_v34 = vunpack.i.l.bf16 %v1576_v30  ;;  %v1302_v35 = vunpack.i.h.bf16 %v1300_v31  ;;  %v1301_v36 = vunpack.i.l.bf16 %v1300_v31  ;;  %v1312_v12 = vunpack.i.h.bf16 %v1576_v30 }
  0x9e   : > { %v361_v44 = vsel %vm360_vm3, %v1581_v33, %v344_v29  ;;  %v363_v49 = vsel %vm360_vm3, %v330_v25, %v346_v37  ;;  %v1374_v25 = vld [vmem:[%s1700_s1 + $0x138] sm:$0xff]  }
  0x9f   : > { %v335_v38 = vsel %vm327_vm2, %v321_v26, %v1311_v34  ;;  %v333_v39 = vsel %vm327_vm2, %v310_v27, %v1302_v35  ;;  %v329_v40 = vsel %vm327_vm2, %v288_v23, %v1301_v36  ;;  %v369_v50 = vpack.c.bf16 %v361_v44, %v361_v44  ;;  %v1376_v26 = vld [vmem:[%s1700_s1 + $0x1b8] sm:$0xff]  }
  0xa0   : > { %v349_v42 = vrot.slane %v335_v38, 6  ;;  %v351_v43 = vrot.slane %v329_v40, 6  ;;  %v362_v28 = vsel %vm360_vm3, %v329_v40, %v345_v41  ;;  %v347_v45 = vrot.slane %v333_v39, 6 }
  0xa1   : > { %v370_v46 = vpack.c.bf16 %v362_v28, %v362_v28  ;;  %v371_v58 = vpack.c.bf16 %v363_v49, %v363_v49  ;;  %v334_v17 = vsel %vm327_vm2, %v1504_v51, %v1312_v12  ;;  %v1372_v51 = vld [vmem:[%s1700_s1 + $0x1b0] sm:$0xff]   ;;  %v350_v23 = vrot.slane %v1581_v33, 6  ;;  %v1125_v33 = vld [vmem:[#allocation2] ss:$0 sm:$0xff] }
  0xa2   : > { %v366_v48 = vsel %vm360_vm3, %v333_v39, %v349_v42  ;;  %v364_v52 = vsel %vm360_vm3, %v331_v32, %v347_v45  ;;  %v368_v57 = vsel %vm360_vm3, %v335_v38, %v351_v43  ;;  %v348_v21 = vrot.slane %v334_v17, 6 }
  0xa3   : > { %v374_v53 = vpack.c.bf16 %v366_v48, %v366_v48  ;;  %927 = vmatprep.mubr.bf16.mxu0 %v370_v46  ;;  %v372_v54 = vpack.c.bf16 %v364_v52, %v364_v52  ;;  %v376_v61 = vpack.c.bf16 %v368_v57, %v368_v57  ;;  %v367_v29 = vsel %vm360_vm3, %v334_v17, %v350_v23 }
  0xa4   : > { %928 = vmatmul.mubr.bf16.vlgmr.msra.gmra.mrb[0].mxu0 %v369_v50  ;;  %v365_v27 = vsel %vm360_vm3, %v1570_v24, %v348_v21  ;;  %v375_v31 = vpack.c.bf16 %v367_v29, %v367_v29 }
  0xa5   : > { %1239 = vmatpush3.bf16.msra.mxu0 %v1346_v47  ;;  %967 = vmatprep.mubr.bf16.mxu1 %v372_v54  ;;  %v373_v30 = vpack.c.bf16 %v365_v27, %v365_v27 }
  0xa6   : > { %1007 = vmatprep.mubr.bf16.mxu0 %v374_v53  ;;  %968 = vmatmul.mubr.bf16.vlgmr.msra.gmra.mrb[0].mxu1 %v371_v58 }
  0xa7   : > { %1261 = vmatpush3.bf16.msra.mxu1 %v1348_v55  ;;  %1240 = vmatprep.subr.bf16.mxu0 %v1349_v56 }
  0xa8   : > { %1047 = vmatprep.mubr.bf16.mxu1 %v376_v61  ;;  %1262 = vmatprep.subr.bf16.mxu1 %v1351_v59 }
  0xa9   : > { %1241 = vmatpush3.bf16.msra.mxu0 %v1350_v60 }
  0xaa   : > { %1242 = vmatprep.subr.bf16.mxu0 %v1353_v62 }
  0xab   : > { %1263 = vmatpush3.bf16.msra.mxu1 %v1352_v63 }
  0xac   : > { %1264 = vmatprep.subr.bf16.mxu1 %v1355_v0 }
  0xad   : > { %1243 = vmatpush3.bf16.msra.mxu0 %v1354_v1 }
  0xae   : > { %1244 = vmatprep.subr.bf16.mxu0 %v1357_v2 }
  0xaf   : > { %1265 = vmatpush3.bf16.msra.mxu1 %v1356_v3 }
  0xb0   : > { %1266 = vmatprep.subr.bf16.mxu1 %v1359_v4 }
  0xb1   : > { %1245 = vmatpush3.bf16.msra.mxu0 %v1358_v5 }
  0xb2   : > { %1246 = vmatprep.subr.bf16.mxu0 %v1361_v6 }
  0xb3   : > { %1267 = vmatpush3.bf16.msra.mxu1 %v1360_v7 }
  0xb4   : > { %1268 = vmatprep.subr.bf16.mxu1 %v1363_v8 }
  0xb5   : > { %1247 = vmatpush3.bf16.msra.mxu0 %v1362_v9 }
  0xb6   : > { %1248 = vmatprep.subr.bf16.mxu0 %v1365_v10 }
  0xb7   : > { %1269 = vmatpush3.bf16.msra.mxu1 %v1364_v11 }
  0xb8   : > { %1270 = vmatprep.subr.bf16.mxu1 %v1367_v13 }
  0xb9   : > { %1249 = vmatpush3.bf16.msra.mxu0 %v1366_v14 }
  0xba   : > { %1250 = vmatprep.subr.bf16.mxu0 %v1369_v15 }
  0xbb   : > { %1271 = vmatpush3.bf16.msra.mxu1 %v1368_v16 }
  0xbc   : > { %1272 = vmatprep.subr.bf16.mxu1 %v1371_v18 }
  0xbd   : > { %1251 = vmatpush3.bf16.msra.mxu0 %v1370_v19 }
  0xbe   : > { %1252 = vmatprep.subr.bf16.mxu0 %v1373_v20 }
  0xbf   : > { %1273 = vmatpush3.bf16.msra.mxu1 %v1372_v51 }
  0xc0   : > { %1274 = vmatprep.subr.bf16.mxu1 %v1375_v22 }
  0xc1   : > { %1253 = vmatpush3.bf16.msra.mxu0 %v1374_v25 }
  0xc3   : > { %1275 = vmatpush3.bf16.msra.mxu1 %v1376_v26 }
  0xc4   : > { %1008 = vmatmul.mubr.bf16.vlgmr.msra.gmra.mrb[4].mxu0 %v373_v30 }
  0xc6   : > { %1048 = vmatmul.mubr.bf16.vlgmr.msra.gmra.mrb[4].mxu1 %v375_v31 }
 0x177   : > { %v1210_v32 = vpop.f32.mrb[0].mxu0 }
 0x178   : > { %v1211_v34 = vpop.f32.mrb[1].mxu0 }
 0x179   : > { %v1212_v35 = vadd.f32 %v1211_v34, %v1210_v32  ;;  %v1213_v36 = vpop.f32.mrb[2].mxu0  ;;  %v1232_v37 = vpop.f32.mrb[0].mxu1 }
 0x17a   : > { %v1214_v38 = vpop.f32.mrb[3].mxu0  ;;  %v1233_v39 = vpop.f32.mrb[1].mxu1 }
 0x17b   : > { %v930_v40 = vadd.f32 %v1212_v35, %v1125_v33  ;;  %v1234_v24 = vadd.f32 %v1233_v39, %v1232_v37  ;;  %v1235_v41 = vpop.f32.mrb[2].mxu1 }
 0x17c   : > { %v1236_v42 = vpop.f32.mrb[3].mxu1 }
 0x17d   : > { %v970_v43 = vadd.f32 %v1234_v24, %v930_v40 }
 0x197   : > { %v1254_v44 = vpop.f32.mrb[4].mxu0 }
 0x198   : > { %v1255_v28 = vpop.f32.mrb[5].mxu0 }
 0x199   : > { %v1256_v45 = vadd.f32 %v1255_v28, %v1254_v44  ;;  %v1257_v46 = vpop.f32.mrb[6].mxu0  ;;  %v1276_v47 = vpop.f32.mrb[4].mxu1 }
 0x19a   : > { %v1258_v48 = vpop.f32.mrb[7].mxu0  ;;  %v1277_v49 = vpop.f32.mrb[5].mxu1 }
 0x19b   : > { %v1010_v50 = vadd.f32 %v1256_v45, %v970_v43  ;;  %v1278_v52 = vadd.f32 %v1277_v49, %v1276_v47  ;;  %v1279_v53 = vpop.f32.mrb[6].mxu1 }
 0x19c   : > { %v1280_v54 = vpop.f32.mrb[7].mxu1 }
 0x19d   : > { %v1050_v55 = vadd.f32 %v1278_v52, %v1010_v50 }
 0x19f   : > { %1056 = vst.msk [vmem:[%s226_s16] sm:$0x3] %vm1055_vm4, %v1050_v55 }
 0x1a0   : > { %1190 = vst.msk [vmem:[%s226_s16] sm:$0xc] %vm1058_vm5, %v1050_v55 }
 0x1a1 PF: > { %s17_s20 = sadd.s32 1, %s1383_s20  }
 0x1a2   : > { %p14_p4 = scmp.ge.s32.totalorder %s17_s20, 4  }
 0x1a4   :  { %16 = sbr.rel (!%p14_p4) target bundleno = 3 (0x3), region = 71 }

</bundles_post_ra>
